<compile_context>
chip_gen: v6e
topology: v6e:2x2x1
jax: 0.10.0
libtpu: 0.0.40
codegen_flags: <defaults>
</compile_context>

<pallas_src>
import functools

import jax
import jax.numpy as jnp
from jax import lax
from jax.experimental import pallas as pl
from jax.experimental.pallas import tpu as pltpu

VMEM_SPEC = pl.BlockSpec(memory_space=pltpu.MemorySpace.VMEM)
_VMEM_LIMIT = 32 * 1024 * 1024  # safe on v5e/v6e (128 MiB) and v7x (64 MiB physical)


# ----------------------------- conv block kernel ----------------------------

def _make_conv_block_kernel(K, stride, PW, Cin, Cout, use_mxu):
    """Fused Conv(k, s, pad=k//2) + bias + ReLU + BN(eval) + MaxPool(2,2).

    Grid = (N, PH).  Each grid step produces one pooled output row (PW, Cout).
    The padded input arrives column-phase-split (m = 2*stride phases), so every
    conv tap is a contiguous slice — no strided loads, no im2col.
    """
    m = 2 * stride            # number of column phases == pooled column stride
    SH = stride + K           # padded-input rows needed per pooled output row

    def kernel(x_ref, w_ref, b_ref, scale_ref, shift_ref, o_ref):
        # x_ref: (m, Hp, Wq, Cin)  phases of one batch element (resident across ph)
        # w_ref: (K*K, Cin, Cout)  conv weights, tap-major (kh*K + kw)
        # o_ref: (1, 1, PW, Cout)  pooled output row for this (n, ph) grid point
        ph = pl.program_id(1)
        row0 = pl.multiple_of(m * ph, m)

        # One contiguous (SH, Wq, Cin) slab per phase covers every tap needed by
        # both conv rows feeding this pooled row.
        slabs = [x_ref[j, pl.ds(row0, SH)] for j in range(m)]
        taps = [w_ref[t] for t in range(K * K)]              # (Cin, Cout) each
        bias = b_ref[...]                                     # (1, Cout)
        scale = scale_ref[...]
        shift = shift_ref[...]

        pooled = None
        for a in (0, 1):          # conv-row parity inside the 2x2 pool window
            for b in (0, 1):      # conv-col parity inside the 2x2 pool window
                acc = jnp.zeros((PW, Cout), jnp.float32)
                for kh in range(K):
                    for kw in range(K):
                        col = stride * b + kw
                        j, off = col % m, col // m
                        lhs = slabs[j][stride * a + kh, off:off + PW, :]  # (PW, Cin)
                        w_t = taps[kh * K + kw]                           # (Cin, Cout)
                        if use_mxu:
                            acc = acc + jnp.dot(
                                lhs, w_t, preferred_element_type=jnp.float32)
                        else:
                            # Tiny contraction (Cin < 8): VPU broadcast-MAC.
                            for c in range(Cin):
                                acc = acc + (lhs[:, c:c + 1].astype(jnp.float32)
                                             * w_t[c:c + 1, :].astype(jnp.float32))
                y = jnp.maximum(acc + bias, 0.0)       # conv bias + ReLU
                y = y * scale + shift                  # eval-mode BatchNorm (folded)
                pooled = y if pooled is None else jnp.maximum(pooled, y)
        o_ref[0, 0] = pooled

    return kernel


def _conv_block(x, w, b, scale, shift, stride):
    """x: NHWC f32.  Returns pooled NHWC f32 activation."""
    N, H, W, Cin = x.shape
    K, _, _, Cout = w.shape
    pad = K // 2
    OH = (H + 2 * pad - K) // stride + 1
    OW = (W + 2 * pad - K) // stride + 1
    PH, PW = OH // 2, OW // 2
    assert PH >= 1 and PW >= 1, "spatial input too small for this block"

    m = 2 * stride
    Hp, Wp = H + 2 * pad, W + 2 * pad
    Wq = -(-Wp // m)                      # phase width (ceil)
    use_mxu = Cin >= 8
    cdt = jnp.bfloat16 if use_mxu else jnp.float32   # bf16 feeds the MXU

    # Pad + split the padded input into m column phases:
    #   xph[n*m + j, h, q, c] == xpad[n, h, m*q + j, c]
    # Total bytes ~= padded input (no im2col blow-up); every conv tap becomes a
    # contiguous slice of one phase inside the kernel.
    xp = jnp.pad(x, ((0, 0), (pad, pad), (pad, pad + m * Wq - Wp), (0, 0))).astype(cdt)
    xph = jnp.stack([xp[:, :, j::m, :] for j in range(m)], axis=1)
    xph = xph.reshape(N * m, Hp, Wq, Cin)
    w_taps = w.reshape(K * K, Cin, Cout).astype(cdt)

    kernel = _make_conv_block_kernel(K, stride, PW, Cin, Cout, use_mxu)
    return pl.pallas_call(
        kernel,
        out_shape=jax.ShapeDtypeStruct((N, PH, PW, Cout), jnp.float32),
        grid=(N, PH),
        in_specs=[
            pl.BlockSpec((m, Hp, Wq, Cin), lambda n, ph: (n, 0, 0, 0)),
            pl.BlockSpec((K * K, Cin, Cout), lambda n, ph: (0, 0, 0)),
            pl.BlockSpec((1, Cout), lambda n, ph: (0, 0)),
            pl.BlockSpec((1, Cout), lambda n, ph: (0, 0)),
            pl.BlockSpec((1, Cout), lambda n, ph: (0, 0)),
        ],
        out_specs=pl.BlockSpec((1, 1, PW, Cout), lambda n, ph: (n, ph, 0, 0)),
        compiler_params=pltpu.CompilerParams(
            dimension_semantics=("parallel", "parallel"),
            vmem_limit_bytes=_VMEM_LIMIT),
        cost_estimate=pl.CostEstimate(
            flops=2 * N * OH * OW * K * K * Cin * Cout,
            transcendentals=0,
            bytes_accessed=(xph.size * xph.dtype.itemsize
                            + w_taps.size * w_taps.dtype.itemsize
                            + N * PH * PW * Cout * 4)),
    )(xph, w_taps, b, scale, shift)


# ------------------------------- fused tail ----------------------------------

def _adaptive_bins(S, out_size=3):
    # PyTorch AdaptiveAvgPool2d bin edges: start=floor(i*S/O), end=ceil((i+1)*S/O)
    return [((i * S) // out_size, ((i + 1) * S + out_size - 1) // out_size)
            for i in range(out_size)]


def _make_tail_kernel(bins_h, bins_w):
    """AdaptiveAvgPool2d(3) + NCHW flatten + Linear -> ReLU -> (Dropout=id) -> Linear."""
    def kernel(x_ref, w1_ref, b1_ref, w2_ref, b2_ref, o_ref):
        x = x_ref[...]                               # (N, Sh, Sw, C) f32
        n = x.shape[0]
        hidden = w1_ref.shape[2]
        h = jnp.zeros((n, hidden), jnp.float32)
        for i, (hs, he) in enumerate(bins_h):
            for j, (ws, we) in enumerate(bins_w):
                inv = 1.0 / float((he - hs) * (we - ws))
                p = jnp.sum(jnp.sum(x[:, hs:he, ws:we, :], axis=2), axis=1) * inv  # (N, C)
                h = h + jnp.dot(p.astype(jnp.bfloat16), w1_ref[i * 3 + j],
                                preferred_element_type=jnp.float32)
        h = jnp.maximum(h + b1_ref[...], 0.0)
        # TODO(synk): Dropout is identity here (eval mode); stochastic dropout not implemented.
        o_ref[...] = (jnp.dot(h.astype(jnp.bfloat16), w2_ref[...],
                              preferred_element_type=jnp.float32) + b2_ref[...])
    return kernel


def _tail(x, fc1_w, fc1_b, fc2_w, fc2_b):
    N, Sh, Sw, C = x.shape
    hidden = fc1_w.shape[1]
    ncls = fc2_w.shape[1]
    bins_h = _adaptive_bins(Sh, 3)
    bins_w = _adaptive_bins(Sw, 3)
    # fc1 rows are indexed c*9 + i*3 + j (torch.flatten of NCHW); re-layout to
    # (9, C, hidden) so the kernel consumes NHWC pooled bins directly.
    w1r = jnp.transpose(fc1_w.reshape(C, 9, hidden), (1, 0, 2)).astype(jnp.bfloat16)
    return pl.pallas_call(
        _make_tail_kernel(bins_h, bins_w),
        out_shape=jax.ShapeDtypeStruct((N, ncls), jnp.float32),
        in_specs=[VMEM_SPEC] * 5,
        out_specs=VMEM_SPEC,
        compiler_params=pltpu.CompilerParams(vmem_limit_bytes=_VMEM_LIMIT),
    )(x, w1r, fc1_b, fc2_w.astype(jnp.bfloat16), fc2_b)


# --------------------------------- forward -----------------------------------

@functools.partial(jax.jit, static_argnames=("strides",))
def octcnn_forward(x_nchw, params, strides):
    """Full OCTCNN forward (eval mode).  x_nchw: (N, C, H, W) float32."""
    x = jnp.transpose(x_nchw, (0, 2, 3, 1)).astype(jnp.float32)   # -> NHWC
    for blk, s in zip(params["blocks"], strides):
        x = _conv_block(x, blk["w"], blk["b"], blk["scale"], blk["shift"], s)
    return _tail(x, params["fc1_w"], params["fc1_b"], params["fc2_w"], params["fc2_b"])


# ------------------------------ parameter init --------------------------------

def init_params(key, num_classes, num_channels=1,
                out_channels=(32, 64, 128), kernel_sizes=(3, 3, 3),
                stride_sizes=(2, 2, 2), eps=1e-5):
    blocks = []
    prev = num_channels
    for co, k, s in zip(out_channels, kernel_sizes, stride_sizes):
        key, kw_, kb_, kg_, kbt_, km_, kv_ = jax.random.split(key, 7)
        fan_in = k * k * prev
        w = jax.random.normal(kw_, (k, k, prev, co), jnp.float32) * jnp.sqrt(2.0 / fan_in)
        b = 0.01 * jax.random.normal(kb_, (1, co), jnp.float32)
        gamma = 1.0 + 0.1 * jax.random.normal(kg_, (co,), jnp.float32)
        beta = 0.1 * jax.random.normal(kbt_, (co,), jnp.float32)
        rmean = 0.1 * jax.random.normal(km_, (co,), jnp.float32)
        rvar = 1.0 + 0.1 * jax.random.uniform(kv_, (co,), jnp.float32)
        scale = gamma / jnp.sqrt(rvar + eps)
        shift = beta - rmean * scale
        blocks.append(dict(w=w, b=b, scale=scale.reshape(1, co), shift=shift.reshape(1, co)))
        prev = co
    key, k1, k2, k3, k4 = jax.random.split(key, 5)
    fin = prev * 3 * 3
    fc1_w = jax.random.normal(k1, (fin, 128), jnp.float32) * jnp.sqrt(2.0 / fin)
    fc1_b = 0.01 * jax.random.normal(k2, (1, 128), jnp.float32)
    fc2_w = jax.random.normal(k3, (128, num_classes), jnp.float32) * jnp.sqrt(2.0 / 128)
    fc2_b = 0.01 * jax.random.normal(k4, (1, num_classes), jnp.float32)
    params = dict(blocks=blocks, fc1_w=fc1_w, fc1_b=fc1_b, fc2_w=fc2_w, fc2_b=fc2_b)
    return params, tuple(stride_sizes)


# ---------------------------- pure-JAX reference ------------------------------

def reference_forward(x_nchw, params, strides):
    x = jnp.transpose(x_nchw, (0, 2, 3, 1)).astype(jnp.float32)
    for blk, s in zip(params["blocks"], strides):
        k = blk["w"].shape[0]
        pad = k // 2
        y = lax.conv_general_dilated(x, blk["w"], (s, s), ((pad, pad), (pad, pad)),
                                     dimension_numbers=("NHWC", "HWIO", "NHWC"))
        y = jnp.maximum(y + blk["b"].reshape(1, 1, 1, -1), 0.0)
        y = y * blk["scale"].reshape(1, 1, 1, -1) + blk["shift"].reshape(1, 1, 1, -1)
        N, H, W, C = y.shape
        PH, PW = H // 2, W // 2
        x = y[:, :2 * PH, :2 * PW, :].reshape(N, PH, 2, PW, 2, C).max(axis=(2, 4))
    N, Sh, Sw, C = x.shape
    rows = []
    for (hs, he) in _adaptive_bins(Sh, 3):
        for (ws, we) in _adaptive_bins(Sw, 3):
            rows.append(jnp.mean(x[:, hs:he, ws:we, :], axis=(1, 2)))
    pooled = jnp.stack(rows, axis=1)                       # (N, 9, C)
    feat = jnp.transpose(pooled, (0, 2, 1)).reshape(N, C * 9)
    h = jnp.maximum(feat @ params["fc1_w"] + params["fc1_b"], 0.0)
    return h @ params["fc2_w"] + params["fc2_b"]


# ---------------------------------- main --------------------------------------

if __name__ == "__main__":
    key = jax.random.PRNGKey(0)
    key, kx, kp = jax.random.split(key, 3)

    num_classes = 4
    # NCHW input (PyTorch convention); 48x48 is the smallest clean size for
    # three stride-2 conv + 2x2 maxpool stages.
    x = jax.random.normal(kx, (2, 1, 48, 48), jnp.float32)
    params, strides = init_params(kp, num_classes=num_classes, num_channels=1)

    out = jax.block_until_ready(octcnn_forward(x, params, strides))
    ref = jax.block_until_ready(reference_forward(x, params, strides))

    assert out.shape == (2, num_classes), out.shape
    assert bool(jnp.all(jnp.isfinite(out)))
    # Loose tolerance: the Pallas kernels use bf16 MXU inputs (f32 accumulate),
    # while the reference goes through XLA's default-precision conv/dot lowering.
    assert bool(jnp.allclose(out, ref, atol=1e-1, rtol=1e-1)), (out, ref)

    print("KERNEL_OK")
</pallas_src>

<mosaic_0001>
module attributes {stable_mosaic.version = 11 : i64} {
  func.func @kernel(%arg0: i32, %arg1: i32, %arg2: memref<4x50x13x1xf32, #tpu.memory_space<vmem>>, %arg3: memref<9x1x32xf32, #tpu.memory_space<vmem>>, %arg4: memref<1x32xf32, #tpu.memory_space<vmem>>, %arg5: memref<1x32xf32, #tpu.memory_space<vmem>>, %arg6: memref<1x32xf32, #tpu.memory_space<vmem>>, %arg7: memref<1x1x12x32xf32, #tpu.memory_space<vmem>>) attributes {dimension_semantics = [#tpu.dimension_semantics<parallel>, #tpu.dimension_semantics<parallel>], iteration_bounds = array<i64: 2, 12>, scalar_prefetch = 0 : i64, scratch_operands = 0 : i64, tpu.core_type = #tpu.core_type<tc>, window_params = [{transform_indices = @transform_0, window_bounds = array<i64: 4, 50, 13, 1>}, {pipeline_mode = #tpu.pipeline_mode<synchronous>, transform_indices = @transform_1, window_bounds = array<i64: 9, 1, 32>}, {pipeline_mode = #tpu.pipeline_mode<synchronous>, transform_indices = @transform_2, window_bounds = array<i64: 1, 32>}, {pipeline_mode = #tpu.pipeline_mode<synchronous>, transform_indices = @transform_3, window_bounds = array<i64: 1, 32>}, {pipeline_mode = #tpu.pipeline_mode<synchronous>, transform_indices = @transform_4, window_bounds = array<i64: 1, 32>}, {transform_indices = @transform_5, window_bounds = array<i64: 1, 1, 12, 32>}]} {
    %c4_i32 = arith.constant 4 : i32
    %0 = arith.muli %c4_i32, %arg1 : i32
    %1 = tpu.assume_multiple %0, 4 : i32
    %c0 = arith.constant 0 : index
    %2 = arith.index_cast %1 : i32 to index
    %c0_0 = arith.constant 0 : index
    %c0_1 = arith.constant 0 : index
    %3 = vector.load %arg2[%c0, %2, %c0_0, %c0_1] : memref<4x50x13x1xf32, #tpu.memory_space<vmem>>, vector<1x5x13x1xf32>
    %4 = vector.shape_cast %3 : vector<1x5x13x1xf32> to vector<5x13x1xf32>
    %c1 = arith.constant 1 : index
    %5 = arith.index_cast %1 : i32 to index
    %c0_2 = arith.constant 0 : index
    %c0_3 = arith.constant 0 : index
    %6 = vector.load %arg2[%c1, %5, %c0_2, %c0_3] : memref<4x50x13x1xf32, #tpu.memory_space<vmem>>, vector<1x5x13x1xf32>
    %7 = vector.shape_cast %6 : vector<1x5x13x1xf32> to vector<5x13x1xf32>
    %c2 = arith.constant 2 : index
    %8 = arith.index_cast %1 : i32 to index
    %c0_4 = arith.constant 0 : index
    %c0_5 = arith.constant 0 : index
    %9 = vector.load %arg2[%c2, %8, %c0_4, %c0_5] : memref<4x50x13x1xf32, #tpu.memory_space<vmem>>, vector<1x5x13x1xf32>
    %10 = vector.shape_cast %9 : vector<1x5x13x1xf32> to vector<5x13x1xf32>
    %c3 = arith.constant 3 : index
    %11 = arith.index_cast %1 : i32 to index
    %c0_6 = arith.constant 0 : index
    %c0_7 = arith.constant 0 : index
    %12 = vector.load %arg2[%c3, %11, %c0_6, %c0_7] : memref<4x50x13x1xf32, #tpu.memory_space<vmem>>, vector<1x5x13x1xf32>
    %13 = vector.shape_cast %12 : vector<1x5x13x1xf32> to vector<5x13x1xf32>
    %c0_8 = arith.constant 0 : index
    %c0_9 = arith.constant 0 : index
    %c0_10 = arith.constant 0 : index
    %14 = vector.load %arg3[%c0_8, %c0_9, %c0_10] : memref<9x1x32xf32, #tpu.memory_space<vmem>>, vector<1x1x32xf32>
    %15 = vector.shape_cast %14 : vector<1x1x32xf32> to vector<1x32xf32>
    %c1_11 = arith.constant 1 : index
    %c0_12 = arith.constant 0 : index
    %c0_13 = arith.constant 0 : index
    %16 = vector.load %arg3[%c1_11, %c0_12, %c0_13] : memref<9x1x32xf32, #tpu.memory_space<vmem>>, vector<1x1x32xf32>
    %17 = vector.shape_cast %16 : vector<1x1x32xf32> to vector<1x32xf32>
    %c2_14 = arith.constant 2 : index
    %c0_15 = arith.constant 0 : index
    %c0_16 = arith.constant 0 : index
    %18 = vector.load %arg3[%c2_14, %c0_15, %c0_16] : memref<9x1x32xf32, #tpu.memory_space<vmem>>, vector<1x1x32xf32>
    %19 = vector.shape_cast %18 : vector<1x1x32xf32> to vector<1x32xf32>
    %c3_17 = arith.constant 3 : index
    %c0_18 = arith.constant 0 : index
    %c0_19 = arith.constant 0 : index
    %20 = vector.load %arg3[%c3_17, %c0_18, %c0_19] : memref<9x1x32xf32, #tpu.memory_space<vmem>>, vector<1x1x32xf32>
    %21 = vector.shape_cast %20 : vector<1x1x32xf32> to vector<1x32xf32>
    %c4 = arith.constant 4 : index
    %c0_20 = arith.constant 0 : index
    %c0_21 = arith.constant 0 : index
    %22 = vector.load %arg3[%c4, %c0_20, %c0_21] : memref<9x1x32xf32, #tpu.memory_space<vmem>>, vector<1x1x32xf32>
    %23 = vector.shape_cast %22 : vector<1x1x32xf32> to vector<1x32xf32>
    %c5 = arith.constant 5 : index
    %c0_22 = arith.constant 0 : index
    %c0_23 = arith.constant 0 : index
    %24 = vector.load %arg3[%c5, %c0_22, %c0_23] : memref<9x1x32xf32, #tpu.memory_space<vmem>>, vector<1x1x32xf32>
    %25 = vector.shape_cast %24 : vector<1x1x32xf32> to vector<1x32xf32>
    %c6 = arith.constant 6 : index
    %c0_24 = arith.constant 0 : index
    %c0_25 = arith.constant 0 : index
    %26 = vector.load %arg3[%c6, %c0_24, %c0_25] : memref<9x1x32xf32, #tpu.memory_space<vmem>>, vector<1x1x32xf32>
    %27 = vector.shape_cast %26 : vector<1x1x32xf32> to vector<1x32xf32>
    %c7 = arith.constant 7 : index
    %c0_26 = arith.constant 0 : index
    %c0_27 = arith.constant 0 : index
    %28 = vector.load %arg3[%c7, %c0_26, %c0_27] : memref<9x1x32xf32, #tpu.memory_space<vmem>>, vector<1x1x32xf32>
    %29 = vector.shape_cast %28 : vector<1x1x32xf32> to vector<1x32xf32>
    %c8 = arith.constant 8 : index
    %c0_28 = arith.constant 0 : index
    %c0_29 = arith.constant 0 : index
    %30 = vector.load %arg3[%c8, %c0_28, %c0_29] : memref<9x1x32xf32, #tpu.memory_space<vmem>>, vector<1x1x32xf32>
    %31 = vector.shape_cast %30 : vector<1x1x32xf32> to vector<1x32xf32>
    %c0_30 = arith.constant 0 : index
    %c0_31 = arith.constant 0 : index
    %32 = vector.load %arg4[%c0_30, %c0_31] : memref<1x32xf32, #tpu.memory_space<vmem>>, vector<1x32xf32>
    %c0_32 = arith.constant 0 : index
    %c0_33 = arith.constant 0 : index
    %33 = vector.load %arg5[%c0_32, %c0_33] : memref<1x32xf32, #tpu.memory_space<vmem>>, vector<1x32xf32>
    %c0_34 = arith.constant 0 : index
    %c0_35 = arith.constant 0 : index
    %34 = vector.load %arg6[%c0_34, %c0_35] : memref<1x32xf32, #tpu.memory_space<vmem>>, vector<1x32xf32>
    %cst = arith.constant 0.000000e+00 : f32
    %35 = vector.broadcast %cst : f32 to vector<12x32xf32>
    %36 = vector.extract_strided_slice %4 {offsets = [0, 0, 0], sizes = [1, 12, 1], strides = [1, 1, 1]} : vector<5x13x1xf32> to vector<1x12x1xf32>
    %37 = vector.shape_cast %36 : vector<1x12x1xf32> to vector<12x1xf32>
    %38 = vector.broadcast %37 : vector<12x1xf32> to vector<12x32xf32>
    %39 = vector.broadcast %15 : vector<1x32xf32> to vector<12x32xf32>
    %40 = arith.mulf %38, %39 : vector<12x32xf32>
    %41 = arith.addf %35, %40 : vector<12x32xf32>
    %42 = vector.extract_strided_slice %7 {offsets = [0, 0, 0], sizes = [1, 12, 1], strides = [1, 1, 1]} : vector<5x13x1xf32> to vector<1x12x1xf32>
    %43 = vector.shape_cast %42 : vector<1x12x1xf32> to vector<12x1xf32>
    %44 = vector.broadcast %43 : vector<12x1xf32> to vector<12x32xf32>
    %45 = vector.broadcast %17 : vector<1x32xf32> to vector<12x32xf32>
    %46 = arith.mulf %44, %45 : vector<12x32xf32>
    %47 = arith.addf %41, %46 : vector<12x32xf32>
    %48 = vector.extract_strided_slice %10 {offsets = [0, 0, 0], sizes = [1, 12, 1], strides = [1, 1, 1]} : vector<5x13x1xf32> to vector<1x12x1xf32>
    %49 = vector.shape_cast %48 : vector<1x12x1xf32> to vector<12x1xf32>
    %50 = vector.broadcast %49 : vector<12x1xf32> to vector<12x32xf32>
    %51 = vector.broadcast %19 : vector<1x32xf32> to vector<12x32xf32>
    %52 = arith.mulf %50, %51 : vector<12x32xf32>
    %53 = arith.addf %47, %52 : vector<12x32xf32>
    %54 = vector.extract_strided_slice %4 {offsets = [1, 0, 0], sizes = [1, 12, 1], strides = [1, 1, 1]} : vector<5x13x1xf32> to vector<1x12x1xf32>
    %55 = vector.shape_cast %54 : vector<1x12x1xf32> to vector<12x1xf32>
    %56 = vector.broadcast %55 : vector<12x1xf32> to vector<12x32xf32>
    %57 = vector.broadcast %21 : vector<1x32xf32> to vector<12x32xf32>
    %58 = arith.mulf %56, %57 : vector<12x32xf32>
    %59 = arith.addf %53, %58 : vector<12x32xf32>
    %60 = vector.extract_strided_slice %7 {offsets = [1, 0, 0], sizes = [1, 12, 1], strides = [1, 1, 1]} : vector<5x13x1xf32> to vector<1x12x1xf32>
    %61 = vector.shape_cast %60 : vector<1x12x1xf32> to vector<12x1xf32>
    %62 = vector.broadcast %61 : vector<12x1xf32> to vector<12x32xf32>
    %63 = vector.broadcast %23 : vector<1x32xf32> to vector<12x32xf32>
    %64 = arith.mulf %62, %63 : vector<12x32xf32>
    %65 = arith.addf %59, %64 : vector<12x32xf32>
    %66 = vector.extract_strided_slice %10 {offsets = [1, 0, 0], sizes = [1, 12, 1], strides = [1, 1, 1]} : vector<5x13x1xf32> to vector<1x12x1xf32>
    %67 = vector.shape_cast %66 : vector<1x12x1xf32> to vector<12x1xf32>
    %68 = vector.broadcast %67 : vector<12x1xf32> to vector<12x32xf32>
    %69 = vector.broadcast %25 : vector<1x32xf32> to vector<12x32xf32>
    %70 = arith.mulf %68, %69 : vector<12x32xf32>
    %71 = arith.addf %65, %70 : vector<12x32xf32>
    %72 = vector.extract_strided_slice %4 {offsets = [2, 0, 0], sizes = [1, 12, 1], strides = [1, 1, 1]} : vector<5x13x1xf32> to vector<1x12x1xf32>
    %73 = vector.shape_cast %72 : vector<1x12x1xf32> to vector<12x1xf32>
    %74 = vector.broadcast %73 : vector<12x1xf32> to vector<12x32xf32>
    %75 = vector.broadcast %27 : vector<1x32xf32> to vector<12x32xf32>
    %76 = arith.mulf %74, %75 : vector<12x32xf32>
    %77 = arith.addf %71, %76 : vector<12x32xf32>
    %78 = vector.extract_strided_slice %7 {offsets = [2, 0, 0], sizes = [1, 12, 1], strides = [1, 1, 1]} : vector<5x13x1xf32> to vector<1x12x1xf32>
    %79 = vector.shape_cast %78 : vector<1x12x1xf32> to vector<12x1xf32>
    %80 = vector.broadcast %79 : vector<12x1xf32> to vector<12x32xf32>
    %81 = vector.broadcast %29 : vector<1x32xf32> to vector<12x32xf32>
    %82 = arith.mulf %80, %81 : vector<12x32xf32>
    %83 = arith.addf %77, %82 : vector<12x32xf32>
    %84 = vector.extract_strided_slice %10 {offsets = [2, 0, 0], sizes = [1, 12, 1], strides = [1, 1, 1]} : vector<5x13x1xf32> to vector<1x12x1xf32>
    %85 = vector.shape_cast %84 : vector<1x12x1xf32> to vector<12x1xf32>
    %86 = vector.broadcast %85 : vector<12x1xf32> to vector<12x32xf32>
    %87 = vector.broadcast %31 : vector<1x32xf32> to vector<12x32xf32>
    %88 = arith.mulf %86, %87 : vector<12x32xf32>
    %89 = arith.addf %83, %88 : vector<12x32xf32>
    %90 = vector.broadcast %32 : vector<1x32xf32> to vector<12x32xf32>
    %91 = arith.addf %89, %90 : vector<12x32xf32>
    %cst_36 = arith.constant 0.000000e+00 : f32
    %92 = vector.broadcast %cst_36 : f32 to vector<12x32xf32>
    %93 = arith.maximumf %91, %92 : vector<12x32xf32>
    %94 = vector.broadcast %33 : vector<1x32xf32> to vector<12x32xf32>
    %95 = arith.mulf %93, %94 : vector<12x32xf32>
    %96 = vector.broadcast %34 : vector<1x32xf32> to vector<12x32xf32>
    %97 = arith.addf %95, %96 : vector<12x32xf32>
    %cst_37 = arith.constant 0.000000e+00 : f32
    %98 = vector.broadcast %cst_37 : f32 to vector<12x32xf32>
    %99 = vector.extract_strided_slice %10 {offsets = [0, 0, 0], sizes = [1, 12, 1], strides = [1, 1, 1]} : vector<5x13x1xf32> to vector<1x12x1xf32>
    %100 = vector.shape_cast %99 : vector<1x12x1xf32> to vector<12x1xf32>
    %101 = vector.broadcast %100 : vector<12x1xf32> to vector<12x32xf32>
    %102 = vector.broadcast %15 : vector<1x32xf32> to vector<12x32xf32>
    %103 = arith.mulf %101, %102 : vector<12x32xf32>
    %104 = arith.addf %98, %103 : vector<12x32xf32>
    %105 = vector.extract_strided_slice %13 {offsets = [0, 0, 0], sizes = [1, 12, 1], strides = [1, 1, 1]} : vector<5x13x1xf32> to vector<1x12x1xf32>
    %106 = vector.shape_cast %105 : vector<1x12x1xf32> to vector<12x1xf32>
    %107 = vector.broadcast %106 : vector<12x1xf32> to vector<12x32xf32>
    %108 = vector.broadcast %17 : vector<1x32xf32> to vector<12x32xf32>
    %109 = arith.mulf %107, %108 : vector<12x32xf32>
    %110 = arith.addf %104, %109 : vector<12x32xf32>
    %111 = vector.extract_strided_slice %4 {offsets = [0, 1, 0], sizes = [1, 12, 1], strides = [1, 1, 1]} : vector<5x13x1xf32> to vector<1x12x1xf32>
    %112 = vector.shape_cast %111 : vector<1x12x1xf32> to vector<12x1xf32>
    %113 = vector.broadcast %112 : vector<12x1xf32> to vector<12x32xf32>
    %114 = vector.broadcast %19 : vector<1x32xf32> to vector<12x32xf32>
    %115 = arith.mulf %113, %114 : vector<12x32xf32>
    %116 = arith.addf %110, %115 : vector<12x32xf32>
    %117 = vector.extract_strided_slice %10 {offsets = [1, 0, 0], sizes = [1, 12, 1], strides = [1, 1, 1]} : vector<5x13x1xf32> to vector<1x12x1xf32>
    %118 = vector.shape_cast %117 : vector<1x12x1xf32> to vector<12x1xf32>
    %119 = vector.broadcast %118 : vector<12x1xf32> to vector<12x32xf32>
    %120 = vector.broadcast %21 : vector<1x32xf32> to vector<12x32xf32>
    %121 = arith.mulf %119, %120 : vector<12x32xf32>
    %122 = arith.addf %116, %121 : vector<12x32xf32>
    %123 = vector.extract_strided_slice %13 {offsets = [1, 0, 0], sizes = [1, 12, 1], strides = [1, 1, 1]} : vector<5x13x1xf32> to vector<1x12x1xf32>
    %124 = vector.shape_cast %123 : vector<1x12x1xf32> to vector<12x1xf32>
    %125 = vector.broadcast %124 : vector<12x1xf32> to vector<12x32xf32>
    %126 = vector.broadcast %23 : vector<1x32xf32> to vector<12x32xf32>
    %127 = arith.mulf %125, %126 : vector<12x32xf32>
    %128 = arith.addf %122, %127 : vector<12x32xf32>
    %129 = vector.extract_strided_slice %4 {offsets = [1, 1, 0], sizes = [1, 12, 1], strides = [1, 1, 1]} : vector<5x13x1xf32> to vector<1x12x1xf32>
    %130 = vector.shape_cast %129 : vector<1x12x1xf32> to vector<12x1xf32>
    %131 = vector.broadcast %130 : vector<12x1xf32> to vector<12x32xf32>
    %132 = vector.broadcast %25 : vector<1x32xf32> to vector<12x32xf32>
    %133 = arith.mulf %131, %132 : vector<12x32xf32>
    %134 = arith.addf %128, %133 : vector<12x32xf32>
    %135 = vector.extract_strided_slice %10 {offsets = [2, 0, 0], sizes = [1, 12, 1], strides = [1, 1, 1]} : vector<5x13x1xf32> to vector<1x12x1xf32>
    %136 = vector.shape_cast %135 : vector<1x12x1xf32> to vector<12x1xf32>
    %137 = vector.broadcast %136 : vector<12x1xf32> to vector<12x32xf32>
    %138 = vector.broadcast %27 : vector<1x32xf32> to vector<12x32xf32>
    %139 = arith.mulf %137, %138 : vector<12x32xf32>
    %140 = arith.addf %134, %139 : vector<12x32xf32>
    %141 = vector.extract_strided_slice %13 {offsets = [2, 0, 0], sizes = [1, 12, 1], strides = [1, 1, 1]} : vector<5x13x1xf32> to vector<1x12x1xf32>
    %142 = vector.shape_cast %141 : vector<1x12x1xf32> to vector<12x1xf32>
    %143 = vector.broadcast %142 : vector<12x1xf32> to vector<12x32xf32>
    %144 = vector.broadcast %29 : vector<1x32xf32> to vector<12x32xf32>
    %145 = arith.mulf %143, %144 : vector<12x32xf32>
    %146 = arith.addf %140, %145 : vector<12x32xf32>
    %147 = vector.extract_strided_slice %4 {offsets = [2, 1, 0], sizes = [1, 12, 1], strides = [1, 1, 1]} : vector<5x13x1xf32> to vector<1x12x1xf32>
    %148 = vector.shape_cast %147 : vector<1x12x1xf32> to vector<12x1xf32>
    %149 = vector.broadcast %148 : vector<12x1xf32> to vector<12x32xf32>
    %150 = vector.broadcast %31 : vector<1x32xf32> to vector<12x32xf32>
    %151 = arith.mulf %149, %150 : vector<12x32xf32>
    %152 = arith.addf %146, %151 : vector<12x32xf32>
    %153 = vector.broadcast %32 : vector<1x32xf32> to vector<12x32xf32>
    %154 = arith.addf %152, %153 : vector<12x32xf32>
    %cst_38 = arith.constant 0.000000e+00 : f32
    %155 = vector.broadcast %cst_38 : f32 to vector<12x32xf32>
    %156 = arith.maximumf %154, %155 : vector<12x32xf32>
    %157 = vector.broadcast %33 : vector<1x32xf32> to vector<12x32xf32>
    %158 = arith.mulf %156, %157 : vector<12x32xf32>
    %159 = vector.broadcast %34 : vector<1x32xf32> to vector<12x32xf32>
    %160 = arith.addf %158, %159 : vector<12x32xf32>
    %161 = arith.maximumf %97, %160 : vector<12x32xf32>
    %cst_39 = arith.constant 0.000000e+00 : f32
    %162 = vector.broadcast %cst_39 : f32 to vector<12x32xf32>
    %163 = vector.extract_strided_slice %4 {offsets = [2, 0, 0], sizes = [1, 12, 1], strides = [1, 1, 1]} : vector<5x13x1xf32> to vector<1x12x1xf32>
    %164 = vector.shape_cast %163 : vector<1x12x1xf32> to vector<12x1xf32>
    %165 = vector.broadcast %164 : vector<12x1xf32> to vector<12x32xf32>
    %166 = vector.broadcast %15 : vector<1x32xf32> to vector<12x32xf32>
    %167 = arith.mulf %165, %166 : vector<12x32xf32>
    %168 = arith.addf %162, %167 : vector<12x32xf32>
    %169 = vector.extract_strided_slice %7 {offsets = [2, 0, 0], sizes = [1, 12, 1], strides = [1, 1, 1]} : vector<5x13x1xf32> to vector<1x12x1xf32>
    %170 = vector.shape_cast %169 : vector<1x12x1xf32> to vector<12x1xf32>
    %171 = vector.broadcast %170 : vector<12x1xf32> to vector<12x32xf32>
    %172 = vector.broadcast %17 : vector<1x32xf32> to vector<12x32xf32>
    %173 = arith.mulf %171, %172 : vector<12x32xf32>
    %174 = arith.addf %168, %173 : vector<12x32xf32>
    %175 = vector.extract_strided_slice %10 {offsets = [2, 0, 0], sizes = [1, 12, 1], strides = [1, 1, 1]} : vector<5x13x1xf32> to vector<1x12x1xf32>
    %176 = vector.shape_cast %175 : vector<1x12x1xf32> to vector<12x1xf32>
    %177 = vector.broadcast %176 : vector<12x1xf32> to vector<12x32xf32>
    %178 = vector.broadcast %19 : vector<1x32xf32> to vector<12x32xf32>
    %179 = arith.mulf %177, %178 : vector<12x32xf32>
    %180 = arith.addf %174, %179 : vector<12x32xf32>
    %181 = vector.extract_strided_slice %4 {offsets = [3, 0, 0], sizes = [1, 12, 1], strides = [1, 1, 1]} : vector<5x13x1xf32> to vector<1x12x1xf32>
    %182 = vector.shape_cast %181 : vector<1x12x1xf32> to vector<12x1xf32>
    %183 = vector.broadcast %182 : vector<12x1xf32> to vector<12x32xf32>
    %184 = vector.broadcast %21 : vector<1x32xf32> to vector<12x32xf32>
    %185 = arith.mulf %183, %184 : vector<12x32xf32>
    %186 = arith.addf %180, %185 : vector<12x32xf32>
    %187 = vector.extract_strided_slice %7 {offsets = [3, 0, 0], sizes = [1, 12, 1], strides = [1, 1, 1]} : vector<5x13x1xf32> to vector<1x12x1xf32>
    %188 = vector.shape_cast %187 : vector<1x12x1xf32> to vector<12x1xf32>
    %189 = vector.broadcast %188 : vector<12x1xf32> to vector<12x32xf32>
    %190 = vector.broadcast %23 : vector<1x32xf32> to vector<12x32xf32>
    %191 = arith.mulf %189, %190 : vector<12x32xf32>
    %192 = arith.addf %186, %191 : vector<12x32xf32>
    %193 = vector.extract_strided_slice %10 {offsets = [3, 0, 0], sizes = [1, 12, 1], strides = [1, 1, 1]} : vector<5x13x1xf32> to vector<1x12x1xf32>
    %194 = vector.shape_cast %193 : vector<1x12x1xf32> to vector<12x1xf32>
    %195 = vector.broadcast %194 : vector<12x1xf32> to vector<12x32xf32>
    %196 = vector.broadcast %25 : vector<1x32xf32> to vector<12x32xf32>
    %197 = arith.mulf %195, %196 : vector<12x32xf32>
    %198 = arith.addf %192, %197 : vector<12x32xf32>
    %199 = vector.extract_strided_slice %4 {offsets = [4, 0, 0], sizes = [1, 12, 1], strides = [1, 1, 1]} : vector<5x13x1xf32> to vector<1x12x1xf32>
    %200 = vector.shape_cast %199 : vector<1x12x1xf32> to vector<12x1xf32>
    %201 = vector.broadcast %200 : vector<12x1xf32> to vector<12x32xf32>
    %202 = vector.broadcast %27 : vector<1x32xf32> to vector<12x32xf32>
    %203 = arith.mulf %201, %202 : vector<12x32xf32>
    %204 = arith.addf %198, %203 : vector<12x32xf32>
    %205 = vector.extract_strided_slice %7 {offsets = [4, 0, 0], sizes = [1, 12, 1], strides = [1, 1, 1]} : vector<5x13x1xf32> to vector<1x12x1xf32>
    %206 = vector.shape_cast %205 : vector<1x12x1xf32> to vector<12x1xf32>
    %207 = vector.broadcast %206 : vector<12x1xf32> to vector<12x32xf32>
    %208 = vector.broadcast %29 : vector<1x32xf32> to vector<12x32xf32>
    %209 = arith.mulf %207, %208 : vector<12x32xf32>
    %210 = arith.addf %204, %209 : vector<12x32xf32>
    %211 = vector.extract_strided_slice %10 {offsets = [4, 0, 0], sizes = [1, 12, 1], strides = [1, 1, 1]} : vector<5x13x1xf32> to vector<1x12x1xf32>
    %212 = vector.shape_cast %211 : vector<1x12x1xf32> to vector<12x1xf32>
    %213 = vector.broadcast %212 : vector<12x1xf32> to vector<12x32xf32>
    %214 = vector.broadcast %31 : vector<1x32xf32> to vector<12x32xf32>
    %215 = arith.mulf %213, %214 : vector<12x32xf32>
    %216 = arith.addf %210, %215 : vector<12x32xf32>
    %217 = vector.broadcast %32 : vector<1x32xf32> to vector<12x32xf32>
    %218 = arith.addf %216, %217 : vector<12x32xf32>
    %cst_40 = arith.constant 0.000000e+00 : f32
    %219 = vector.broadcast %cst_40 : f32 to vector<12x32xf32>
    %220 = arith.maximumf %218, %219 : vector<12x32xf32>
    %221 = vector.broadcast %33 : vector<1x32xf32> to vector<12x32xf32>
    %222 = arith.mulf %220, %221 : vector<12x32xf32>
    %223 = vector.broadcast %34 : vector<1x32xf32> to vector<12x32xf32>
    %224 = arith.addf %222, %223 : vector<12x32xf32>
    %225 = arith.maximumf %161, %224 : vector<12x32xf32>
    %cst_41 = arith.constant 0.000000e+00 : f32
    %226 = vector.broadcast %cst_41 : f32 to vector<12x32xf32>
    %227 = vector.extract_strided_slice %10 {offsets = [2, 0, 0], sizes = [1, 12, 1], strides = [1, 1, 1]} : vector<5x13x1xf32> to vector<1x12x1xf32>
    %228 = vector.shape_cast %227 : vector<1x12x1xf32> to vector<12x1xf32>
    %229 = vector.broadcast %228 : vector<12x1xf32> to vector<12x32xf32>
    %230 = vector.broadcast %15 : vector<1x32xf32> to vector<12x32xf32>
    %231 = arith.mulf %229, %230 : vector<12x32xf32>
    %232 = arith.addf %226, %231 : vector<12x32xf32>
    %233 = vector.extract_strided_slice %13 {offsets = [2, 0, 0], sizes = [1, 12, 1], strides = [1, 1, 1]} : vector<5x13x1xf32> to vector<1x12x1xf32>
    %234 = vector.shape_cast %233 : vector<1x12x1xf32> to vector<12x1xf32>
    %235 = vector.broadcast %234 : vector<12x1xf32> to vector<12x32xf32>
    %236 = vector.broadcast %17 : vector<1x32xf32> to vector<12x32xf32>
    %237 = arith.mulf %235, %236 : vector<12x32xf32>
    %238 = arith.addf %232, %237 : vector<12x32xf32>
    %239 = vector.extract_strided_slice %4 {offsets = [2, 1, 0], sizes = [1, 12, 1], strides = [1, 1, 1]} : vector<5x13x1xf32> to vector<1x12x1xf32>
    %240 = vector.shape_cast %239 : vector<1x12x1xf32> to vector<12x1xf32>
    %241 = vector.broadcast %240 : vector<12x1xf32> to vector<12x32xf32>
    %242 = vector.broadcast %19 : vector<1x32xf32> to vector<12x32xf32>
    %243 = arith.mulf %241, %242 : vector<12x32xf32>
    %244 = arith.addf %238, %243 : vector<12x32xf32>
    %245 = vector.extract_strided_slice %10 {offsets = [3, 0, 0], sizes = [1, 12, 1], strides = [1, 1, 1]} : vector<5x13x1xf32> to vector<1x12x1xf32>
    %246 = vector.shape_cast %245 : vector<1x12x1xf32> to vector<12x1xf32>
    %247 = vector.broadcast %246 : vector<12x1xf32> to vector<12x32xf32>
    %248 = vector.broadcast %21 : vector<1x32xf32> to vector<12x32xf32>
    %249 = arith.mulf %247, %248 : vector<12x32xf32>
    %250 = arith.addf %244, %249 : vector<12x32xf32>
    %251 = vector.extract_strided_slice %13 {offsets = [3, 0, 0], sizes = [1, 12, 1], strides = [1, 1, 1]} : vector<5x13x1xf32> to vector<1x12x1xf32>
    %252 = vector.shape_cast %251 : vector<1x12x1xf32> to vector<12x1xf32>
    %253 = vector.broadcast %252 : vector<12x1xf32> to vector<12x32xf32>
    %254 = vector.broadcast %23 : vector<1x32xf32> to vector<12x32xf32>
    %255 = arith.mulf %253, %254 : vector<12x32xf32>
    %256 = arith.addf %250, %255 : vector<12x32xf32>
    %257 = vector.extract_strided_slice %4 {offsets = [3, 1, 0], sizes = [1, 12, 1], strides = [1, 1, 1]} : vector<5x13x1xf32> to vector<1x12x1xf32>
    %258 = vector.shape_cast %257 : vector<1x12x1xf32> to vector<12x1xf32>
    %259 = vector.broadcast %258 : vector<12x1xf32> to vector<12x32xf32>
    %260 = vector.broadcast %25 : vector<1x32xf32> to vector<12x32xf32>
    %261 = arith.mulf %259, %260 : vector<12x32xf32>
    %262 = arith.addf %256, %261 : vector<12x32xf32>
    %263 = vector.extract_strided_slice %10 {offsets = [4, 0, 0], sizes = [1, 12, 1], strides = [1, 1, 1]} : vector<5x13x1xf32> to vector<1x12x1xf32>
    %264 = vector.shape_cast %263 : vector<1x12x1xf32> to vector<12x1xf32>
    %265 = vector.broadcast %264 : vector<12x1xf32> to vector<12x32xf32>
    %266 = vector.broadcast %27 : vector<1x32xf32> to vector<12x32xf32>
    %267 = arith.mulf %265, %266 : vector<12x32xf32>
    %268 = arith.addf %262, %267 : vector<12x32xf32>
    %269 = vector.extract_strided_slice %13 {offsets = [4, 0, 0], sizes = [1, 12, 1], strides = [1, 1, 1]} : vector<5x13x1xf32> to vector<1x12x1xf32>
    %270 = vector.shape_cast %269 : vector<1x12x1xf32> to vector<12x1xf32>
    %271 = vector.broadcast %270 : vector<12x1xf32> to vector<12x32xf32>
    %272 = vector.broadcast %29 : vector<1x32xf32> to vector<12x32xf32>
    %273 = arith.mulf %271, %272 : vector<12x32xf32>
    %274 = arith.addf %268, %273 : vector<12x32xf32>
    %275 = vector.extract_strided_slice %4 {offsets = [4, 1, 0], sizes = [1, 12, 1], strides = [1, 1, 1]} : vector<5x13x1xf32> to vector<1x12x1xf32>
    %276 = vector.shape_cast %275 : vector<1x12x1xf32> to vector<12x1xf32>
    %277 = vector.broadcast %276 : vector<12x1xf32> to vector<12x32xf32>
    %278 = vector.broadcast %31 : vector<1x32xf32> to vector<12x32xf32>
    %279 = arith.mulf %277, %278 : vector<12x32xf32>
    %280 = arith.addf %274, %279 : vector<12x32xf32>
    %281 = vector.broadcast %32 : vector<1x32xf32> to vector<12x32xf32>
    %282 = arith.addf %280, %281 : vector<12x32xf32>
    %cst_42 = arith.constant 0.000000e+00 : f32
    %283 = vector.broadcast %cst_42 : f32 to vector<12x32xf32>
    %284 = arith.maximumf %282, %283 : vector<12x32xf32>
    %285 = vector.broadcast %33 : vector<1x32xf32> to vector<12x32xf32>
    %286 = arith.mulf %284, %285 : vector<12x32xf32>
    %287 = vector.broadcast %34 : vector<1x32xf32> to vector<12x32xf32>
    %288 = arith.addf %286, %287 : vector<12x32xf32>
    %289 = arith.maximumf %225, %288 : vector<12x32xf32>
    %c0_43 = arith.constant 0 : index
    %c0_44 = arith.constant 0 : index
    %c0_45 = arith.constant 0 : index
    %c0_46 = arith.constant 0 : index
    %290 = vector.load %arg7[%c0_43, %c0_44, %c0_45, %c0_46] : memref<1x1x12x32xf32, #tpu.memory_space<vmem>>, vector<1x1x12x32xf32>
    %291 = vector.shape_cast %290 : vector<1x1x12x32xf32> to vector<12x32xf32>
    %292 = vector.shape_cast %289 : vector<12x32xf32> to vector<1x1x12x32xf32>
    tpu.vector_store %arg7[%c0_43, %c0_44, %c0_45, %c0_46], %292 {strides = array<i32>} : memref<1x1x12x32xf32, #tpu.memory_space<vmem>>, vector<1x1x12x32xf32>,
    return
  }
  func.func @transform_0(%arg0: i32, %arg1: i32) -> (i32, i32, i32, i32) {
    %c0_i32 = arith.constant 0 : i32
    %c0_i32_0 = arith.constant 0 : i32
    %c0_i32_1 = arith.constant 0 : i32
    %c0_i32_2 = arith.constant 0 : i32
    return %arg0, %c0_i32, %c0_i32_0, %c0_i32_1 : i32, i32, i32, i32
  }
  func.func @transform_1(%arg0: i32, %arg1: i32) -> (i32, i32, i32) {
    %c0_i32 = arith.constant 0 : i32
    %c0_i32_0 = arith.constant 0 : i32
    %c0_i32_1 = arith.constant 0 : i32
    %c0_i32_2 = arith.constant 0 : i32
    return %c0_i32, %c0_i32_0, %c0_i32_1 : i32, i32, i32
  }
  func.func @transform_2(%arg0: i32, %arg1: i32) -> (i32, i32) {
    %c0_i32 = arith.constant 0 : i32
    %c0_i32_0 = arith.constant 0 : i32
    %c0_i32_1 = arith.constant 0 : i32
    return %c0_i32, %c0_i32_0 : i32, i32
  }
  func.func @transform_3(%arg0: i32, %arg1: i32) -> (i32, i32) {
    %c0_i32 = arith.constant 0 : i32
    %c0_i32_0 = arith.constant 0 : i32
    %c0_i32_1 = arith.constant 0 : i32
    return %c0_i32, %c0_i32_0 : i32, i32
  }
  func.func @transform_4(%arg0: i32, %arg1: i32) -> (i32, i32) {
    %c0_i32 = arith.constant 0 : i32
    %c0_i32_0 = arith.constant 0 : i32
    %c0_i32_1 = arith.constant 0 : i32
    return %c0_i32, %c0_i32_0 : i32, i32
  }
  func.func @transform_5(%arg0: i32, %arg1: i32) -> (i32, i32, i32, i32) {
    %c0_i32 = arith.constant 0 : i32
    %c0_i32_0 = arith.constant 0 : i32
    %c0_i32_1 = arith.constant 0 : i32
    return %arg0, %arg1, %c0_i32, %c0_i32_0 : i32, i32, i32, i32
  }
}

module attributes {stable_mosaic.version = 11 : i64} {
  func.func @kernel(%arg0: i32, %arg1: i32, %arg2: memref<4x14x4x32xbf16, #tpu.memory_space<vmem>>, %arg3: memref<9x32x64xbf16, #tpu.memory_space<vmem>>, %arg4: memref<1x64xf32, #tpu.memory_space<vmem>>, %arg5: memref<1x64xf32, #tpu.memory_space<vmem>>, %arg6: memref<1x64xf32, #tpu.memory_space<vmem>>, %arg7: memref<1x1x3x64xf32, #tpu.memory_space<vmem>>) attributes {dimension_semantics = [#tpu.dimension_semantics<parallel>, #tpu.dimension_semantics<parallel>], iteration_bounds = array<i64: 2, 3>, scalar_prefetch = 0 : i64, scratch_operands = 0 : i64, tpu.core_type = #tpu.core_type<tc>, window_params = [{transform_indices = @transform_0, window_bounds = array<i64: 4, 14, 4, 32>}, {pipeline_mode = #tpu.pipeline_mode<synchronous>, transform_indices = @transform_1, window_bounds = array<i64: 9, 32, 64>}, {pipeline_mode = #tpu.pipeline_mode<synchronous>, transform_indices = @transform_2, window_bounds = array<i64: 1, 64>}, {pipeline_mode = #tpu.pipeline_mode<synchronous>, transform_indices = @transform_3, window_bounds = array<i64: 1, 64>}, {pipeline_mode = #tpu.pipeline_mode<synchronous>, transform_indices = @transform_4, window_bounds = array<i64: 1, 64>}, {transform_indices = @transform_5, window_bounds = array<i64: 1, 1, 3, 64>}]} {
    %c4_i32 = arith.constant 4 : i32
    %0 = arith.muli %c4_i32, %arg1 : i32
    %1 = tpu.assume_multiple %0, 4 : i32
    %c0 = arith.constant 0 : index
    %2 = arith.index_cast %1 : i32 to index
    %c0_0 = arith.constant 0 : index
    %c0_1 = arith.constant 0 : index
    %3 = vector.load %arg2[%c0, %2, %c0_0, %c0_1] : memref<4x14x4x32xbf16, #tpu.memory_space<vmem>>, vector<1x5x4x32xbf16>
    %4 = vector.shape_cast %3 : vector<1x5x4x32xbf16> to vector<5x4x32xbf16>
    %c1 = arith.constant 1 : index
    %5 = arith.index_cast %1 : i32 to index
    %c0_2 = arith.constant 0 : index
    %c0_3 = arith.constant 0 : index
    %6 = vector.load %arg2[%c1, %5, %c0_2, %c0_3] : memref<4x14x4x32xbf16, #tpu.memory_space<vmem>>, vector<1x5x4x32xbf16>
    %7 = vector.shape_cast %6 : vector<1x5x4x32xbf16> to vector<5x4x32xbf16>
    %c2 = arith.constant 2 : index
    %8 = arith.index_cast %1 : i32 to index
    %c0_4 = arith.constant 0 : index
    %c0_5 = arith.constant 0 : index
    %9 = vector.load %arg2[%c2, %8, %c0_4, %c0_5] : memref<4x14x4x32xbf16, #tpu.memory_space<vmem>>, vector<1x5x4x32xbf16>
    %10 = vector.shape_cast %9 : vector<1x5x4x32xbf16> to vector<5x4x32xbf16>
    %c3 = arith.constant 3 : index
    %11 = arith.index_cast %1 : i32 to index
    %c0_6 = arith.constant 0 : index
    %c0_7 = arith.constant 0 : index
    %12 = vector.load %arg2[%c3, %11, %c0_6, %c0_7] : memref<4x14x4x32xbf16, #tpu.memory_space<vmem>>, vector<1x5x4x32xbf16>
    %13 = vector.shape_cast %12 : vector<1x5x4x32xbf16> to vector<5x4x32xbf16>
    %c0_8 = arith.constant 0 : index
    %c0_9 = arith.constant 0 : index
    %c0_10 = arith.constant 0 : index
    %14 = vector.load %arg3[%c0_8, %c0_9, %c0_10] : memref<9x32x64xbf16, #tpu.memory_space<vmem>>, vector<1x32x64xbf16>
    %15 = vector.shape_cast %14 : vector<1x32x64xbf16> to vector<32x64xbf16>
    %c1_11 = arith.constant 1 : index
    %c0_12 = arith.constant 0 : index
    %c0_13 = arith.constant 0 : index
    %16 = vector.load %arg3[%c1_11, %c0_12, %c0_13] : memref<9x32x64xbf16, #tpu.memory_space<vmem>>, vector<1x32x64xbf16>
    %17 = vector.shape_cast %16 : vector<1x32x64xbf16> to vector<32x64xbf16>
    %c2_14 = arith.constant 2 : index
    %c0_15 = arith.constant 0 : index
    %c0_16 = arith.constant 0 : index
    %18 = vector.load %arg3[%c2_14, %c0_15, %c0_16] : memref<9x32x64xbf16, #tpu.memory_space<vmem>>, vector<1x32x64xbf16>
    %19 = vector.shape_cast %18 : vector<1x32x64xbf16> to vector<32x64xbf16>
    %c3_17 = arith.constant 3 : index
    %c0_18 = arith.constant 0 : index
    %c0_19 = arith.constant 0 : index
    %20 = vector.load %arg3[%c3_17, %c0_18, %c0_19] : memref<9x32x64xbf16, #tpu.memory_space<vmem>>, vector<1x32x64xbf16>
    %21 = vector.shape_cast %20 : vector<1x32x64xbf16> to vector<32x64xbf16>
    %c4 = arith.constant 4 : index
    %c0_20 = arith.constant 0 : index
    %c0_21 = arith.constant 0 : index
    %22 = vector.load %arg3[%c4, %c0_20, %c0_21] : memref<9x32x64xbf16, #tpu.memory_space<vmem>>, vector<1x32x64xbf16>
    %23 = vector.shape_cast %22 : vector<1x32x64xbf16> to vector<32x64xbf16>
    %c5 = arith.constant 5 : index
    %c0_22 = arith.constant 0 : index
    %c0_23 = arith.constant 0 : index
    %24 = vector.load %arg3[%c5, %c0_22, %c0_23] : memref<9x32x64xbf16, #tpu.memory_space<vmem>>, vector<1x32x64xbf16>
    %25 = vector.shape_cast %24 : vector<1x32x64xbf16> to vector<32x64xbf16>
    %c6 = arith.constant 6 : index
    %c0_24 = arith.constant 0 : index
    %c0_25 = arith.constant 0 : index
    %26 = vector.load %arg3[%c6, %c0_24, %c0_25] : memref<9x32x64xbf16, #tpu.memory_space<vmem>>, vector<1x32x64xbf16>
    %27 = vector.shape_cast %26 : vector<1x32x64xbf16> to vector<32x64xbf16>
    %c7 = arith.constant 7 : index
    %c0_26 = arith.constant 0 : index
    %c0_27 = arith.constant 0 : index
    %28 = vector.load %arg3[%c7, %c0_26, %c0_27] : memref<9x32x64xbf16, #tpu.memory_space<vmem>>, vector<1x32x64xbf16>
    %29 = vector.shape_cast %28 : vector<1x32x64xbf16> to vector<32x64xbf16>
    %c8 = arith.constant 8 : index
    %c0_28 = arith.constant 0 : index
    %c0_29 = arith.constant 0 : index
    %30 = vector.load %arg3[%c8, %c0_28, %c0_29] : memref<9x32x64xbf16, #tpu.memory_space<vmem>>, vector<1x32x64xbf16>
    %31 = vector.shape_cast %30 : vector<1x32x64xbf16> to vector<32x64xbf16>
    %c0_30 = arith.constant 0 : index
    %c0_31 = arith.constant 0 : index
    %32 = vector.load %arg4[%c0_30, %c0_31] : memref<1x64xf32, #tpu.memory_space<vmem>>, vector<1x64xf32>
    %c0_32 = arith.constant 0 : index
    %c0_33 = arith.constant 0 : index
    %33 = vector.load %arg5[%c0_32, %c0_33] : memref<1x64xf32, #tpu.memory_space<vmem>>, vector<1x64xf32>
    %c0_34 = arith.constant 0 : index
    %c0_35 = arith.constant 0 : index
    %34 = vector.load %arg6[%c0_34, %c0_35] : memref<1x64xf32, #tpu.memory_space<vmem>>, vector<1x64xf32>
    %cst = arith.constant 0.000000e+00 : f32
    %35 = vector.broadcast %cst : f32 to vector<3x64xf32>
    %36 = vector.extract_strided_slice %4 {offsets = [0, 0, 0], sizes = [1, 3, 32], strides = [1, 1, 1]} : vector<5x4x32xbf16> to vector<1x3x32xbf16>
    %37 = vector.shape_cast %36 : vector<1x3x32xbf16> to vector<3x32xbf16>
    %cst_36 = arith.constant dense<0.000000e+00> : vector<3x64xf32>
    %38 = tpu.matmul %37, %15, %cst_36 {dimension_numbers = #tpu.dot_dimension_numbers<[1], [0], [0], [1], [0, 0, 1, 1], [], []>} : vector<3x32xbf16>, vector<32x64xbf16>, vector<3x64xf32> -> vector<3x64xf32>
    %39 = arith.addf %35, %38 : vector<3x64xf32>
    %40 = vector.extract_strided_slice %7 {offsets = [0, 0, 0], sizes = [1, 3, 32], strides = [1, 1, 1]} : vector<5x4x32xbf16> to vector<1x3x32xbf16>
    %41 = vector.shape_cast %40 : vector<1x3x32xbf16> to vector<3x32xbf16>
    %cst_37 = arith.constant dense<0.000000e+00> : vector<3x64xf32>
    %42 = tpu.matmul %41, %17, %cst_37 {dimension_numbers = #tpu.dot_dimension_numbers<[1], [0], [0], [1], [0, 0, 1, 1], [], []>} : vector<3x32xbf16>, vector<32x64xbf16>, vector<3x64xf32> -> vector<3x64xf32>
    %43 = arith.addf %39, %42 : vector<3x64xf32>
    %44 = vector.extract_strided_slice %10 {offsets = [0, 0, 0], sizes = [1, 3, 32], strides = [1, 1, 1]} : vector<5x4x32xbf16> to vector<1x3x32xbf16>
    %45 = vector.shape_cast %44 : vector<1x3x32xbf16> to vector<3x32xbf16>
    %cst_38 = arith.constant dense<0.000000e+00> : vector<3x64xf32>
    %46 = tpu.matmul %45, %19, %cst_38 {dimension_numbers = #tpu.dot_dimension_numbers<[1], [0], [0], [1], [0, 0, 1, 1], [], []>} : vector<3x32xbf16>, vector<32x64xbf16>, vector<3x64xf32> -> vector<3x64xf32>
    %47 = arith.addf %43, %46 : vector<3x64xf32>
    %48 = vector.extract_strided_slice %4 {offsets = [1, 0, 0], sizes = [1, 3, 32], strides = [1, 1, 1]} : vector<5x4x32xbf16> to vector<1x3x32xbf16>
    %49 = vector.shape_cast %48 : vector<1x3x32xbf16> to vector<3x32xbf16>
    %cst_39 = arith.constant dense<0.000000e+00> : vector<3x64xf32>
    %50 = tpu.matmul %49, %21, %cst_39 {dimension_numbers = #tpu.dot_dimension_numbers<[1], [0], [0], [1], [0, 0, 1, 1], [], []>} : vector<3x32xbf16>, vector<32x64xbf16>, vector<3x64xf32> -> vector<3x64xf32>
    %51 = arith.addf %47, %50 : vector<3x64xf32>
    %52 = vector.extract_strided_slice %7 {offsets = [1, 0, 0], sizes = [1, 3, 32], strides = [1, 1, 1]} : vector<5x4x32xbf16> to vector<1x3x32xbf16>
    %53 = vector.shape_cast %52 : vector<1x3x32xbf16> to vector<3x32xbf16>
    %cst_40 = arith.constant dense<0.000000e+00> : vector<3x64xf32>
    %54 = tpu.matmul %53, %23, %cst_40 {dimension_numbers = #tpu.dot_dimension_numbers<[1], [0], [0], [1], [0, 0, 1, 1], [], []>} : vector<3x32xbf16>, vector<32x64xbf16>, vector<3x64xf32> -> vector<3x64xf32>
    %55 = arith.addf %51, %54 : vector<3x64xf32>
    %56 = vector.extract_strided_slice %10 {offsets = [1, 0, 0], sizes = [1, 3, 32], strides = [1, 1, 1]} : vector<5x4x32xbf16> to vector<1x3x32xbf16>
    %57 = vector.shape_cast %56 : vector<1x3x32xbf16> to vector<3x32xbf16>
    %cst_41 = arith.constant dense<0.000000e+00> : vector<3x64xf32>
    %58 = tpu.matmul %57, %25, %cst_41 {dimension_numbers = #tpu.dot_dimension_numbers<[1], [0], [0], [1], [0, 0, 1, 1], [], []>} : vector<3x32xbf16>, vector<32x64xbf16>, vector<3x64xf32> -> vector<3x64xf32>
    %59 = arith.addf %55, %58 : vector<3x64xf32>
    %60 = vector.extract_strided_slice %4 {offsets = [2, 0, 0], sizes = [1, 3, 32], strides = [1, 1, 1]} : vector<5x4x32xbf16> to vector<1x3x32xbf16>
    %61 = vector.shape_cast %60 : vector<1x3x32xbf16> to vector<3x32xbf16>
    %cst_42 = arith.constant dense<0.000000e+00> : vector<3x64xf32>
    %62 = tpu.matmul %61, %27, %cst_42 {dimension_numbers = #tpu.dot_dimension_numbers<[1], [0], [0], [1], [0, 0, 1, 1], [], []>} : vector<3x32xbf16>, vector<32x64xbf16>, vector<3x64xf32> -> vector<3x64xf32>
    %63 = arith.addf %59, %62 : vector<3x64xf32>
    %64 = vector.extract_strided_slice %7 {offsets = [2, 0, 0], sizes = [1, 3, 32], strides = [1, 1, 1]} : vector<5x4x32xbf16> to vector<1x3x32xbf16>
    %65 = vector.shape_cast %64 : vector<1x3x32xbf16> to vector<3x32xbf16>
    %cst_43 = arith.constant dense<0.000000e+00> : vector<3x64xf32>
    %66 = tpu.matmul %65, %29, %cst_43 {dimension_numbers = #tpu.dot_dimension_numbers<[1], [0], [0], [1], [0, 0, 1, 1], [], []>} : vector<3x32xbf16>, vector<32x64xbf16>, vector<3x64xf32> -> vector<3x64xf32>
    %67 = arith.addf %63, %66 : vector<3x64xf32>
    %68 = vector.extract_strided_slice %10 {offsets = [2, 0, 0], sizes = [1, 3, 32], strides = [1, 1, 1]} : vector<5x4x32xbf16> to vector<1x3x32xbf16>
    %69 = vector.shape_cast %68 : vector<1x3x32xbf16> to vector<3x32xbf16>
    %cst_44 = arith.constant dense<0.000000e+00> : vector<3x64xf32>
    %70 = tpu.matmul %69, %31, %cst_44 {dimension_numbers = #tpu.dot_dimension_numbers<[1], [0], [0], [1], [0, 0, 1, 1], [], []>} : vector<3x32xbf16>, vector<32x64xbf16>, vector<3x64xf32> -> vector<3x64xf32>
    %71 = arith.addf %67, %70 : vector<3x64xf32>
    %72 = vector.broadcast %32 : vector<1x64xf32> to vector<3x64xf32>
    %73 = arith.addf %71, %72 : vector<3x64xf32>
    %cst_45 = arith.constant 0.000000e+00 : f32
    %74 = vector.broadcast %cst_45 : f32 to vector<3x64xf32>
    %75 = arith.maximumf %73, %74 : vector<3x64xf32>
    %76 = vector.broadcast %33 : vector<1x64xf32> to vector<3x64xf32>
    %77 = arith.mulf %75, %76 : vector<3x64xf32>
    %78 = vector.broadcast %34 : vector<1x64xf32> to vector<3x64xf32>
    %79 = arith.addf %77, %78 : vector<3x64xf32>
    %cst_46 = arith.constant 0.000000e+00 : f32
    %80 = vector.broadcast %cst_46 : f32 to vector<3x64xf32>
    %81 = vector.extract_strided_slice %10 {offsets = [0, 0, 0], sizes = [1, 3, 32], strides = [1, 1, 1]} : vector<5x4x32xbf16> to vector<1x3x32xbf16>
    %82 = vector.shape_cast %81 : vector<1x3x32xbf16> to vector<3x32xbf16>
    %cst_47 = arith.constant dense<0.000000e+00> : vector<3x64xf32>
    %83 = tpu.matmul %82, %15, %cst_47 {dimension_numbers = #tpu.dot_dimension_numbers<[1], [0], [0], [1], [0, 0, 1, 1], [], []>} : vector<3x32xbf16>, vector<32x64xbf16>, vector<3x64xf32> -> vector<3x64xf32>
    %84 = arith.addf %80, %83 : vector<3x64xf32>
    %85 = vector.extract_strided_slice %13 {offsets = [0, 0, 0], sizes = [1, 3, 32], strides = [1, 1, 1]} : vector<5x4x32xbf16> to vector<1x3x32xbf16>
    %86 = vector.shape_cast %85 : vector<1x3x32xbf16> to vector<3x32xbf16>
    %cst_48 = arith.constant dense<0.000000e+00> : vector<3x64xf32>
    %87 = tpu.matmul %86, %17, %cst_48 {dimension_numbers = #tpu.dot_dimension_numbers<[1], [0], [0], [1], [0, 0, 1, 1], [], []>} : vector<3x32xbf16>, vector<32x64xbf16>, vector<3x64xf32> -> vector<3x64xf32>
    %88 = arith.addf %84, %87 : vector<3x64xf32>
    %89 = vector.extract_strided_slice %4 {offsets = [0, 1, 0], sizes = [1, 3, 32], strides = [1, 1, 1]} : vector<5x4x32xbf16> to vector<1x3x32xbf16>
    %90 = vector.shape_cast %89 : vector<1x3x32xbf16> to vector<3x32xbf16>
    %cst_49 = arith.constant dense<0.000000e+00> : vector<3x64xf32>
    %91 = tpu.matmul %90, %19, %cst_49 {dimension_numbers = #tpu.dot_dimension_numbers<[1], [0], [0], [1], [0, 0, 1, 1], [], []>} : vector<3x32xbf16>, vector<32x64xbf16>, vector<3x64xf32> -> vector<3x64xf32>
    %92 = arith.addf %88, %91 : vector<3x64xf32>
    %93 = vector.extract_strided_slice %10 {offsets = [1, 0, 0], sizes = [1, 3, 32], strides = [1, 1, 1]} : vector<5x4x32xbf16> to vector<1x3x32xbf16>
    %94 = vector.shape_cast %93 : vector<1x3x32xbf16> to vector<3x32xbf16>
    %cst_50 = arith.constant dense<0.000000e+00> : vector<3x64xf32>
    %95 = tpu.matmul %94, %21, %cst_50 {dimension_numbers = #tpu.dot_dimension_numbers<[1], [0], [0], [1], [0, 0, 1, 1], [], []>} : vector<3x32xbf16>, vector<32x64xbf16>, vector<3x64xf32> -> vector<3x64xf32>
    %96 = arith.addf %92, %95 : vector<3x64xf32>
    %97 = vector.extract_strided_slice %13 {offsets = [1, 0, 0], sizes = [1, 3, 32], strides = [1, 1, 1]} : vector<5x4x32xbf16> to vector<1x3x32xbf16>
    %98 = vector.shape_cast %97 : vector<1x3x32xbf16> to vector<3x32xbf16>
    %cst_51 = arith.constant dense<0.000000e+00> : vector<3x64xf32>
    %99 = tpu.matmul %98, %23, %cst_51 {dimension_numbers = #tpu.dot_dimension_numbers<[1], [0], [0], [1], [0, 0, 1, 1], [], []>} : vector<3x32xbf16>, vector<32x64xbf16>, vector<3x64xf32> -> vector<3x64xf32>
    %100 = arith.addf %96, %99 : vector<3x64xf32>
    %101 = vector.extract_strided_slice %4 {offsets = [1, 1, 0], sizes = [1, 3, 32], strides = [1, 1, 1]} : vector<5x4x32xbf16> to vector<1x3x32xbf16>
    %102 = vector.shape_cast %101 : vector<1x3x32xbf16> to vector<3x32xbf16>
    %cst_52 = arith.constant dense<0.000000e+00> : vector<3x64xf32>
    %103 = tpu.matmul %102, %25, %cst_52 {dimension_numbers = #tpu.dot_dimension_numbers<[1], [0], [0], [1], [0, 0, 1, 1], [], []>} : vector<3x32xbf16>, vector<32x64xbf16>, vector<3x64xf32> -> vector<3x64xf32>
    %104 = arith.addf %100, %103 : vector<3x64xf32>
    %105 = vector.extract_strided_slice %10 {offsets = [2, 0, 0], sizes = [1, 3, 32], strides = [1, 1, 1]} : vector<5x4x32xbf16> to vector<1x3x32xbf16>
    %106 = vector.shape_cast %105 : vector<1x3x32xbf16> to vector<3x32xbf16>
    %cst_53 = arith.constant dense<0.000000e+00> : vector<3x64xf32>
    %107 = tpu.matmul %106, %27, %cst_53 {dimension_numbers = #tpu.dot_dimension_numbers<[1], [0], [0], [1], [0, 0, 1, 1], [], []>} : vector<3x32xbf16>, vector<32x64xbf16>, vector<3x64xf32> -> vector<3x64xf32>
    %108 = arith.addf %104, %107 : vector<3x64xf32>
    %109 = vector.extract_strided_slice %13 {offsets = [2, 0, 0], sizes = [1, 3, 32], strides = [1, 1, 1]} : vector<5x4x32xbf16> to vector<1x3x32xbf16>
    %110 = vector.shape_cast %109 : vector<1x3x32xbf16> to vector<3x32xbf16>
    %cst_54 = arith.constant dense<0.000000e+00> : vector<3x64xf32>
    %111 = tpu.matmul %110, %29, %cst_54 {dimension_numbers = #tpu.dot_dimension_numbers<[1], [0], [0], [1], [0, 0, 1, 1], [], []>} : vector<3x32xbf16>, vector<32x64xbf16>, vector<3x64xf32> -> vector<3x64xf32>
    %112 = arith.addf %108, %111 : vector<3x64xf32>
    %113 = vector.extract_strided_slice %4 {offsets = [2, 1, 0], sizes = [1, 3, 32], strides = [1, 1, 1]} : vector<5x4x32xbf16> to vector<1x3x32xbf16>
    %114 = vector.shape_cast %113 : vector<1x3x32xbf16> to vector<3x32xbf16>
    %cst_55 = arith.constant dense<0.000000e+00> : vector<3x64xf32>
    %115 = tpu.matmul %114, %31, %cst_55 {dimension_numbers = #tpu.dot_dimension_numbers<[1], [0], [0], [1], [0, 0, 1, 1], [], []>} : vector<3x32xbf16>, vector<32x64xbf16>, vector<3x64xf32> -> vector<3x64xf32>
    %116 = arith.addf %112, %115 : vector<3x64xf32>
    %117 = vector.broadcast %32 : vector<1x64xf32> to vector<3x64xf32>
    %118 = arith.addf %116, %117 : vector<3x64xf32>
    %cst_56 = arith.constant 0.000000e+00 : f32
    %119 = vector.broadcast %cst_56 : f32 to vector<3x64xf32>
    %120 = arith.maximumf %118, %119 : vector<3x64xf32>
    %121 = vector.broadcast %33 : vector<1x64xf32> to vector<3x64xf32>
    %122 = arith.mulf %120, %121 : vector<3x64xf32>
    %123 = vector.broadcast %34 : vector<1x64xf32> to vector<3x64xf32>
    %124 = arith.addf %122, %123 : vector<3x64xf32>
    %125 = arith.maximumf %79, %124 : vector<3x64xf32>
    %cst_57 = arith.constant 0.000000e+00 : f32
    %126 = vector.broadcast %cst_57 : f32 to vector<3x64xf32>
    %127 = vector.extract_strided_slice %4 {offsets = [2, 0, 0], sizes = [1, 3, 32], strides = [1, 1, 1]} : vector<5x4x32xbf16> to vector<1x3x32xbf16>
    %128 = vector.shape_cast %127 : vector<1x3x32xbf16> to vector<3x32xbf16>
    %cst_58 = arith.constant dense<0.000000e+00> : vector<3x64xf32>
    %129 = tpu.matmul %128, %15, %cst_58 {dimension_numbers = #tpu.dot_dimension_numbers<[1], [0], [0], [1], [0, 0, 1, 1], [], []>} : vector<3x32xbf16>, vector<32x64xbf16>, vector<3x64xf32> -> vector<3x64xf32>
    %130 = arith.addf %126, %129 : vector<3x64xf32>
    %131 = vector.extract_strided_slice %7 {offsets = [2, 0, 0], sizes = [1, 3, 32], strides = [1, 1, 1]} : vector<5x4x32xbf16> to vector<1x3x32xbf16>
    %132 = vector.shape_cast %131 : vector<1x3x32xbf16> to vector<3x32xbf16>
    %cst_59 = arith.constant dense<0.000000e+00> : vector<3x64xf32>
    %133 = tpu.matmul %132, %17, %cst_59 {dimension_numbers = #tpu.dot_dimension_numbers<[1], [0], [0], [1], [0, 0, 1, 1], [], []>} : vector<3x32xbf16>, vector<32x64xbf16>, vector<3x64xf32> -> vector<3x64xf32>
    %134 = arith.addf %130, %133 : vector<3x64xf32>
    %135 = vector.extract_strided_slice %10 {offsets = [2, 0, 0], sizes = [1, 3, 32], strides = [1, 1, 1]} : vector<5x4x32xbf16> to vector<1x3x32xbf16>
    %136 = vector.shape_cast %135 : vector<1x3x32xbf16> to vector<3x32xbf16>
    %cst_60 = arith.constant dense<0.000000e+00> : vector<3x64xf32>
    %137 = tpu.matmul %136, %19, %cst_60 {dimension_numbers = #tpu.dot_dimension_numbers<[1], [0], [0], [1], [0, 0, 1, 1], [], []>} : vector<3x32xbf16>, vector<32x64xbf16>, vector<3x64xf32> -> vector<3x64xf32>
    %138 = arith.addf %134, %137 : vector<3x64xf32>
    %139 = vector.extract_strided_slice %4 {offsets = [3, 0, 0], sizes = [1, 3, 32], strides = [1, 1, 1]} : vector<5x4x32xbf16> to vector<1x3x32xbf16>
    %140 = vector.shape_cast %139 : vector<1x3x32xbf16> to vector<3x32xbf16>
    %cst_61 = arith.constant dense<0.000000e+00> : vector<3x64xf32>
    %141 = tpu.matmul %140, %21, %cst_61 {dimension_numbers = #tpu.dot_dimension_numbers<[1], [0], [0], [1], [0, 0, 1, 1], [], []>} : vector<3x32xbf16>, vector<32x64xbf16>, vector<3x64xf32> -> vector<3x64xf32>
    %142 = arith.addf %138, %141 : vector<3x64xf32>
    %143 = vector.extract_strided_slice %7 {offsets = [3, 0, 0], sizes = [1, 3, 32], strides = [1, 1, 1]} : vector<5x4x32xbf16> to vector<1x3x32xbf16>
    %144 = vector.shape_cast %143 : vector<1x3x32xbf16> to vector<3x32xbf16>
    %cst_62 = arith.constant dense<0.000000e+00> : vector<3x64xf32>
    %145 = tpu.matmul %144, %23, %cst_62 {dimension_numbers = #tpu.dot_dimension_numbers<[1], [0], [0], [1], [0, 0, 1, 1], [], []>} : vector<3x32xbf16>, vector<32x64xbf16>, vector<3x64xf32> -> vector<3x64xf32>
    %146 = arith.addf %142, %145 : vector<3x64xf32>
    %147 = vector.extract_strided_slice %10 {offsets = [3, 0, 0], sizes = [1, 3, 32], strides = [1, 1, 1]} : vector<5x4x32xbf16> to vector<1x3x32xbf16>
    %148 = vector.shape_cast %147 : vector<1x3x32xbf16> to vector<3x32xbf16>
    %cst_63 = arith.constant dense<0.000000e+00> : vector<3x64xf32>
    %149 = tpu.matmul %148, %25, %cst_63 {dimension_numbers = #tpu.dot_dimension_numbers<[1], [0], [0], [1], [0, 0, 1, 1], [], []>} : vector<3x32xbf16>, vector<32x64xbf16>, vector<3x64xf32> -> vector<3x64xf32>
    %150 = arith.addf %146, %149 : vector<3x64xf32>
    %151 = vector.extract_strided_slice %4 {offsets = [4, 0, 0], sizes = [1, 3, 32], strides = [1, 1, 1]} : vector<5x4x32xbf16> to vector<1x3x32xbf16>
    %152 = vector.shape_cast %151 : vector<1x3x32xbf16> to vector<3x32xbf16>
    %cst_64 = arith.constant dense<0.000000e+00> : vector<3x64xf32>
    %153 = tpu.matmul %152, %27, %cst_64 {dimension_numbers = #tpu.dot_dimension_numbers<[1], [0], [0], [1], [0, 0, 1, 1], [], []>} : vector<3x32xbf16>, vector<32x64xbf16>, vector<3x64xf32> -> vector<3x64xf32>
    %154 = arith.addf %150, %153 : vector<3x64xf32>
    %155 = vector.extract_strided_slice %7 {offsets = [4, 0, 0], sizes = [1, 3, 32], strides = [1, 1, 1]} : vector<5x4x32xbf16> to vector<1x3x32xbf16>
    %156 = vector.shape_cast %155 : vector<1x3x32xbf16> to vector<3x32xbf16>
    %cst_65 = arith.constant dense<0.000000e+00> : vector<3x64xf32>
    %157 = tpu.matmul %156, %29, %cst_65 {dimension_numbers = #tpu.dot_dimension_numbers<[1], [0], [0], [1], [0, 0, 1, 1], [], []>} : vector<3x32xbf16>, vector<32x64xbf16>, vector<3x64xf32> -> vector<3x64xf32>
    %158 = arith.addf %154, %157 : vector<3x64xf32>
    %159 = vector.extract_strided_slice %10 {offsets = [4, 0, 0], sizes = [1, 3, 32], strides = [1, 1, 1]} : vector<5x4x32xbf16> to vector<1x3x32xbf16>
    %160 = vector.shape_cast %159 : vector<1x3x32xbf16> to vector<3x32xbf16>
    %cst_66 = arith.constant dense<0.000000e+00> : vector<3x64xf32>
    %161 = tpu.matmul %160, %31, %cst_66 {dimension_numbers = #tpu.dot_dimension_numbers<[1], [0], [0], [1], [0, 0, 1, 1], [], []>} : vector<3x32xbf16>, vector<32x64xbf16>, vector<3x64xf32> -> vector<3x64xf32>
    %162 = arith.addf %158, %161 : vector<3x64xf32>
    %163 = vector.broadcast %32 : vector<1x64xf32> to vector<3x64xf32>
    %164 = arith.addf %162, %163 : vector<3x64xf32>
    %cst_67 = arith.constant 0.000000e+00 : f32
    %165 = vector.broadcast %cst_67 : f32 to vector<3x64xf32>
    %166 = arith.maximumf %164, %165 : vector<3x64xf32>
    %167 = vector.broadcast %33 : vector<1x64xf32> to vector<3x64xf32>
    %168 = arith.mulf %166, %167 : vector<3x64xf32>
    %169 = vector.broadcast %34 : vector<1x64xf32> to vector<3x64xf32>
    %170 = arith.addf %168, %169 : vector<3x64xf32>
    %171 = arith.maximumf %125, %170 : vector<3x64xf32>
    %cst_68 = arith.constant 0.000000e+00 : f32
    %172 = vector.broadcast %cst_68 : f32 to vector<3x64xf32>
    %173 = vector.extract_strided_slice %10 {offsets = [2, 0, 0], sizes = [1, 3, 32], strides = [1, 1, 1]} : vector<5x4x32xbf16> to vector<1x3x32xbf16>
    %174 = vector.shape_cast %173 : vector<1x3x32xbf16> to vector<3x32xbf16>
    %cst_69 = arith.constant dense<0.000000e+00> : vector<3x64xf32>
    %175 = tpu.matmul %174, %15, %cst_69 {dimension_numbers = #tpu.dot_dimension_numbers<[1], [0], [0], [1], [0, 0, 1, 1], [], []>} : vector<3x32xbf16>, vector<32x64xbf16>, vector<3x64xf32> -> vector<3x64xf32>
    %176 = arith.addf %172, %175 : vector<3x64xf32>
    %177 = vector.extract_strided_slice %13 {offsets = [2, 0, 0], sizes = [1, 3, 32], strides = [1, 1, 1]} : vector<5x4x32xbf16> to vector<1x3x32xbf16>
    %178 = vector.shape_cast %177 : vector<1x3x32xbf16> to vector<3x32xbf16>
    %cst_70 = arith.constant dense<0.000000e+00> : vector<3x64xf32>
    %179 = tpu.matmul %178, %17, %cst_70 {dimension_numbers = #tpu.dot_dimension_numbers<[1], [0], [0], [1], [0, 0, 1, 1], [], []>} : vector<3x32xbf16>, vector<32x64xbf16>, vector<3x64xf32> -> vector<3x64xf32>
    %180 = arith.addf %176, %179 : vector<3x64xf32>
    %181 = vector.extract_strided_slice %4 {offsets = [2, 1, 0], sizes = [1, 3, 32], strides = [1, 1, 1]} : vector<5x4x32xbf16> to vector<1x3x32xbf16>
    %182 = vector.shape_cast %181 : vector<1x3x32xbf16> to vector<3x32xbf16>
    %cst_71 = arith.constant dense<0.000000e+00> : vector<3x64xf32>
    %183 = tpu.matmul %182, %19, %cst_71 {dimension_numbers = #tpu.dot_dimension_numbers<[1], [0], [0], [1], [0, 0, 1, 1], [], []>} : vector<3x32xbf16>, vector<32x64xbf16>, vector<3x64xf32> -> vector<3x64xf32>
    %184 = arith.addf %180, %183 : vector<3x64xf32>
    %185 = vector.extract_strided_slice %10 {offsets = [3, 0, 0], sizes = [1, 3, 32], strides = [1, 1, 1]} : vector<5x4x32xbf16> to vector<1x3x32xbf16>
    %186 = vector.shape_cast %185 : vector<1x3x32xbf16> to vector<3x32xbf16>
    %cst_72 = arith.constant dense<0.000000e+00> : vector<3x64xf32>
    %187 = tpu.matmul %186, %21, %cst_72 {dimension_numbers = #tpu.dot_dimension_numbers<[1], [0], [0], [1], [0, 0, 1, 1], [], []>} : vector<3x32xbf16>, vector<32x64xbf16>, vector<3x64xf32> -> vector<3x64xf32>
    %188 = arith.addf %184, %187 : vector<3x64xf32>
    %189 = vector.extract_strided_slice %13 {offsets = [3, 0, 0], sizes = [1, 3, 32], strides = [1, 1, 1]} : vector<5x4x32xbf16> to vector<1x3x32xbf16>
    %190 = vector.shape_cast %189 : vector<1x3x32xbf16> to vector<3x32xbf16>
    %cst_73 = arith.constant dense<0.000000e+00> : vector<3x64xf32>
    %191 = tpu.matmul %190, %23, %cst_73 {dimension_numbers = #tpu.dot_dimension_numbers<[1], [0], [0], [1], [0, 0, 1, 1], [], []>} : vector<3x32xbf16>, vector<32x64xbf16>, vector<3x64xf32> -> vector<3x64xf32>
    %192 = arith.addf %188, %191 : vector<3x64xf32>
    %193 = vector.extract_strided_slice %4 {offsets = [3, 1, 0], sizes = [1, 3, 32], strides = [1, 1, 1]} : vector<5x4x32xbf16> to vector<1x3x32xbf16>
    %194 = vector.shape_cast %193 : vector<1x3x32xbf16> to vector<3x32xbf16>
    %cst_74 = arith.constant dense<0.000000e+00> : vector<3x64xf32>
    %195 = tpu.matmul %194, %25, %cst_74 {dimension_numbers = #tpu.dot_dimension_numbers<[1], [0], [0], [1], [0, 0, 1, 1], [], []>} : vector<3x32xbf16>, vector<32x64xbf16>, vector<3x64xf32> -> vector<3x64xf32>
    %196 = arith.addf %192, %195 : vector<3x64xf32>
    %197 = vector.extract_strided_slice %10 {offsets = [4, 0, 0], sizes = [1, 3, 32], strides = [1, 1, 1]} : vector<5x4x32xbf16> to vector<1x3x32xbf16>
    %198 = vector.shape_cast %197 : vector<1x3x32xbf16> to vector<3x32xbf16>
    %cst_75 = arith.constant dense<0.000000e+00> : vector<3x64xf32>
    %199 = tpu.matmul %198, %27, %cst_75 {dimension_numbers = #tpu.dot_dimension_numbers<[1], [0], [0], [1], [0, 0, 1, 1], [], []>} : vector<3x32xbf16>, vector<32x64xbf16>, vector<3x64xf32> -> vector<3x64xf32>
    %200 = arith.addf %196, %199 : vector<3x64xf32>
    %201 = vector.extract_strided_slice %13 {offsets = [4, 0, 0], sizes = [1, 3, 32], strides = [1, 1, 1]} : vector<5x4x32xbf16> to vector<1x3x32xbf16>
    %202 = vector.shape_cast %201 : vector<1x3x32xbf16> to vector<3x32xbf16>
    %cst_76 = arith.constant dense<0.000000e+00> : vector<3x64xf32>
    %203 = tpu.matmul %202, %29, %cst_76 {dimension_numbers = #tpu.dot_dimension_numbers<[1], [0], [0], [1], [0, 0, 1, 1], [], []>} : vector<3x32xbf16>, vector<32x64xbf16>, vector<3x64xf32> -> vector<3x64xf32>
    %204 = arith.addf %200, %203 : vector<3x64xf32>
    %205 = vector.extract_strided_slice %4 {offsets = [4, 1, 0], sizes = [1, 3, 32], strides = [1, 1, 1]} : vector<5x4x32xbf16> to vector<1x3x32xbf16>
    %206 = vector.shape_cast %205 : vector<1x3x32xbf16> to vector<3x32xbf16>
    %cst_77 = arith.constant dense<0.000000e+00> : vector<3x64xf32>
    %207 = tpu.matmul %206, %31, %cst_77 {dimension_numbers = #tpu.dot_dimension_numbers<[1], [0], [0], [1], [0, 0, 1, 1], [], []>} : vector<3x32xbf16>, vector<32x64xbf16>, vector<3x64xf32> -> vector<3x64xf32>
    %208 = arith.addf %204, %207 : vector<3x64xf32>
    %209 = vector.broadcast %32 : vector<1x64xf32> to vector<3x64xf32>
    %210 = arith.addf %208, %209 : vector<3x64xf32>
    %cst_78 = arith.constant 0.000000e+00 : f32
    %211 = vector.broadcast %cst_78 : f32 to vector<3x64xf32>
    %212 = arith.maximumf %210, %211 : vector<3x64xf32>
    %213 = vector.broadcast %33 : vector<1x64xf32> to vector<3x64xf32>
    %214 = arith.mulf %212, %213 : vector<3x64xf32>
    %215 = vector.broadcast %34 : vector<1x64xf32> to vector<3x64xf32>
    %216 = arith.addf %214, %215 : vector<3x64xf32>
    %217 = arith.maximumf %171, %216 : vector<3x64xf32>
    %c0_79 = arith.constant 0 : index
    %c0_80 = arith.constant 0 : index
    %c0_81 = arith.constant 0 : index
    %c0_82 = arith.constant 0 : index
    %218 = vector.load %arg7[%c0_79, %c0_80, %c0_81, %c0_82] : memref<1x1x3x64xf32, #tpu.memory_space<vmem>>, vector<1x1x3x64xf32>
    %219 = vector.shape_cast %218 : vector<1x1x3x64xf32> to vector<3x64xf32>
    %220 = vector.shape_cast %217 : vector<3x64xf32> to vector<1x1x3x64xf32>
    tpu.vector_store %arg7[%c0_79, %c0_80, %c0_81, %c0_82], %220 {strides = array<i32>} : memref<1x1x3x64xf32, #tpu.memory_space<vmem>>, vector<1x1x3x64xf32>,
    return
  }
  func.func @transform_0(%arg0: i32, %arg1: i32) -> (i32, i32, i32, i32) {
    %c0_i32 = arith.constant 0 : i32
    %c0_i32_0 = arith.constant 0 : i32
    %c0_i32_1 = arith.constant 0 : i32
    %c0_i32_2 = arith.constant 0 : i32
    return %arg0, %c0_i32, %c0_i32_0, %c0_i32_1 : i32, i32, i32, i32
  }
  func.func @transform_1(%arg0: i32, %arg1: i32) -> (i32, i32, i32) {
    %c0_i32 = arith.constant 0 : i32
    %c0_i32_0 = arith.constant 0 : i32
    %c0_i32_1 = arith.constant 0 : i32
    %c0_i32_2 = arith.constant 0 : i32
    return %c0_i32, %c0_i32_0, %c0_i32_1 : i32, i32, i32
  }
  func.func @transform_2(%arg0: i32, %arg1: i32) -> (i32, i32) {
    %c0_i32 = arith.constant 0 : i32
    %c0_i32_0 = arith.constant 0 : i32
    %c0_i32_1 = arith.constant 0 : i32
    return %c0_i32, %c0_i32_0 : i32, i32
  }
  func.func @transform_3(%arg0: i32, %arg1: i32) -> (i32, i32) {
    %c0_i32 = arith.constant 0 : i32
    %c0_i32_0 = arith.constant 0 : i32
    %c0_i32_1 = arith.constant 0 : i32
    return %c0_i32, %c0_i32_0 : i32, i32
  }
  func.func @transform_4(%arg0: i32, %arg1: i32) -> (i32, i32) {
    %c0_i32 = arith.constant 0 : i32
    %c0_i32_0 = arith.constant 0 : i32
    %c0_i32_1 = arith.constant 0 : i32
    return %c0_i32, %c0_i32_0 : i32, i32
  }
  func.func @transform_5(%arg0: i32, %arg1: i32) -> (i32, i32, i32, i32) {
    %c0_i32 = arith.constant 0 : i32
    %c0_i32_0 = arith.constant 0 : i32
    %c0_i32_1 = arith.constant 0 : i32
    return %arg0, %arg1, %c0_i32, %c0_i32_0 : i32, i32, i32, i32
  }
}

module attributes {stable_mosaic.version = 11 : i64} {
  func.func @kernel(%arg0: i32, %arg1: i32, %arg2: memref<4x5x2x64xbf16, #tpu.memory_space<vmem>>, %arg3: memref<9x64x128xbf16, #tpu.memory_space<vmem>>, %arg4: memref<1x128xf32, #tpu.memory_space<vmem>>, %arg5: memref<1x128xf32, #tpu.memory_space<vmem>>, %arg6: memref<1x128xf32, #tpu.memory_space<vmem>>, %arg7: memref<1x1x1x128xf32, #tpu.memory_space<vmem>>) attributes {dimension_semantics = [#tpu.dimension_semantics<parallel>, #tpu.dimension_semantics<parallel>], iteration_bounds = array<i64: 2, 1>, scalar_prefetch = 0 : i64, scratch_operands = 0 : i64, tpu.core_type = #tpu.core_type<tc>, window_params = [{transform_indices = @transform_0, window_bounds = array<i64: 4, 5, 2, 64>}, {pipeline_mode = #tpu.pipeline_mode<synchronous>, transform_indices = @transform_1, window_bounds = array<i64: 9, 64, 128>}, {pipeline_mode = #tpu.pipeline_mode<synchronous>, transform_indices = @transform_2, window_bounds = array<i64: 1, 128>}, {pipeline_mode = #tpu.pipeline_mode<synchronous>, transform_indices = @transform_3, window_bounds = array<i64: 1, 128>}, {pipeline_mode = #tpu.pipeline_mode<synchronous>, transform_indices = @transform_4, window_bounds = array<i64: 1, 128>}, {transform_indices = @transform_5, window_bounds = array<i64: 1, 1, 1, 128>}]} {
    %c4_i32 = arith.constant 4 : i32
    %0 = arith.muli %c4_i32, %arg1 : i32
    %1 = tpu.assume_multiple %0, 4 : i32
    %c0 = arith.constant 0 : index
    %2 = arith.index_cast %1 : i32 to index
    %c0_0 = arith.constant 0 : index
    %c0_1 = arith.constant 0 : index
    %3 = vector.load %arg2[%c0, %2, %c0_0, %c0_1] : memref<4x5x2x64xbf16, #tpu.memory_space<vmem>>, vector<1x5x2x64xbf16>
    %4 = vector.shape_cast %3 : vector<1x5x2x64xbf16> to vector<5x2x64xbf16>
    %c1 = arith.constant 1 : index
    %5 = arith.index_cast %1 : i32 to index
    %c0_2 = arith.constant 0 : index
    %c0_3 = arith.constant 0 : index
    %6 = vector.load %arg2[%c1, %5, %c0_2, %c0_3] : memref<4x5x2x64xbf16, #tpu.memory_space<vmem>>, vector<1x5x2x64xbf16>
    %7 = vector.shape_cast %6 : vector<1x5x2x64xbf16> to vector<5x2x64xbf16>
    %c2 = arith.constant 2 : index
    %8 = arith.index_cast %1 : i32 to index
    %c0_4 = arith.constant 0 : index
    %c0_5 = arith.constant 0 : index
    %9 = vector.load %arg2[%c2, %8, %c0_4, %c0_5] : memref<4x5x2x64xbf16, #tpu.memory_space<vmem>>, vector<1x5x2x64xbf16>
    %10 = vector.shape_cast %9 : vector<1x5x2x64xbf16> to vector<5x2x64xbf16>
    %c3 = arith.constant 3 : index
    %11 = arith.index_cast %1 : i32 to index
    %c0_6 = arith.constant 0 : index
    %c0_7 = arith.constant 0 : index
    %12 = vector.load %arg2[%c3, %11, %c0_6, %c0_7] : memref<4x5x2x64xbf16, #tpu.memory_space<vmem>>, vector<1x5x2x64xbf16>
    %13 = vector.shape_cast %12 : vector<1x5x2x64xbf16> to vector<5x2x64xbf16>
    %c0_8 = arith.constant 0 : index
    %c0_9 = arith.constant 0 : index
    %c0_10 = arith.constant 0 : index
    %14 = vector.load %arg3[%c0_8, %c0_9, %c0_10] : memref<9x64x128xbf16, #tpu.memory_space<vmem>>, vector<1x64x128xbf16>
    %15 = vector.shape_cast %14 : vector<1x64x128xbf16> to vector<64x128xbf16>
    %c1_11 = arith.constant 1 : index
    %c0_12 = arith.constant 0 : index
    %c0_13 = arith.constant 0 : index
    %16 = vector.load %arg3[%c1_11, %c0_12, %c0_13] : memref<9x64x128xbf16, #tpu.memory_space<vmem>>, vector<1x64x128xbf16>
    %17 = vector.shape_cast %16 : vector<1x64x128xbf16> to vector<64x128xbf16>
    %c2_14 = arith.constant 2 : index
    %c0_15 = arith.constant 0 : index
    %c0_16 = arith.constant 0 : index
    %18 = vector.load %arg3[%c2_14, %c0_15, %c0_16] : memref<9x64x128xbf16, #tpu.memory_space<vmem>>, vector<1x64x128xbf16>
    %19 = vector.shape_cast %18 : vector<1x64x128xbf16> to vector<64x128xbf16>
    %c3_17 = arith.constant 3 : index
    %c0_18 = arith.constant 0 : index
    %c0_19 = arith.constant 0 : index
    %20 = vector.load %arg3[%c3_17, %c0_18, %c0_19] : memref<9x64x128xbf16, #tpu.memory_space<vmem>>, vector<1x64x128xbf16>
    %21 = vector.shape_cast %20 : vector<1x64x128xbf16> to vector<64x128xbf16>
    %c4 = arith.constant 4 : index
    %c0_20 = arith.constant 0 : index
    %c0_21 = arith.constant 0 : index
    %22 = vector.load %arg3[%c4, %c0_20, %c0_21] : memref<9x64x128xbf16, #tpu.memory_space<vmem>>, vector<1x64x128xbf16>
    %23 = vector.shape_cast %22 : vector<1x64x128xbf16> to vector<64x128xbf16>
    %c5 = arith.constant 5 : index
    %c0_22 = arith.constant 0 : index
    %c0_23 = arith.constant 0 : index
    %24 = vector.load %arg3[%c5, %c0_22, %c0_23] : memref<9x64x128xbf16, #tpu.memory_space<vmem>>, vector<1x64x128xbf16>
    %25 = vector.shape_cast %24 : vector<1x64x128xbf16> to vector<64x128xbf16>
    %c6 = arith.constant 6 : index
    %c0_24 = arith.constant 0 : index
    %c0_25 = arith.constant 0 : index
    %26 = vector.load %arg3[%c6, %c0_24, %c0_25] : memref<9x64x128xbf16, #tpu.memory_space<vmem>>, vector<1x64x128xbf16>
    %27 = vector.shape_cast %26 : vector<1x64x128xbf16> to vector<64x128xbf16>
    %c7 = arith.constant 7 : index
    %c0_26 = arith.constant 0 : index
    %c0_27 = arith.constant 0 : index
    %28 = vector.load %arg3[%c7, %c0_26, %c0_27] : memref<9x64x128xbf16, #tpu.memory_space<vmem>>, vector<1x64x128xbf16>
    %29 = vector.shape_cast %28 : vector<1x64x128xbf16> to vector<64x128xbf16>
    %c8 = arith.constant 8 : index
    %c0_28 = arith.constant 0 : index
    %c0_29 = arith.constant 0 : index
    %30 = vector.load %arg3[%c8, %c0_28, %c0_29] : memref<9x64x128xbf16, #tpu.memory_space<vmem>>, vector<1x64x128xbf16>
    %31 = vector.shape_cast %30 : vector<1x64x128xbf16> to vector<64x128xbf16>
    %c0_30 = arith.constant 0 : index
    %c0_31 = arith.constant 0 : index
    %32 = vector.load %arg4[%c0_30, %c0_31] : memref<1x128xf32, #tpu.memory_space<vmem>>, vector<1x128xf32>
    %c0_32 = arith.constant 0 : index
    %c0_33 = arith.constant 0 : index
    %33 = vector.load %arg5[%c0_32, %c0_33] : memref<1x128xf32, #tpu.memory_space<vmem>>, vector<1x128xf32>
    %c0_34 = arith.constant 0 : index
    %c0_35 = arith.constant 0 : index
    %34 = vector.load %arg6[%c0_34, %c0_35] : memref<1x128xf32, #tpu.memory_space<vmem>>, vector<1x128xf32>
    %cst = arith.constant 0.000000e+00 : f32
    %35 = vector.broadcast %cst : f32 to vector<1x128xf32>
    %36 = vector.extract_strided_slice %4 {offsets = [0, 0, 0], sizes = [1, 1, 64], strides = [1, 1, 1]} : vector<5x2x64xbf16> to vector<1x1x64xbf16>
    %37 = vector.shape_cast %36 : vector<1x1x64xbf16> to vector<1x64xbf16>
    %cst_36 = arith.constant dense<0.000000e+00> : vector<1x128xf32>
    %38 = tpu.matmul %37, %15, %cst_36 {dimension_numbers = #tpu.dot_dimension_numbers<[1], [0], [0], [1], [0, 0, 1, 1], [], []>} : vector<1x64xbf16>, vector<64x128xbf16>, vector<1x128xf32> -> vector<1x128xf32>
    %39 = arith.addf %35, %38 : vector<1x128xf32>
    %40 = vector.extract_strided_slice %7 {offsets = [0, 0, 0], sizes = [1, 1, 64], strides = [1, 1, 1]} : vector<5x2x64xbf16> to vector<1x1x64xbf16>
    %41 = vector.shape_cast %40 : vector<1x1x64xbf16> to vector<1x64xbf16>
    %cst_37 = arith.constant dense<0.000000e+00> : vector<1x128xf32>
    %42 = tpu.matmul %41, %17, %cst_37 {dimension_numbers = #tpu.dot_dimension_numbers<[1], [0], [0], [1], [0, 0, 1, 1], [], []>} : vector<1x64xbf16>, vector<64x128xbf16>, vector<1x128xf32> -> vector<1x128xf32>
    %43 = arith.addf %39, %42 : vector<1x128xf32>
    %44 = vector.extract_strided_slice %10 {offsets = [0, 0, 0], sizes = [1, 1, 64], strides = [1, 1, 1]} : vector<5x2x64xbf16> to vector<1x1x64xbf16>
    %45 = vector.shape_cast %44 : vector<1x1x64xbf16> to vector<1x64xbf16>
    %cst_38 = arith.constant dense<0.000000e+00> : vector<1x128xf32>
    %46 = tpu.matmul %45, %19, %cst_38 {dimension_numbers = #tpu.dot_dimension_numbers<[1], [0], [0], [1], [0, 0, 1, 1], [], []>} : vector<1x64xbf16>, vector<64x128xbf16>, vector<1x128xf32> -> vector<1x128xf32>
    %47 = arith.addf %43, %46 : vector<1x128xf32>
    %48 = vector.extract_strided_slice %4 {offsets = [1, 0, 0], sizes = [1, 1, 64], strides = [1, 1, 1]} : vector<5x2x64xbf16> to vector<1x1x64xbf16>
    %49 = vector.shape_cast %48 : vector<1x1x64xbf16> to vector<1x64xbf16>
    %cst_39 = arith.constant dense<0.000000e+00> : vector<1x128xf32>
    %50 = tpu.matmul %49, %21, %cst_39 {dimension_numbers = #tpu.dot_dimension_numbers<[1], [0], [0], [1], [0, 0, 1, 1], [], []>} : vector<1x64xbf16>, vector<64x128xbf16>, vector<1x128xf32> -> vector<1x128xf32>
    %51 = arith.addf %47, %50 : vector<1x128xf32>
    %52 = vector.extract_strided_slice %7 {offsets = [1, 0, 0], sizes = [1, 1, 64], strides = [1, 1, 1]} : vector<5x2x64xbf16> to vector<1x1x64xbf16>
    %53 = vector.shape_cast %52 : vector<1x1x64xbf16> to vector<1x64xbf16>
    %cst_40 = arith.constant dense<0.000000e+00> : vector<1x128xf32>
    %54 = tpu.matmul %53, %23, %cst_40 {dimension_numbers = #tpu.dot_dimension_numbers<[1], [0], [0], [1], [0, 0, 1, 1], [], []>} : vector<1x64xbf16>, vector<64x128xbf16>, vector<1x128xf32> -> vector<1x128xf32>
    %55 = arith.addf %51, %54 : vector<1x128xf32>
    %56 = vector.extract_strided_slice %10 {offsets = [1, 0, 0], sizes = [1, 1, 64], strides = [1, 1, 1]} : vector<5x2x64xbf16> to vector<1x1x64xbf16>
    %57 = vector.shape_cast %56 : vector<1x1x64xbf16> to vector<1x64xbf16>
    %cst_41 = arith.constant dense<0.000000e+00> : vector<1x128xf32>
    %58 = tpu.matmul %57, %25, %cst_41 {dimension_numbers = #tpu.dot_dimension_numbers<[1], [0], [0], [1], [0, 0, 1, 1], [], []>} : vector<1x64xbf16>, vector<64x128xbf16>, vector<1x128xf32> -> vector<1x128xf32>
    %59 = arith.addf %55, %58 : vector<1x128xf32>
    %60 = vector.extract_strided_slice %4 {offsets = [2, 0, 0], sizes = [1, 1, 64], strides = [1, 1, 1]} : vector<5x2x64xbf16> to vector<1x1x64xbf16>
    %61 = vector.shape_cast %60 : vector<1x1x64xbf16> to vector<1x64xbf16>
    %cst_42 = arith.constant dense<0.000000e+00> : vector<1x128xf32>
    %62 = tpu.matmul %61, %27, %cst_42 {dimension_numbers = #tpu.dot_dimension_numbers<[1], [0], [0], [1], [0, 0, 1, 1], [], []>} : vector<1x64xbf16>, vector<64x128xbf16>, vector<1x128xf32> -> vector<1x128xf32>
    %63 = arith.addf %59, %62 : vector<1x128xf32>
    %64 = vector.extract_strided_slice %7 {offsets = [2, 0, 0], sizes = [1, 1, 64], strides = [1, 1, 1]} : vector<5x2x64xbf16> to vector<1x1x64xbf16>
    %65 = vector.shape_cast %64 : vector<1x1x64xbf16> to vector<1x64xbf16>
    %cst_43 = arith.constant dense<0.000000e+00> : vector<1x128xf32>
    %66 = tpu.matmul %65, %29, %cst_43 {dimension_numbers = #tpu.dot_dimension_numbers<[1], [0], [0], [1], [0, 0, 1, 1], [], []>} : vector<1x64xbf16>, vector<64x128xbf16>, vector<1x128xf32> -> vector<1x128xf32>
    %67 = arith.addf %63, %66 : vector<1x128xf32>
    %68 = vector.extract_strided_slice %10 {offsets = [2, 0, 0], sizes = [1, 1, 64], strides = [1, 1, 1]} : vector<5x2x64xbf16> to vector<1x1x64xbf16>
    %69 = vector.shape_cast %68 : vector<1x1x64xbf16> to vector<1x64xbf16>
    %cst_44 = arith.constant dense<0.000000e+00> : vector<1x128xf32>
    %70 = tpu.matmul %69, %31, %cst_44 {dimension_numbers = #tpu.dot_dimension_numbers<[1], [0], [0], [1], [0, 0, 1, 1], [], []>} : vector<1x64xbf16>, vector<64x128xbf16>, vector<1x128xf32> -> vector<1x128xf32>
    %71 = arith.addf %67, %70 : vector<1x128xf32>
    %72 = arith.addf %71, %32 : vector<1x128xf32>
    %cst_45 = arith.constant 0.000000e+00 : f32
    %73 = vector.broadcast %cst_45 : f32 to vector<1x128xf32>
    %74 = arith.maximumf %72, %73 : vector<1x128xf32>
    %75 = arith.mulf %74, %33 : vector<1x128xf32>
    %76 = arith.addf %75, %34 : vector<1x128xf32>
    %cst_46 = arith.constant 0.000000e+00 : f32
    %77 = vector.broadcast %cst_46 : f32 to vector<1x128xf32>
    %78 = vector.extract_strided_slice %10 {offsets = [0, 0, 0], sizes = [1, 1, 64], strides = [1, 1, 1]} : vector<5x2x64xbf16> to vector<1x1x64xbf16>
    %79 = vector.shape_cast %78 : vector<1x1x64xbf16> to vector<1x64xbf16>
    %cst_47 = arith.constant dense<0.000000e+00> : vector<1x128xf32>
    %80 = tpu.matmul %79, %15, %cst_47 {dimension_numbers = #tpu.dot_dimension_numbers<[1], [0], [0], [1], [0, 0, 1, 1], [], []>} : vector<1x64xbf16>, vector<64x128xbf16>, vector<1x128xf32> -> vector<1x128xf32>
    %81 = arith.addf %77, %80 : vector<1x128xf32>
    %82 = vector.extract_strided_slice %13 {offsets = [0, 0, 0], sizes = [1, 1, 64], strides = [1, 1, 1]} : vector<5x2x64xbf16> to vector<1x1x64xbf16>
    %83 = vector.shape_cast %82 : vector<1x1x64xbf16> to vector<1x64xbf16>
    %cst_48 = arith.constant dense<0.000000e+00> : vector<1x128xf32>
    %84 = tpu.matmul %83, %17, %cst_48 {dimension_numbers = #tpu.dot_dimension_numbers<[1], [0], [0], [1], [0, 0, 1, 1], [], []>} : vector<1x64xbf16>, vector<64x128xbf16>, vector<1x128xf32> -> vector<1x128xf32>
    %85 = arith.addf %81, %84 : vector<1x128xf32>
    %86 = vector.extract_strided_slice %4 {offsets = [0, 1, 0], sizes = [1, 1, 64], strides = [1, 1, 1]} : vector<5x2x64xbf16> to vector<1x1x64xbf16>
    %87 = vector.shape_cast %86 : vector<1x1x64xbf16> to vector<1x64xbf16>
    %cst_49 = arith.constant dense<0.000000e+00> : vector<1x128xf32>
    %88 = tpu.matmul %87, %19, %cst_49 {dimension_numbers = #tpu.dot_dimension_numbers<[1], [0], [0], [1], [0, 0, 1, 1], [], []>} : vector<1x64xbf16>, vector<64x128xbf16>, vector<1x128xf32> -> vector<1x128xf32>
    %89 = arith.addf %85, %88 : vector<1x128xf32>
    %90 = vector.extract_strided_slice %10 {offsets = [1, 0, 0], sizes = [1, 1, 64], strides = [1, 1, 1]} : vector<5x2x64xbf16> to vector<1x1x64xbf16>
    %91 = vector.shape_cast %90 : vector<1x1x64xbf16> to vector<1x64xbf16>
    %cst_50 = arith.constant dense<0.000000e+00> : vector<1x128xf32>
    %92 = tpu.matmul %91, %21, %cst_50 {dimension_numbers = #tpu.dot_dimension_numbers<[1], [0], [0], [1], [0, 0, 1, 1], [], []>} : vector<1x64xbf16>, vector<64x128xbf16>, vector<1x128xf32> -> vector<1x128xf32>
    %93 = arith.addf %89, %92 : vector<1x128xf32>
    %94 = vector.extract_strided_slice %13 {offsets = [1, 0, 0], sizes = [1, 1, 64], strides = [1, 1, 1]} : vector<5x2x64xbf16> to vector<1x1x64xbf16>
    %95 = vector.shape_cast %94 : vector<1x1x64xbf16> to vector<1x64xbf16>
    %cst_51 = arith.constant dense<0.000000e+00> : vector<1x128xf32>
    %96 = tpu.matmul %95, %23, %cst_51 {dimension_numbers = #tpu.dot_dimension_numbers<[1], [0], [0], [1], [0, 0, 1, 1], [], []>} : vector<1x64xbf16>, vector<64x128xbf16>, vector<1x128xf32> -> vector<1x128xf32>
    %97 = arith.addf %93, %96 : vector<1x128xf32>
    %98 = vector.extract_strided_slice %4 {offsets = [1, 1, 0], sizes = [1, 1, 64], strides = [1, 1, 1]} : vector<5x2x64xbf16> to vector<1x1x64xbf16>
    %99 = vector.shape_cast %98 : vector<1x1x64xbf16> to vector<1x64xbf16>
    %cst_52 = arith.constant dense<0.000000e+00> : vector<1x128xf32>
    %100 = tpu.matmul %99, %25, %cst_52 {dimension_numbers = #tpu.dot_dimension_numbers<[1], [0], [0], [1], [0, 0, 1, 1], [], []>} : vector<1x64xbf16>, vector<64x128xbf16>, vector<1x128xf32> -> vector<1x128xf32>
    %101 = arith.addf %97, %100 : vector<1x128xf32>
    %102 = vector.extract_strided_slice %10 {offsets = [2, 0, 0], sizes = [1, 1, 64], strides = [1, 1, 1]} : vector<5x2x64xbf16> to vector<1x1x64xbf16>
    %103 = vector.shape_cast %102 : vector<1x1x64xbf16> to vector<1x64xbf16>
    %cst_53 = arith.constant dense<0.000000e+00> : vector<1x128xf32>
    %104 = tpu.matmul %103, %27, %cst_53 {dimension_numbers = #tpu.dot_dimension_numbers<[1], [0], [0], [1], [0, 0, 1, 1], [], []>} : vector<1x64xbf16>, vector<64x128xbf16>, vector<1x128xf32> -> vector<1x128xf32>
    %105 = arith.addf %101, %104 : vector<1x128xf32>
    %106 = vector.extract_strided_slice %13 {offsets = [2, 0, 0], sizes = [1, 1, 64], strides = [1, 1, 1]} : vector<5x2x64xbf16> to vector<1x1x64xbf16>
    %107 = vector.shape_cast %106 : vector<1x1x64xbf16> to vector<1x64xbf16>
    %cst_54 = arith.constant dense<0.000000e+00> : vector<1x128xf32>
    %108 = tpu.matmul %107, %29, %cst_54 {dimension_numbers = #tpu.dot_dimension_numbers<[1], [0], [0], [1], [0, 0, 1, 1], [], []>} : vector<1x64xbf16>, vector<64x128xbf16>, vector<1x128xf32> -> vector<1x128xf32>
    %109 = arith.addf %105, %108 : vector<1x128xf32>
    %110 = vector.extract_strided_slice %4 {offsets = [2, 1, 0], sizes = [1, 1, 64], strides = [1, 1, 1]} : vector<5x2x64xbf16> to vector<1x1x64xbf16>
    %111 = vector.shape_cast %110 : vector<1x1x64xbf16> to vector<1x64xbf16>
    %cst_55 = arith.constant dense<0.000000e+00> : vector<1x128xf32>
    %112 = tpu.matmul %111, %31, %cst_55 {dimension_numbers = #tpu.dot_dimension_numbers<[1], [0], [0], [1], [0, 0, 1, 1], [], []>} : vector<1x64xbf16>, vector<64x128xbf16>, vector<1x128xf32> -> vector<1x128xf32>
    %113 = arith.addf %109, %112 : vector<1x128xf32>
    %114 = arith.addf %113, %32 : vector<1x128xf32>
    %cst_56 = arith.constant 0.000000e+00 : f32
    %115 = vector.broadcast %cst_56 : f32 to vector<1x128xf32>
    %116 = arith.maximumf %114, %115 : vector<1x128xf32>
    %117 = arith.mulf %116, %33 : vector<1x128xf32>
    %118 = arith.addf %117, %34 : vector<1x128xf32>
    %119 = arith.maximumf %76, %118 : vector<1x128xf32>
    %cst_57 = arith.constant 0.000000e+00 : f32
    %120 = vector.broadcast %cst_57 : f32 to vector<1x128xf32>
    %121 = vector.extract_strided_slice %4 {offsets = [2, 0, 0], sizes = [1, 1, 64], strides = [1, 1, 1]} : vector<5x2x64xbf16> to vector<1x1x64xbf16>
    %122 = vector.shape_cast %121 : vector<1x1x64xbf16> to vector<1x64xbf16>
    %cst_58 = arith.constant dense<0.000000e+00> : vector<1x128xf32>
    %123 = tpu.matmul %122, %15, %cst_58 {dimension_numbers = #tpu.dot_dimension_numbers<[1], [0], [0], [1], [0, 0, 1, 1], [], []>} : vector<1x64xbf16>, vector<64x128xbf16>, vector<1x128xf32> -> vector<1x128xf32>
    %124 = arith.addf %120, %123 : vector<1x128xf32>
    %125 = vector.extract_strided_slice %7 {offsets = [2, 0, 0], sizes = [1, 1, 64], strides = [1, 1, 1]} : vector<5x2x64xbf16> to vector<1x1x64xbf16>
    %126 = vector.shape_cast %125 : vector<1x1x64xbf16> to vector<1x64xbf16>
    %cst_59 = arith.constant dense<0.000000e+00> : vector<1x128xf32>
    %127 = tpu.matmul %126, %17, %cst_59 {dimension_numbers = #tpu.dot_dimension_numbers<[1], [0], [0], [1], [0, 0, 1, 1], [], []>} : vector<1x64xbf16>, vector<64x128xbf16>, vector<1x128xf32> -> vector<1x128xf32>
    %128 = arith.addf %124, %127 : vector<1x128xf32>
    %129 = vector.extract_strided_slice %10 {offsets = [2, 0, 0], sizes = [1, 1, 64], strides = [1, 1, 1]} : vector<5x2x64xbf16> to vector<1x1x64xbf16>
    %130 = vector.shape_cast %129 : vector<1x1x64xbf16> to vector<1x64xbf16>
    %cst_60 = arith.constant dense<0.000000e+00> : vector<1x128xf32>
    %131 = tpu.matmul %130, %19, %cst_60 {dimension_numbers = #tpu.dot_dimension_numbers<[1], [0], [0], [1], [0, 0, 1, 1], [], []>} : vector<1x64xbf16>, vector<64x128xbf16>, vector<1x128xf32> -> vector<1x128xf32>
    %132 = arith.addf %128, %131 : vector<1x128xf32>
    %133 = vector.extract_strided_slice %4 {offsets = [3, 0, 0], sizes = [1, 1, 64], strides = [1, 1, 1]} : vector<5x2x64xbf16> to vector<1x1x64xbf16>
    %134 = vector.shape_cast %133 : vector<1x1x64xbf16> to vector<1x64xbf16>
    %cst_61 = arith.constant dense<0.000000e+00> : vector<1x128xf32>
    %135 = tpu.matmul %134, %21, %cst_61 {dimension_numbers = #tpu.dot_dimension_numbers<[1], [0], [0], [1], [0, 0, 1, 1], [], []>} : vector<1x64xbf16>, vector<64x128xbf16>, vector<1x128xf32> -> vector<1x128xf32>
    %136 = arith.addf %132, %135 : vector<1x128xf32>
    %137 = vector.extract_strided_slice %7 {offsets = [3, 0, 0], sizes = [1, 1, 64], strides = [1, 1, 1]} : vector<5x2x64xbf16> to vector<1x1x64xbf16>
    %138 = vector.shape_cast %137 : vector<1x1x64xbf16> to vector<1x64xbf16>
    %cst_62 = arith.constant dense<0.000000e+00> : vector<1x128xf32>
    %139 = tpu.matmul %138, %23, %cst_62 {dimension_numbers = #tpu.dot_dimension_numbers<[1], [0], [0], [1], [0, 0, 1, 1], [], []>} : vector<1x64xbf16>, vector<64x128xbf16>, vector<1x128xf32> -> vector<1x128xf32>
    %140 = arith.addf %136, %139 : vector<1x128xf32>
    %141 = vector.extract_strided_slice %10 {offsets = [3, 0, 0], sizes = [1, 1, 64], strides = [1, 1, 1]} : vector<5x2x64xbf16> to vector<1x1x64xbf16>
    %142 = vector.shape_cast %141 : vector<1x1x64xbf16> to vector<1x64xbf16>
    %cst_63 = arith.constant dense<0.000000e+00> : vector<1x128xf32>
    %143 = tpu.matmul %142, %25, %cst_63 {dimension_numbers = #tpu.dot_dimension_numbers<[1], [0], [0], [1], [0, 0, 1, 1], [], []>} : vector<1x64xbf16>, vector<64x128xbf16>, vector<1x128xf32> -> vector<1x128xf32>
    %144 = arith.addf %140, %143 : vector<1x128xf32>
    %145 = vector.extract_strided_slice %4 {offsets = [4, 0, 0], sizes = [1, 1, 64], strides = [1, 1, 1]} : vector<5x2x64xbf16> to vector<1x1x64xbf16>
    %146 = vector.shape_cast %145 : vector<1x1x64xbf16> to vector<1x64xbf16>
    %cst_64 = arith.constant dense<0.000000e+00> : vector<1x128xf32>
    %147 = tpu.matmul %146, %27, %cst_64 {dimension_numbers = #tpu.dot_dimension_numbers<[1], [0], [0], [1], [0, 0, 1, 1], [], []>} : vector<1x64xbf16>, vector<64x128xbf16>, vector<1x128xf32> -> vector<1x128xf32>
    %148 = arith.addf %144, %147 : vector<1x128xf32>
    %149 = vector.extract_strided_slice %7 {offsets = [4, 0, 0], sizes = [1, 1, 64], strides = [1, 1, 1]} : vector<5x2x64xbf16> to vector<1x1x64xbf16>
    %150 = vector.shape_cast %149 : vector<1x1x64xbf16> to vector<1x64xbf16>
    %cst_65 = arith.constant dense<0.000000e+00> : vector<1x128xf32>
    %151 = tpu.matmul %150, %29, %cst_65 {dimension_numbers = #tpu.dot_dimension_numbers<[1], [0], [0], [1], [0, 0, 1, 1], [], []>} : vector<1x64xbf16>, vector<64x128xbf16>, vector<1x128xf32> -> vector<1x128xf32>
    %152 = arith.addf %148, %151 : vector<1x128xf32>
    %153 = vector.extract_strided_slice %10 {offsets = [4, 0, 0], sizes = [1, 1, 64], strides = [1, 1, 1]} : vector<5x2x64xbf16> to vector<1x1x64xbf16>
    %154 = vector.shape_cast %153 : vector<1x1x64xbf16> to vector<1x64xbf16>
    %cst_66 = arith.constant dense<0.000000e+00> : vector<1x128xf32>
    %155 = tpu.matmul %154, %31, %cst_66 {dimension_numbers = #tpu.dot_dimension_numbers<[1], [0], [0], [1], [0, 0, 1, 1], [], []>} : vector<1x64xbf16>, vector<64x128xbf16>, vector<1x128xf32> -> vector<1x128xf32>
    %156 = arith.addf %152, %155 : vector<1x128xf32>
    %157 = arith.addf %156, %32 : vector<1x128xf32>
    %cst_67 = arith.constant 0.000000e+00 : f32
    %158 = vector.broadcast %cst_67 : f32 to vector<1x128xf32>
    %159 = arith.maximumf %157, %158 : vector<1x128xf32>
    %160 = arith.mulf %159, %33 : vector<1x128xf32>
    %161 = arith.addf %160, %34 : vector<1x128xf32>
    %162 = arith.maximumf %119, %161 : vector<1x128xf32>
    %cst_68 = arith.constant 0.000000e+00 : f32
    %163 = vector.broadcast %cst_68 : f32 to vector<1x128xf32>
    %164 = vector.extract_strided_slice %10 {offsets = [2, 0, 0], sizes = [1, 1, 64], strides = [1, 1, 1]} : vector<5x2x64xbf16> to vector<1x1x64xbf16>
    %165 = vector.shape_cast %164 : vector<1x1x64xbf16> to vector<1x64xbf16>
    %cst_69 = arith.constant dense<0.000000e+00> : vector<1x128xf32>
    %166 = tpu.matmul %165, %15, %cst_69 {dimension_numbers = #tpu.dot_dimension_numbers<[1], [0], [0], [1], [0, 0, 1, 1], [], []>} : vector<1x64xbf16>, vector<64x128xbf16>, vector<1x128xf32> -> vector<1x128xf32>
    %167 = arith.addf %163, %166 : vector<1x128xf32>
    %168 = vector.extract_strided_slice %13 {offsets = [2, 0, 0], sizes = [1, 1, 64], strides = [1, 1, 1]} : vector<5x2x64xbf16> to vector<1x1x64xbf16>
    %169 = vector.shape_cast %168 : vector<1x1x64xbf16> to vector<1x64xbf16>
    %cst_70 = arith.constant dense<0.000000e+00> : vector<1x128xf32>
    %170 = tpu.matmul %169, %17, %cst_70 {dimension_numbers = #tpu.dot_dimension_numbers<[1], [0], [0], [1], [0, 0, 1, 1], [], []>} : vector<1x64xbf16>, vector<64x128xbf16>, vector<1x128xf32> -> vector<1x128xf32>
    %171 = arith.addf %167, %170 : vector<1x128xf32>
    %172 = vector.extract_strided_slice %4 {offsets = [2, 1, 0], sizes = [1, 1, 64], strides = [1, 1, 1]} : vector<5x2x64xbf16> to vector<1x1x64xbf16>
    %173 = vector.shape_cast %172 : vector<1x1x64xbf16> to vector<1x64xbf16>
    %cst_71 = arith.constant dense<0.000000e+00> : vector<1x128xf32>
    %174 = tpu.matmul %173, %19, %cst_71 {dimension_numbers = #tpu.dot_dimension_numbers<[1], [0], [0], [1], [0, 0, 1, 1], [], []>} : vector<1x64xbf16>, vector<64x128xbf16>, vector<1x128xf32> -> vector<1x128xf32>
    %175 = arith.addf %171, %174 : vector<1x128xf32>
    %176 = vector.extract_strided_slice %10 {offsets = [3, 0, 0], sizes = [1, 1, 64], strides = [1, 1, 1]} : vector<5x2x64xbf16> to vector<1x1x64xbf16>
    %177 = vector.shape_cast %176 : vector<1x1x64xbf16> to vector<1x64xbf16>
    %cst_72 = arith.constant dense<0.000000e+00> : vector<1x128xf32>
    %178 = tpu.matmul %177, %21, %cst_72 {dimension_numbers = #tpu.dot_dimension_numbers<[1], [0], [0], [1], [0, 0, 1, 1], [], []>} : vector<1x64xbf16>, vector<64x128xbf16>, vector<1x128xf32> -> vector<1x128xf32>
    %179 = arith.addf %175, %178 : vector<1x128xf32>
    %180 = vector.extract_strided_slice %13 {offsets = [3, 0, 0], sizes = [1, 1, 64], strides = [1, 1, 1]} : vector<5x2x64xbf16> to vector<1x1x64xbf16>
    %181 = vector.shape_cast %180 : vector<1x1x64xbf16> to vector<1x64xbf16>
    %cst_73 = arith.constant dense<0.000000e+00> : vector<1x128xf32>
    %182 = tpu.matmul %181, %23, %cst_73 {dimension_numbers = #tpu.dot_dimension_numbers<[1], [0], [0], [1], [0, 0, 1, 1], [], []>} : vector<1x64xbf16>, vector<64x128xbf16>, vector<1x128xf32> -> vector<1x128xf32>
    %183 = arith.addf %179, %182 : vector<1x128xf32>
    %184 = vector.extract_strided_slice %4 {offsets = [3, 1, 0], sizes = [1, 1, 64], strides = [1, 1, 1]} : vector<5x2x64xbf16> to vector<1x1x64xbf16>
    %185 = vector.shape_cast %184 : vector<1x1x64xbf16> to vector<1x64xbf16>
    %cst_74 = arith.constant dense<0.000000e+00> : vector<1x128xf32>
    %186 = tpu.matmul %185, %25, %cst_74 {dimension_numbers = #tpu.dot_dimension_numbers<[1], [0], [0], [1], [0, 0, 1, 1], [], []>} : vector<1x64xbf16>, vector<64x128xbf16>, vector<1x128xf32> -> vector<1x128xf32>
    %187 = arith.addf %183, %186 : vector<1x128xf32>
    %188 = vector.extract_strided_slice %10 {offsets = [4, 0, 0], sizes = [1, 1, 64], strides = [1, 1, 1]} : vector<5x2x64xbf16> to vector<1x1x64xbf16>
    %189 = vector.shape_cast %188 : vector<1x1x64xbf16> to vector<1x64xbf16>
    %cst_75 = arith.constant dense<0.000000e+00> : vector<1x128xf32>
    %190 = tpu.matmul %189, %27, %cst_75 {dimension_numbers = #tpu.dot_dimension_numbers<[1], [0], [0], [1], [0, 0, 1, 1], [], []>} : vector<1x64xbf16>, vector<64x128xbf16>, vector<1x128xf32> -> vector<1x128xf32>
    %191 = arith.addf %187, %190 : vector<1x128xf32>
    %192 = vector.extract_strided_slice %13 {offsets = [4, 0, 0], sizes = [1, 1, 64], strides = [1, 1, 1]} : vector<5x2x64xbf16> to vector<1x1x64xbf16>
    %193 = vector.shape_cast %192 : vector<1x1x64xbf16> to vector<1x64xbf16>
    %cst_76 = arith.constant dense<0.000000e+00> : vector<1x128xf32>
    %194 = tpu.matmul %193, %29, %cst_76 {dimension_numbers = #tpu.dot_dimension_numbers<[1], [0], [0], [1], [0, 0, 1, 1], [], []>} : vector<1x64xbf16>, vector<64x128xbf16>, vector<1x128xf32> -> vector<1x128xf32>
    %195 = arith.addf %191, %194 : vector<1x128xf32>
    %196 = vector.extract_strided_slice %4 {offsets = [4, 1, 0], sizes = [1, 1, 64], strides = [1, 1, 1]} : vector<5x2x64xbf16> to vector<1x1x64xbf16>
    %197 = vector.shape_cast %196 : vector<1x1x64xbf16> to vector<1x64xbf16>
    %cst_77 = arith.constant dense<0.000000e+00> : vector<1x128xf32>
    %198 = tpu.matmul %197, %31, %cst_77 {dimension_numbers = #tpu.dot_dimension_numbers<[1], [0], [0], [1], [0, 0, 1, 1], [], []>} : vector<1x64xbf16>, vector<64x128xbf16>, vector<1x128xf32> -> vector<1x128xf32>
    %199 = arith.addf %195, %198 : vector<1x128xf32>
    %200 = arith.addf %199, %32 : vector<1x128xf32>
    %cst_78 = arith.constant 0.000000e+00 : f32
    %201 = vector.broadcast %cst_78 : f32 to vector<1x128xf32>
    %202 = arith.maximumf %200, %201 : vector<1x128xf32>
    %203 = arith.mulf %202, %33 : vector<1x128xf32>
    %204 = arith.addf %203, %34 : vector<1x128xf32>
    %205 = arith.maximumf %162, %204 : vector<1x128xf32>
    %c0_79 = arith.constant 0 : index
    %c0_80 = arith.constant 0 : index
    %c0_81 = arith.constant 0 : index
    %c0_82 = arith.constant 0 : index
    %206 = vector.load %arg7[%c0_79, %c0_80, %c0_81, %c0_82] : memref<1x1x1x128xf32, #tpu.memory_space<vmem>>, vector<1x1x1x128xf32>
    %207 = vector.shape_cast %206 : vector<1x1x1x128xf32> to vector<1x128xf32>
    %208 = vector.shape_cast %205 : vector<1x128xf32> to vector<1x1x1x128xf32>
    tpu.vector_store %arg7[%c0_79, %c0_80, %c0_81, %c0_82], %208 {strides = array<i32>} : memref<1x1x1x128xf32, #tpu.memory_space<vmem>>, vector<1x1x1x128xf32>,
    return
  }
  func.func @transform_0(%arg0: i32, %arg1: i32) -> (i32, i32, i32, i32) {
    %c0_i32 = arith.constant 0 : i32
    %c0_i32_0 = arith.constant 0 : i32
    %c0_i32_1 = arith.constant 0 : i32
    %c0_i32_2 = arith.constant 0 : i32
    return %arg0, %c0_i32, %c0_i32_0, %c0_i32_1 : i32, i32, i32, i32
  }
  func.func @transform_1(%arg0: i32, %arg1: i32) -> (i32, i32, i32) {
    %c0_i32 = arith.constant 0 : i32
    %c0_i32_0 = arith.constant 0 : i32
    %c0_i32_1 = arith.constant 0 : i32
    %c0_i32_2 = arith.constant 0 : i32
    return %c0_i32, %c0_i32_0, %c0_i32_1 : i32, i32, i32
  }
  func.func @transform_2(%arg0: i32, %arg1: i32) -> (i32, i32) {
    %c0_i32 = arith.constant 0 : i32
    %c0_i32_0 = arith.constant 0 : i32
    %c0_i32_1 = arith.constant 0 : i32
    return %c0_i32, %c0_i32_0 : i32, i32
  }
  func.func @transform_3(%arg0: i32, %arg1: i32) -> (i32, i32) {
    %c0_i32 = arith.constant 0 : i32
    %c0_i32_0 = arith.constant 0 : i32
    %c0_i32_1 = arith.constant 0 : i32
    return %c0_i32, %c0_i32_0 : i32, i32
  }
  func.func @transform_4(%arg0: i32, %arg1: i32) -> (i32, i32) {
    %c0_i32 = arith.constant 0 : i32
    %c0_i32_0 = arith.constant 0 : i32
    %c0_i32_1 = arith.constant 0 : i32
    return %c0_i32, %c0_i32_0 : i32, i32
  }
  func.func @transform_5(%arg0: i32, %arg1: i32) -> (i32, i32, i32, i32) {
    %c0_i32 = arith.constant 0 : i32
    %c0_i32_0 = arith.constant 0 : i32
    %c0_i32_1 = arith.constant 0 : i32
    return %arg0, %arg1, %c0_i32, %c0_i32_0 : i32, i32, i32, i32
  }
}

module attributes {stable_mosaic.version = 11 : i64} {
  func.func @kernel(%arg0: memref<2x1x1x128xf32, #tpu.memory_space<vmem>>, %arg1: memref<9x128x128xbf16, #tpu.memory_space<vmem>>, %arg2: memref<1x128xf32, #tpu.memory_space<vmem>>, %arg3: memref<128x4xbf16, #tpu.memory_space<vmem>>, %arg4: memref<1x4xf32, #tpu.memory_space<vmem>>, %arg5: memref<2x4xf32, #tpu.memory_space<vmem>>) attributes {dimension_semantics = [], scalar_prefetch = 0 : i64, scratch_operands = 0 : i64, tpu.core_type = #tpu.core_type<tc>} {
    %c0 = arith.constant 0 : index
    %c0_0 = arith.constant 0 : index
    %c0_1 = arith.constant 0 : index
    %c0_2 = arith.constant 0 : index
    %0 = vector.load %arg0[%c0, %c0_0, %c0_1, %c0_2] : memref<2x1x1x128xf32, #tpu.memory_space<vmem>>, vector<2x1x1x128xf32>
    %cst = arith.constant 0.000000e+00 : f32
    %1 = vector.broadcast %cst : f32 to vector<2x128xf32>
    %cst_3 = arith.constant dense<0.000000e+00> : vector<2x1x128xf32>
    %2 = vector.multi_reduction <add>, %0, %cst_3 [2] : vector<2x1x1x128xf32> to vector<2x1x128xf32>
    %cst_4 = arith.constant dense<0.000000e+00> : vector<2x128xf32>
    %3 = vector.multi_reduction <add>, %2, %cst_4 [1] : vector<2x1x128xf32> to vector<2x128xf32>
    %cst_5 = arith.constant 1.000000e+00 : f32
    %4 = vector.broadcast %cst_5 : f32 to vector<2x128xf32>
    %5 = arith.mulf %3, %4 : vector<2x128xf32>
    %6 = arith.truncf %5 : vector<2x128xf32> to vector<2x128xbf16>
    %c0_6 = arith.constant 0 : index
    %c0_7 = arith.constant 0 : index
    %c0_8 = arith.constant 0 : index
    %7 = vector.load %arg1[%c0_6, %c0_7, %c0_8] : memref<9x128x128xbf16, #tpu.memory_space<vmem>>, vector<1x128x128xbf16>
    %8 = vector.shape_cast %7 : vector<1x128x128xbf16> to vector<128x128xbf16>
    %cst_9 = arith.constant dense<0.000000e+00> : vector<2x128xf32>
    %9 = tpu.matmul %6, %8, %cst_9 {dimension_numbers = #tpu.dot_dimension_numbers<[1], [0], [0], [1], [0, 0, 1, 1], [], []>} : vector<2x128xbf16>, vector<128x128xbf16>, vector<2x128xf32> -> vector<2x128xf32>
    %10 = arith.addf %1, %9 : vector<2x128xf32>
    %cst_10 = arith.constant dense<0.000000e+00> : vector<2x1x128xf32>
    %11 = vector.multi_reduction <add>, %0, %cst_10 [2] : vector<2x1x1x128xf32> to vector<2x1x128xf32>
    %cst_11 = arith.constant dense<0.000000e+00> : vector<2x128xf32>
    %12 = vector.multi_reduction <add>, %11, %cst_11 [1] : vector<2x1x128xf32> to vector<2x128xf32>
    %cst_12 = arith.constant 1.000000e+00 : f32
    %13 = vector.broadcast %cst_12 : f32 to vector<2x128xf32>
    %14 = arith.mulf %12, %13 : vector<2x128xf32>
    %15 = arith.truncf %14 : vector<2x128xf32> to vector<2x128xbf16>
    %c1 = arith.constant 1 : index
    %c0_13 = arith.constant 0 : index
    %c0_14 = arith.constant 0 : index
    %16 = vector.load %arg1[%c1, %c0_13, %c0_14] : memref<9x128x128xbf16, #tpu.memory_space<vmem>>, vector<1x128x128xbf16>
    %17 = vector.shape_cast %16 : vector<1x128x128xbf16> to vector<128x128xbf16>
    %cst_15 = arith.constant dense<0.000000e+00> : vector<2x128xf32>
    %18 = tpu.matmul %15, %17, %cst_15 {dimension_numbers = #tpu.dot_dimension_numbers<[1], [0], [0], [1], [0, 0, 1, 1], [], []>} : vector<2x128xbf16>, vector<128x128xbf16>, vector<2x128xf32> -> vector<2x128xf32>
    %19 = arith.addf %10, %18 : vector<2x128xf32>
    %cst_16 = arith.constant dense<0.000000e+00> : vector<2x1x128xf32>
    %20 = vector.multi_reduction <add>, %0, %cst_16 [2] : vector<2x1x1x128xf32> to vector<2x1x128xf32>
    %cst_17 = arith.constant dense<0.000000e+00> : vector<2x128xf32>
    %21 = vector.multi_reduction <add>, %20, %cst_17 [1] : vector<2x1x128xf32> to vector<2x128xf32>
    %cst_18 = arith.constant 1.000000e+00 : f32
    %22 = vector.broadcast %cst_18 : f32 to vector<2x128xf32>
    %23 = arith.mulf %21, %22 : vector<2x128xf32>
    %24 = arith.truncf %23 : vector<2x128xf32> to vector<2x128xbf16>
    %c2 = arith.constant 2 : index
    %c0_19 = arith.constant 0 : index
    %c0_20 = arith.constant 0 : index
    %25 = vector.load %arg1[%c2, %c0_19, %c0_20] : memref<9x128x128xbf16, #tpu.memory_space<vmem>>, vector<1x128x128xbf16>
    %26 = vector.shape_cast %25 : vector<1x128x128xbf16> to vector<128x128xbf16>
    %cst_21 = arith.constant dense<0.000000e+00> : vector<2x128xf32>
    %27 = tpu.matmul %24, %26, %cst_21 {dimension_numbers = #tpu.dot_dimension_numbers<[1], [0], [0], [1], [0, 0, 1, 1], [], []>} : vector<2x128xbf16>, vector<128x128xbf16>, vector<2x128xf32> -> vector<2x128xf32>
    %28 = arith.addf %19, %27 : vector<2x128xf32>
    %cst_22 = arith.constant dense<0.000000e+00> : vector<2x1x128xf32>
    %29 = vector.multi_reduction <add>, %0, %cst_22 [2] : vector<2x1x1x128xf32> to vector<2x1x128xf32>
    %cst_23 = arith.constant dense<0.000000e+00> : vector<2x128xf32>
    %30 = vector.multi_reduction <add>, %29, %cst_23 [1] : vector<2x1x128xf32> to vector<2x128xf32>
    %cst_24 = arith.constant 1.000000e+00 : f32
    %31 = vector.broadcast %cst_24 : f32 to vector<2x128xf32>
    %32 = arith.mulf %30, %31 : vector<2x128xf32>
    %33 = arith.truncf %32 : vector<2x128xf32> to vector<2x128xbf16>
    %c3 = arith.constant 3 : index
    %c0_25 = arith.constant 0 : index
    %c0_26 = arith.constant 0 : index
    %34 = vector.load %arg1[%c3, %c0_25, %c0_26] : memref<9x128x128xbf16, #tpu.memory_space<vmem>>, vector<1x128x128xbf16>
    %35 = vector.shape_cast %34 : vector<1x128x128xbf16> to vector<128x128xbf16>
    %cst_27 = arith.constant dense<0.000000e+00> : vector<2x128xf32>
    %36 = tpu.matmul %33, %35, %cst_27 {dimension_numbers = #tpu.dot_dimension_numbers<[1], [0], [0], [1], [0, 0, 1, 1], [], []>} : vector<2x128xbf16>, vector<128x128xbf16>, vector<2x128xf32> -> vector<2x128xf32>
    %37 = arith.addf %28, %36 : vector<2x128xf32>
    %cst_28 = arith.constant dense<0.000000e+00> : vector<2x1x128xf32>
    %38 = vector.multi_reduction <add>, %0, %cst_28 [2] : vector<2x1x1x128xf32> to vector<2x1x128xf32>
    %cst_29 = arith.constant dense<0.000000e+00> : vector<2x128xf32>
    %39 = vector.multi_reduction <add>, %38, %cst_29 [1] : vector<2x1x128xf32> to vector<2x128xf32>
    %cst_30 = arith.constant 1.000000e+00 : f32
    %40 = vector.broadcast %cst_30 : f32 to vector<2x128xf32>
    %41 = arith.mulf %39, %40 : vector<2x128xf32>
    %42 = arith.truncf %41 : vector<2x128xf32> to vector<2x128xbf16>
    %c4 = arith.constant 4 : index
    %c0_31 = arith.constant 0 : index
    %c0_32 = arith.constant 0 : index
    %43 = vector.load %arg1[%c4, %c0_31, %c0_32] : memref<9x128x128xbf16, #tpu.memory_space<vmem>>, vector<1x128x128xbf16>
    %44 = vector.shape_cast %43 : vector<1x128x128xbf16> to vector<128x128xbf16>
    %cst_33 = arith.constant dense<0.000000e+00> : vector<2x128xf32>
    %45 = tpu.matmul %42, %44, %cst_33 {dimension_numbers = #tpu.dot_dimension_numbers<[1], [0], [0], [1], [0, 0, 1, 1], [], []>} : vector<2x128xbf16>, vector<128x128xbf16>, vector<2x128xf32> -> vector<2x128xf32>
    %46 = arith.addf %37, %45 : vector<2x128xf32>
    %cst_34 = arith.constant dense<0.000000e+00> : vector<2x1x128xf32>
    %47 = vector.multi_reduction <add>, %0, %cst_34 [2] : vector<2x1x1x128xf32> to vector<2x1x128xf32>
    %cst_35 = arith.constant dense<0.000000e+00> : vector<2x128xf32>
    %48 = vector.multi_reduction <add>, %47, %cst_35 [1] : vector<2x1x128xf32> to vector<2x128xf32>
    %cst_36 = arith.constant 1.000000e+00 : f32
    %49 = vector.broadcast %cst_36 : f32 to vector<2x128xf32>
    %50 = arith.mulf %48, %49 : vector<2x128xf32>
    %51 = arith.truncf %50 : vector<2x128xf32> to vector<2x128xbf16>
    %c5 = arith.constant 5 : index
    %c0_37 = arith.constant 0 : index
    %c0_38 = arith.constant 0 : index
    %52 = vector.load %arg1[%c5, %c0_37, %c0_38] : memref<9x128x128xbf16, #tpu.memory_space<vmem>>, vector<1x128x128xbf16>
    %53 = vector.shape_cast %52 : vector<1x128x128xbf16> to vector<128x128xbf16>
    %cst_39 = arith.constant dense<0.000000e+00> : vector<2x128xf32>
    %54 = tpu.matmul %51, %53, %cst_39 {dimension_numbers = #tpu.dot_dimension_numbers<[1], [0], [0], [1], [0, 0, 1, 1], [], []>} : vector<2x128xbf16>, vector<128x128xbf16>, vector<2x128xf32> -> vector<2x128xf32>
    %55 = arith.addf %46, %54 : vector<2x128xf32>
    %cst_40 = arith.constant dense<0.000000e+00> : vector<2x1x128xf32>
    %56 = vector.multi_reduction <add>, %0, %cst_40 [2] : vector<2x1x1x128xf32> to vector<2x1x128xf32>
    %cst_41 = arith.constant dense<0.000000e+00> : vector<2x128xf32>
    %57 = vector.multi_reduction <add>, %56, %cst_41 [1] : vector<2x1x128xf32> to vector<2x128xf32>
    %cst_42 = arith.constant 1.000000e+00 : f32
    %58 = vector.broadcast %cst_42 : f32 to vector<2x128xf32>
    %59 = arith.mulf %57, %58 : vector<2x128xf32>
    %60 = arith.truncf %59 : vector<2x128xf32> to vector<2x128xbf16>
    %c6 = arith.constant 6 : index
    %c0_43 = arith.constant 0 : index
    %c0_44 = arith.constant 0 : index
    %61 = vector.load %arg1[%c6, %c0_43, %c0_44] : memref<9x128x128xbf16, #tpu.memory_space<vmem>>, vector<1x128x128xbf16>
    %62 = vector.shape_cast %61 : vector<1x128x128xbf16> to vector<128x128xbf16>
    %cst_45 = arith.constant dense<0.000000e+00> : vector<2x128xf32>
    %63 = tpu.matmul %60, %62, %cst_45 {dimension_numbers = #tpu.dot_dimension_numbers<[1], [0], [0], [1], [0, 0, 1, 1], [], []>} : vector<2x128xbf16>, vector<128x128xbf16>, vector<2x128xf32> -> vector<2x128xf32>
    %64 = arith.addf %55, %63 : vector<2x128xf32>
    %cst_46 = arith.constant dense<0.000000e+00> : vector<2x1x128xf32>
    %65 = vector.multi_reduction <add>, %0, %cst_46 [2] : vector<2x1x1x128xf32> to vector<2x1x128xf32>
    %cst_47 = arith.constant dense<0.000000e+00> : vector<2x128xf32>
    %66 = vector.multi_reduction <add>, %65, %cst_47 [1] : vector<2x1x128xf32> to vector<2x128xf32>
    %cst_48 = arith.constant 1.000000e+00 : f32
    %67 = vector.broadcast %cst_48 : f32 to vector<2x128xf32>
    %68 = arith.mulf %66, %67 : vector<2x128xf32>
    %69 = arith.truncf %68 : vector<2x128xf32> to vector<2x128xbf16>
    %c7 = arith.constant 7 : index
    %c0_49 = arith.constant 0 : index
    %c0_50 = arith.constant 0 : index
    %70 = vector.load %arg1[%c7, %c0_49, %c0_50] : memref<9x128x128xbf16, #tpu.memory_space<vmem>>, vector<1x128x128xbf16>
    %71 = vector.shape_cast %70 : vector<1x128x128xbf16> to vector<128x128xbf16>
    %cst_51 = arith.constant dense<0.000000e+00> : vector<2x128xf32>
    %72 = tpu.matmul %69, %71, %cst_51 {dimension_numbers = #tpu.dot_dimension_numbers<[1], [0], [0], [1], [0, 0, 1, 1], [], []>} : vector<2x128xbf16>, vector<128x128xbf16>, vector<2x128xf32> -> vector<2x128xf32>
    %73 = arith.addf %64, %72 : vector<2x128xf32>
    %cst_52 = arith.constant dense<0.000000e+00> : vector<2x1x128xf32>
    %74 = vector.multi_reduction <add>, %0, %cst_52 [2] : vector<2x1x1x128xf32> to vector<2x1x128xf32>
    %cst_53 = arith.constant dense<0.000000e+00> : vector<2x128xf32>
    %75 = vector.multi_reduction <add>, %74, %cst_53 [1] : vector<2x1x128xf32> to vector<2x128xf32>
    %cst_54 = arith.constant 1.000000e+00 : f32
    %76 = vector.broadcast %cst_54 : f32 to vector<2x128xf32>
    %77 = arith.mulf %75, %76 : vector<2x128xf32>
    %78 = arith.truncf %77 : vector<2x128xf32> to vector<2x128xbf16>
    %c8 = arith.constant 8 : index
    %c0_55 = arith.constant 0 : index
    %c0_56 = arith.constant 0 : index
    %79 = vector.load %arg1[%c8, %c0_55, %c0_56] : memref<9x128x128xbf16, #tpu.memory_space<vmem>>, vector<1x128x128xbf16>
    %80 = vector.shape_cast %79 : vector<1x128x128xbf16> to vector<128x128xbf16>
    %cst_57 = arith.constant dense<0.000000e+00> : vector<2x128xf32>
    %81 = tpu.matmul %78, %80, %cst_57 {dimension_numbers = #tpu.dot_dimension_numbers<[1], [0], [0], [1], [0, 0, 1, 1], [], []>} : vector<2x128xbf16>, vector<128x128xbf16>, vector<2x128xf32> -> vector<2x128xf32>
    %82 = arith.addf %73, %81 : vector<2x128xf32>
    %c0_58 = arith.constant 0 : index
    %c0_59 = arith.constant 0 : index
    %83 = vector.load %arg2[%c0_58, %c0_59] : memref<1x128xf32, #tpu.memory_space<vmem>>, vector<1x128xf32>
    %84 = vector.broadcast %83 : vector<1x128xf32> to vector<2x128xf32>
    %85 = arith.addf %82, %84 : vector<2x128xf32>
    %cst_60 = arith.constant 0.000000e+00 : f32
    %86 = vector.broadcast %cst_60 : f32 to vector<2x128xf32>
    %87 = arith.maximumf %85, %86 : vector<2x128xf32>
    %88 = arith.truncf %87 : vector<2x128xf32> to vector<2x128xbf16>
    %c0_61 = arith.constant 0 : index
    %c0_62 = arith.constant 0 : index
    %89 = vector.load %arg3[%c0_61, %c0_62] : memref<128x4xbf16, #tpu.memory_space<vmem>>, vector<128x4xbf16>
    %cst_63 = arith.constant dense<0.000000e+00> : vector<2x4xf32>
    %90 = tpu.matmul %88, %89, %cst_63 {dimension_numbers = #tpu.dot_dimension_numbers<[1], [0], [0], [1], [0, 0, 1, 1], [], []>} : vector<2x128xbf16>, vector<128x4xbf16>, vector<2x4xf32> -> vector<2x4xf32>
    %c0_64 = arith.constant 0 : index
    %c0_65 = arith.constant 0 : index
    %91 = vector.load %arg4[%c0_64, %c0_65] : memref<1x4xf32, #tpu.memory_space<vmem>>, vector<1x4xf32>
    %92 = vector.broadcast %91 : vector<1x4xf32> to vector<2x4xf32>
    %93 = arith.addf %90, %92 : vector<2x4xf32>
    %c0_66 = arith.constant 0 : index
    %c0_67 = arith.constant 0 : index
    %94 = vector.load %arg5[%c0_66, %c0_67] : memref<2x4xf32, #tpu.memory_space<vmem>>, vector<2x4xf32>
    tpu.vector_store %arg5[%c0_66, %c0_67], %93 {strides = array<i32>} : memref<2x4xf32, #tpu.memory_space<vmem>>, vector<2x4xf32>,
    return
  }
}

</mosaic_0001>

<bundles_post_ra>
// kernel: octcnn_forward.4
= control target key start
LH: loop header
LB: loop body
LE: loop exit
PB: predicated region body
PF: predicated region fallthrough
CT: control target
= control target key end

     0   :  { %s1102_s18 = smov 0   ;;  %s1104_s19 = smov 0   ;;  %s1408_s0 = inlined_call_operand.vmem [shape: f32[8,50,13,1], index: 0, kind: input, shape index: {}]   ;;  %s1409_s1 = inlined_call_operand.vmem [shape: f32[9,1,32], index: 1, kind: input, shape index: {}]   ;;  %s1410_s2 = inlined_call_operand.vmem [shape: f32[1,32], index: 2, kind: input, shape index: {}]   ;;  %s1411_s3 = inlined_call_operand.vmem [shape: f32[1,32], index: 3, kind: input, shape index: {}]   ;;  %s1412_s4 = inlined_call_operand.vmem [shape: f32[1,32], index: 4, kind: input, shape index: {}]   ;;  %s1413_s5 = inlined_call_operand.vmem [shape: f32[2,12,12,32], index: 5, kind: output, shape index: {}]  }
   0x1   :  { %s1106_s20 = smov 0   ;;  %s1108_s21 = smov 0  }
   0x2   :  { %s1110_s22 = smov 0  }
   0x3 LB: > { %s24_s23 = sadd.s32 1, %s1061_s20  ;;  %s27_s24 = sadd.s32 1, %s1065_s21  ;;  %s1069_s22 = sphi %s1110_s22, %s15_s22   ;;  %s1065_s21 = sphi %s1108_s21, %s1417_s21   ;;  %s1061_s20 = sphi %s1106_s20, %s1416_s20   ;;  %s1057_s19 = sphi %s1104_s19, %s1415_s19   ;;  %s1053_s18 = sphi %s1102_s18, %s1414_s18  }
   0x4   : > { %p25_p0 = scmp.ge.s32.totalorder %s24_s23, 12  ;;  %p923_p1 = scmp.ge.s32.totalorder %s1069_s22, 1 }
   0x5   : > { %p203_p2 = scmp.lt.s32.totalorder %s1069_s22, 25 }
   0x6   : > { %s1419_s23 = smov (%p25_p0, %s24_s23), 0  ;;  %s1421_s24 = smov (!%p25_p0, %s27_s24), %s1065_s21 }
   0x7   : > { %p204_p3 = pnand %p923_p1, %p203_p2  ;;  %p29_p4 = scmp.ge.s32.totalorder %s1421_s24, 2 }
   0x8   : > { %s924_s25 = sshll.u32 (!%p204_p3), %s1057_s19, 2  ;;  %s985_s27 = sshll.u32 (!%p204_p3), %s1053_s18, 6 }
   0x9   : > { %s1423_s24 = smov (%p29_p4, %s1421_s24), 0  ;;  %207 = sbr.rel (%p204_p3) target bundleno = 238 (0xee), region = 40 }
   0xa   : > { %p237_p5 = scmp.lt.s32.totalorder (!%p204_p3), %s924_s25, 7  ;;  %p243_p6 = scmp.lt.s32.totalorder (!%p204_p3), %s1057_s19, 1 }
   0xb   : > { %p245_p7 = scmp.lt.s32.totalorder (!%p204_p3), %s1053_s18, 11 }
   0xe   : > { %v1071_v0 = vmov 0   ;;  %s1425_s25 = smov (!%p237_p5, %s924_s25), 7  ;;  %v1194_v57 = vld [vmem:[%s1409_s1 + $0x1] ss:$0 sm:$0xff]  ;;  %v1199_v58 = vld [vmem:[%s1409_s1] ss:$0 sm:$0xff] }
   0xf   : > { %1030 = vset.pattern.permute.xlu1 %v1071_v0  ;;  %1029 = vset.pattern.permute.xlu0 %v1071_v0  ;;  %s986_s26 = smul.u32 800, %s1425_s25  ;;  %v1204_v59 = vld [vmem:[%s1409_s1 + $0x2] ss:$0 sm:$0xff]  ;;  %vm549_vm0 = vcmask 1046528   ;;  %s1427_s19 = smov (!%p243_p6, %s1057_s19), 1  ;;  %vm820_vm1 = vcmask 257024  }
  0x10   : > { %s1429_s18 = smov (!%p245_p7, %s1053_s18), 11  ;;  %s987_s11 = smul.u32 24, %s1427_s19  ;;  %vm818_vm2 = vcmask 261120  }
  0x11   : > { %s241_s30 = scalar_lea.vmem %s1408_s0, %s986_s26  ;;  %s926_s14 = sshll.u32 %s1429_s18, 1 }
  0x12   : > { %s1141_s6 = scalar_lea.vmem %s241_s30, %s985_s27  ;;  %s249_s19 = sadd.s32 %s987_s11, %s926_s14 }
  0x13   : > { %v931_v1 = vld [vmem:[%s1141_s6 + $0x320] sm:$0xff]  ;;  %v932_v3 = vld [vmem:[%s1141_s6 + $0x328] sm:$0x1f]  ;;  %v258_v7 = vld [vmem:[%s1141_s6 + $0x18] sm:$0x1f]  ;;  %s927_s15 = sshll.u32 %s249_s19, 3 }
  0x14   : > { %v255_v2 = vld [vmem:[%s1141_s6] sm:$0xff]  ;;  %343 = vperm.xlu1 %1030, %v931_v1   ;;  %v256_v4 = vld [vmem:[%s1141_s6 + $0x8] sm:$0x1f]  ;;  %v257_v8 = vld [vmem:[%s1141_s6 + $0x10] sm:$0xff]  ;;  %s251_s17 = scalar_lea.vmem %s1413_s5, %s927_s15 }
  0x15   : > { %323 = vperm.xlu0 %1029, %v255_v2   ;;  %v943_v5 = vld [vmem:[%s1141_s6 + $0x648] sm:$0x1f]  ;;  %v942_v6 = vld [vmem:[%s1141_s6 + $0x640] sm:$0xff]  ;;  %v934_v9 = vld [vmem:[%s1141_s6 + $0x338] sm:$0x1f] }
  0x16   : > { %v933_v10 = vld [vmem:[%s1141_s6 + $0x330] sm:$0xff]  ;;  %v945_v11 = vld [vmem:[%s1141_s6 + $0x658] sm:$0x1f]  ;;  %v260_v13 = vld [vmem:[%s1141_s6 + $0x28] sm:$0x1f] }
  0x17   : > { %v944_v12 = vld [vmem:[%s1141_s6 + $0x650] sm:$0xff]  ;;  %v259_v14 = vld [vmem:[%s1141_s6 + $0x20] sm:$0xff]  ;;  %v936_v15 = vld [vmem:[%s1141_s6 + $0x348] sm:$0x1f] }
  0x18   : > { %348 = vperm.xlu1 %1030, %v932_v3   ;;  %v935_v16 = vld [vmem:[%s1141_s6 + $0x340] sm:$0xff]  ;;  %v947_v19 = vld [vmem:[%s1141_s6 + $0x668] sm:$0x1f]  ;;  %v956_v23 = vld [vmem:[%s1141_s6 + $0x978] sm:$0x1f] }
  0x19   : > { %328 = vperm.xlu0 %1029, %v256_v4   ;;  %v953_v17 = vld [vmem:[%s1141_s6 + $0x960] sm:$0xff]  ;;  %v954_v20 = vld [vmem:[%s1141_s6 + $0x968] sm:$0x1f]  ;;  %v955_v24 = vld [vmem:[%s1141_s6 + $0x970] sm:$0xff] }
  0x1a   : > { %v946_v18 = vld [vmem:[%s1141_s6 + $0x660] sm:$0xff]  ;;  %v958_v21 = vld [vmem:[%s1141_s6 + $0x988] sm:$0x1f]  ;;  %v262_v25 = vld [vmem:[%s1141_s6 + $0x38] sm:$0x1f] }
  0x1b   : > { %v957_v22 = vld [vmem:[%s1141_s6 + $0x980] sm:$0xff]  ;;  %v261_v26 = vld [vmem:[%s1141_s6 + $0x30] sm:$0xff]  ;;  %v938_v27 = vld [vmem:[%s1141_s6 + $0x358] sm:$0x1f] }
  0x1c   : > { %368 = vperm.xlu1 %1030, %v943_v5   ;;  %v937_v28 = vld [vmem:[%s1141_s6 + $0x350] sm:$0xff]  ;;  %v949_v29 = vld [vmem:[%s1141_s6 + $0x678] sm:$0x1f]  ;;  %v264_v33 = vld [vmem:[%s1141_s6 + $0x48] sm:$0x1f] }
  0x1d   : > { %363 = vperm.xlu0 %1029, %v942_v6   ;;  %v948_v30 = vld [vmem:[%s1141_s6 + $0x670] sm:$0xff]  ;;  %v960_v31 = vld [vmem:[%s1141_s6 + $0x998] sm:$0x1f]  ;;  %v263_v34 = vld [vmem:[%s1141_s6 + $0x40] sm:$0xff] }
  0x1e   : > { %v959_v32 = vld [vmem:[%s1141_s6 + $0x990] sm:$0xff]  ;;  %v940_v35 = vld [vmem:[%s1141_s6 + $0x368] sm:$0x1f]  ;;  %v939_v36 = vld [vmem:[%s1141_s6 + $0x360] sm:$0xff] }
  0x1f   : > { %v951_v37 = vld [vmem:[%s1141_s6 + $0x688] sm:$0x1f]  ;;  %v950_v38 = vld [vmem:[%s1141_s6 + $0x680] sm:$0xff] }
  0x20   : > { %388 = vperm.xlu1 %1030, %v258_v7   ;;  %v962_v39 = vld [vmem:[%s1141_s6 + $0x9a8] sm:$0x1f]  ;;  %v961_v40 = vld [vmem:[%s1141_s6 + $0x9a0] sm:$0xff] }
  0x21   : > { %383 = vperm.xlu0 %1029, %v257_v8  }
  0x24   : > { %408 = vperm.xlu1 %1030, %v934_v9   ;;  %v1221_v9 = vld [vmem:[%s1409_s1 + $0x3] ss:$0 sm:$0xff] }
  0x25   : > { %403 = vperm.xlu0 %1029, %v933_v10  }
  0x28   : > { %428 = vperm.xlu1 %1030, %v945_v11  }
  0x29   : > { %423 = vperm.xlu0 %1029, %v944_v12  }
  0x2c   : > { %448 = vperm.xlu1 %1030, %v260_v13  }
  0x2d   : > { %443 = vperm.xlu0 %1029, %v259_v14  }
  0x30   : > { %468 = vperm.xlu1 %1030, %v936_v15  }
  0x31   : > { %463 = vperm.xlu0 %1029, %v935_v16   ;;  %v1230_v16 = vld [vmem:[%s1409_s1 + $0x5] ss:$0 sm:$0xff] }
  0x34   : > { %533 = vperm.xlu1 %1030, %v953_v17  }
  0x35   : > { %483 = vperm.xlu0 %1029, %v946_v18  }
  0x38   : > { %488 = vperm.xlu1 %1030, %v947_v19  }
  0x39   : > { %538 = vperm.xlu0 %1029, %v954_v20  }
  0x3c   : > { %597 = vperm.xlu1 %1030, %v958_v21   ;;  %v1237_v21 = vld [vmem:[%s1409_s1 + $0x4] ss:$0 sm:$0xff] }
  0x3d   : > { %592 = vperm.xlu0 %1029, %v957_v22  }
  0x40   : > { %568 = vperm.xlu1 %1030, %v956_v23  }
  0x41   : > { %563 = vperm.xlu0 %1029, %v955_v24  }
  0x44   : > { %644 = vperm.xlu1 %1030, %v262_v25  }
  0x45   : > { %639 = vperm.xlu0 %1029, %v261_v26  }
  0x48   : > { %658 = vperm.xlu1 %1030, %v938_v27  }
  0x49   : > { %653 = vperm.xlu0 %1029, %v937_v28  }
  0x4c   : > { %672 = vperm.xlu1 %1030, %v949_v29  }
  0x4d   : > { %667 = vperm.xlu0 %1029, %v948_v30  }
  0x50   : > { %761 = vperm.xlu1 %1030, %v960_v31  }
  0x51   : > { %756 = vperm.xlu0 %1029, %v959_v32  }
  0x54   : > { %686 = vperm.xlu1 %1030, %v264_v33  }
  0x55   : > { %681 = vperm.xlu0 %1029, %v263_v34  }
  0x58   : > { %700 = vperm.xlu1 %1030, %v940_v35  }
  0x59   : > { %695 = vperm.xlu0 %1029, %v939_v36  }
  0x5c   : > { %714 = vperm.xlu1 %1030, %v951_v37  }
  0x5d   : > { %709 = vperm.xlu0 %1029, %v950_v38  }
  0x60   : > { %790 = vperm.xlu1 %1030, %v962_v39  }
  0x61   : > { %785 = vperm.xlu0 %1029, %v961_v40   ;;  %v1253_v40 = vld [vmem:[%s1409_s1 + $0x6] ss:$0 sm:$0xff] }
  0x8f   : > { %v344_v41 = vpop.permute.xlu1 %343 }
  0x90   : > { %v324_v42 = vpop.permute.xlu0 %323  ;;  %v357_v63 = vmul.f32 %v1194_v57, %v344_v41  ;;  %v1258_v41 = vld [vmem:[%s1409_s1 + $0x8] ss:$0 sm:$0xff] }
  0x91   : > { %v337_v0 = vmul.f32 %v1199_v58, %v324_v42  ;;  %v545_v1 = vmul.f32 %v1204_v59, %v324_v42 }
  0x93   : > { %v349_v43 = vpop.permute.xlu1 %348  ;;  %v359_v14 = vadd.f32 %v357_v63, %v337_v0  ;;  %v550_v15 = vrot.slane %v545_v1, 1 }
  0x94   : > { %v329_v44 = vpop.permute.xlu0 %328  ;;  %v358_v3 = vmul.f32 %v1194_v57, %v349_v43 }
  0x95   : > { %v546_v62 = vmul.f32 %v1204_v59, %v329_v44  ;;  %v338_v4 = vmul.f32 %v1199_v58, %v329_v44 }
  0x97   : > { %v369_v45 = vpop.permute.xlu1 %368  ;;  %v551_v7 = vrot.slane %v546_v62, 1  ;;  %v360_v18 = vadd.f32 %v358_v3, %v338_v4 }
  0x98   : > { %v364_v46 = vpop.permute.xlu0 %363  ;;  %v378_v10 = vmul.f32 %v1204_v59, %v369_v45  ;;  %v528_v11 = vmul.f32 %v1199_v58, %v369_v45 }
  0x99   : > { %v527_v8 = vmul.f32 %v1199_v58, %v364_v46  ;;  %v377_v12 = vmul.f32 %v1204_v59, %v364_v46  ;;  %v552_v25 = vsel %vm549_vm0, %v550_v15, %v551_v7  ;;  %v1294_v15 = vld [vmem:[%s1409_s1 + $0x7] ss:$0 sm:$0xff] }
  0x9a   : > { %v380_v26 = vadd.f32 %v378_v10, %v360_v18 }
  0x9b   : > { %v389_v47 = vpop.permute.xlu1 %388  ;;  %v379_v27 = vadd.f32 %v377_v12, %v359_v14 }
  0x9c   : > { %v384_v48 = vpop.permute.xlu0 %383  ;;  %v398_v19 = vmul.f32 %v1221_v9, %v389_v47  ;;  %v576_v28 = vmul.f32 %v1230_v16, %v389_v47 }
  0x9d   : > { %v397_v20 = vmul.f32 %v1221_v9, %v384_v48  ;;  %v575_v29 = vmul.f32 %v1230_v16, %v384_v48 }
  0x9e   : > { %v400_v34 = vadd.f32 %v398_v19, %v380_v26  ;;  %v580_v44 = vrot.slane %v576_v28, 1 }
  0x9f   : > { %v409_v49 = vpop.permute.xlu1 %408  ;;  %v399_v35 = vadd.f32 %v397_v20, %v379_v27  ;;  %v579_v45 = vrot.slane %v575_v29, 1 }
  0xa0   : > { %v404_v50 = vpop.permute.xlu0 %403  ;;  %v418_v30 = vmul.f32 %v1237_v21, %v409_v49 }
  0xa1   : > { %v417_v31 = vmul.f32 %v1237_v21, %v404_v50  ;;  %v581_v12 = vsel %vm549_vm0, %v579_v45, %v580_v44 }
  0xa2   : > { %v420_v48 = vadd.f32 %v418_v30, %v400_v34 }
  0xa3   : > { %v429_v51 = vpop.permute.xlu1 %428  ;;  %v419_v49 = vadd.f32 %v417_v31, %v399_v35 }
  0xa4   : > { %v424_v52 = vpop.permute.xlu0 %423  ;;  %v558_v38 = vmul.f32 %v1221_v9, %v429_v51  ;;  %v438_v46 = vmul.f32 %v1230_v16, %v429_v51 }
  0xa5   : > { %v557_v39 = vmul.f32 %v1221_v9, %v424_v52  ;;  %v437_v47 = vmul.f32 %v1230_v16, %v424_v52 }
  0xa7   : > { %v1183_v53 = vpop.permute.xlu1 %448 }
  0xa8   : > { %v1185_v54 = vpop.permute.xlu0 %443  ;;  %v458_v62 = vmul.f32 %v1253_v40, %v1183_v53  ;;  %v1268_v63 = vmul.f32 %v1258_v41, %v1183_v53  ;;  %v1272_v0 = vmul.f32 %v1204_v59, %v1183_v53  ;;  %v626_v10 = vmul.f32 %v1199_v58, %v1183_v53 }
  0xa9   : > { %v457_v51 = vmul.f32 %v1253_v40, %v1185_v54  ;;  %v739_v3 = vmul.f32 %v1204_v59, %v1185_v54 }
  0xaa   : > { %v744_v14 = vrot.slane %v1272_v0, 1 }
  0xab   : > { %v1187_v55 = vpop.permute.xlu1 %468  ;;  %v743_v53 = vrot.slane %v739_v3, 1 }
  0xac   : > { %v1189_v56 = vpop.permute.xlu0 %463  ;;  %v478_v30 = vmul.f32 %v1294_v15, %v1187_v55 }
  0xad   : > { %v629_v27 = vmul.f32 %v1194_v57, %v1189_v56  ;;  %v477_v31 = vmul.f32 %v1294_v15, %v1189_v56 }
  0xaf   : > { %v534_v60 = vpop.permute.xlu1 %533 }
  0xb0   : > { %v1206_v61 = vpop.permute.xlu0 %483  ;;  %v541_v2 = vmul.f32 %v1194_v57, %v534_v60 }
  0xb1   : > { %v633_v34 = vmul.f32 %v1204_v59, %v1206_v61 }
  0xb2   : > { %v543_v17 = vadd.f32 %v541_v2, %v527_v8  ;;  %v604_v2 = vmul.f32 %v1258_v41, %v1185_v54  ;;  %v439_v8 = vadd.f32 %v437_v47, %v419_v49 }
  0xb3   : > { %v1215_v5 = vpop.permute.xlu1 %488 }
  0xb4   : > { %v539_v6 = vpop.permute.xlu0 %538  ;;  %v555_v32 = vadd.f32 %v552_v25, %v543_v17  ;;  %v459_v18 = vadd.f32 %v457_v51, %v439_v8  ;;  %v634_v35 = vmul.f32 %v1204_v59, %v1215_v5 }
  0xb5   : > { %v542_v13 = vmul.f32 %v1194_v57, %v539_v6 }
  0xb6   : > { %v559_v60 = vadd.f32 %v557_v39, %v555_v32  ;;  %v586_v32 = vmul.f32 %v1253_v40, %v1206_v61 }
  0xb7   : > { %v544_v22 = vadd.f32 %v542_v13, %v528_v11  ;;  %v1239_v23 = vpop.permute.xlu1 %597  ;;  %v625_v11 = vmul.f32 %v1199_v58, %v1185_v54  ;;  %v609_v13 = vrot.slane %v1268_v63, 1  ;;  %v630_v54 = vmul.f32 %v1194_v57, %v1187_v55 }
  0xb8   : > { %v1241_v24 = vpop.permute.xlu0 %592  ;;  %v736_v28 = vmul.f32 %v1194_v57, %v1239_v23  ;;  %v731_v55 = vmul.f32 %v1199_v58, %v1206_v61  ;;  %v601_v59 = vmul.f32 %v1294_v15, %v1239_v23 }
  0xb9   : > { %v556_v33 = vadd.f32 %v551_v7, %v544_v22  ;;  %v440_v7 = vadd.f32 %v438_v46, %v420_v48  ;;  %v608_v22 = vrot.slane %v604_v2, 1  ;;  %v735_v29 = vmul.f32 %v1194_v57, %v1241_v24 }
  0xba   : > { %v732_v57 = vmul.f32 %v1199_v58, %v1215_v5  ;;  %v600_v47 = vmul.f32 %v1294_v15, %v1241_v24  ;;  %v497_v24 = vmul.f32 %v1258_v41, %v1206_v61 }
  0xbb   : > { %v569_v36 = vpop.permute.xlu1 %568  ;;  %v560_v50 = vadd.f32 %v558_v38, %v556_v33  ;;  %v460_v17 = vadd.f32 %v458_v62, %v440_v7  ;;  %v587_v33 = vmul.f32 %v1253_v40, %v1215_v5  ;;  %v737_v46 = vadd.f32 %v735_v29, %v731_v55 }
  0xbc   : > { %v564_v37 = vpop.permute.xlu0 %563  ;;  %v572_v42 = vmul.f32 %v1237_v21, %v569_v36  ;;  %v738_v45 = vadd.f32 %v736_v28, %v732_v57 }
  0xbd   : > { %v571_v43 = vmul.f32 %v1237_v21, %v564_v37  ;;  %v610_v37 = vsel %vm549_vm0, %v608_v22, %v609_v13  ;;  %v480_v49 = vadd.f32 %v478_v30, %v460_v17 }
  0xbe   : > { %v574_v4 = vadd.f32 %v572_v42, %v560_v50  ;;  %v745_v42 = vsel %vm549_vm0, %v743_v53, %v744_v14  ;;  %v479_v50 = vadd.f32 %v477_v31, %v459_v18 }
  0xbf   : > { %v1276_v1 = vpop.permute.xlu1 %644  ;;  %v573_v6 = vadd.f32 %v571_v43, %v559_v60  ;;  %v632_v43 = vadd.f32 %v630_v54, %v626_v10  ;;  %v748_v7 = vadd.f32 %v745_v42, %v737_v46 }
  0xc0   : > { %v1278_v52 = vpop.permute.xlu0 %639  ;;  %v585_v25 = vadd.f32 %v580_v44, %v574_v4  ;;  %v631_v44 = vadd.f32 %v629_v27, %v625_v11  ;;  %v648_v58 = vmul.f32 %v1221_v9, %v1276_v1  ;;  %v498_v4 = vmul.f32 %v1258_v41, %v1215_v5 }
  0xc1   : > { %v584_v26 = vadd.f32 %v581_v12, %v573_v6  ;;  %v647_v48 = vmul.f32 %v1221_v9, %v1278_v52  ;;  %v636_v60 = vadd.f32 %v634_v35, %v632_v43  ;;  %v749_v6 = vadd.f32 %v744_v14, %v738_v45 }
  0xc2   : > { %v589_v38 = vadd.f32 %v587_v33, %v585_v25  ;;  %v635_v62 = vadd.f32 %v633_v34, %v631_v44  ;;  %v769_v10 = vmul.f32 %v1230_v16, %v1276_v1  ;;  %v768_v12 = vmul.f32 %v1230_v16, %v1278_v52 }
  0xc3   : > { %v659_v19 = vpop.permute.xlu1 %658  ;;  %v588_v39 = vadd.f32 %v586_v32, %v584_v26  ;;  %v650_v8 = vadd.f32 %v648_v58, %v636_v60  ;;  %v499_v27 = vadd.f32 %v497_v24, %v479_v50  ;;  %v500_v28 = vadd.f32 %v498_v4, %v480_v49 }
  0xc4   : > { %v654_v20 = vpop.permute.xlu0 %653  ;;  %v603_v51 = vadd.f32 %v601_v59, %v589_v38  ;;  %v662_v3 = vmul.f32 %v1237_v21, %v659_v19  ;;  %v649_v11 = vadd.f32 %v647_v48, %v635_v62  ;;  %v773_v29 = vrot.slane %v769_v10, 1  ;;  %v981_v10 = vld [vmem:[%s1411_s3] ss:$0 sm:$0xff] }
  0xc5   : > { %v602_v2 = vadd.f32 %v600_v47, %v588_v39  ;;  %v661_v23 = vmul.f32 %v1237_v21, %v654_v20 }
  0xc6   : > { %v614_v14 = vadd.f32 %v609_v13, %v603_v51  ;;  %v664_v53 = vadd.f32 %v662_v3, %v650_v8 }
  0xc7   : > { %v673_v36 = vpop.permute.xlu1 %672  ;;  %v613_v22 = vadd.f32 %v610_v37, %v602_v2  ;;  %v663_v25 = vadd.f32 %v661_v23, %v649_v11 }
  0xc8   : > { %v668_v56 = vpop.permute.xlu0 %667  ;;  %v676_v17 = vmul.f32 %v1230_v16, %v673_v36  ;;  %v751_v18 = vmul.f32 %v1221_v9, %v673_v36 }
  0xc9   : > { %v675_v19 = vmul.f32 %v1230_v16, %v668_v56  ;;  %v750_v61 = vmul.f32 %v1221_v9, %v668_v56  ;;  %v772_v16 = vrot.slane %v768_v12, 1  ;;  %v1351_v9 = vld [vmem:[%s1410_s2] ss:$0 sm:$0xff] }
  0xca   : > { %v678_v13 = vadd.f32 %v676_v17, %v664_v53  ;;  %v753_v30 = vadd.f32 %v751_v18, %v749_v6  ;;  %v615_v35 = vadd.f32 %v1351_v9, %v613_v22  ;;  %v507_v39 = vadd.f32 %v1351_v9, %v499_v27 }
  0xcb   : > { %v762_v63 = vpop.permute.xlu1 %761  ;;  %v677_v31 = vadd.f32 %v675_v19, %v663_v25  ;;  %v752_v32 = vadd.f32 %v750_v61, %v748_v7  ;;  %v508_v42 = vadd.f32 %v1351_v9, %v500_v28  ;;  %v774_v43 = vsel %vm549_vm0, %v772_v16, %v773_v29 }
  0xcc   : > { %v757_v0 = vpop.permute.xlu0 %756  ;;  %v765_v1 = vmul.f32 %v1237_v21, %v762_v63  ;;  %v617_v63 = vmax.f32 %v615_v35, 0.0  ;;  %v509_v2 = vmax.f32 %v507_v39, 0.0 }
  0xcd   : > { %v764_v26 = vmul.f32 %v1237_v21, %v757_v0  ;;  %v616_v21 = vadd.f32 %v1351_v9, %v614_v14  ;;  %v510_v3 = vmax.f32 %v508_v42, 0.0 }
  0xce   : > { %v767_v36 = vadd.f32 %v765_v1, %v753_v30  ;;  %v619_v61 = vmul.f32 %v981_v10, %v617_v63  ;;  %v517_v53 = vmul.f32 %v981_v10, %v509_v2 }
  0xcf   : > { %v687_v20 = vpop.permute.xlu1 %686  ;;  %v766_v56 = vadd.f32 %v764_v26, %v752_v32  ;;  %v618_v62 = vmax.f32 %v616_v21, 0.0  ;;  %v518_v25 = vmul.f32 %v981_v10, %v510_v3  ;;  %v982_v26 = vld [vmem:[%s1412_s4] ss:$0 sm:$0xff] }
  0xd0   : > { %v682_v5 = vpop.permute.xlu0 %681  ;;  %v690_v52 = vmul.f32 %v1253_v40, %v687_v20  ;;  %v798_v44 = vmul.f32 %v1258_v41, %v687_v20  ;;  %v778_v0 = vadd.f32 %v773_v29, %v767_v36  ;;  %v621_v29 = vadd.f32 %v982_v26, %v619_v61 }
  0xd1   : > { %v689_v54 = vmul.f32 %v1253_v40, %v682_v5  ;;  %v797_v45 = vmul.f32 %v1258_v41, %v682_v5  ;;  %v777_v51 = vadd.f32 %v774_v43, %v766_v56  ;;  %v620_v19 = vmul.f32 %v981_v10, %v618_v62 }
  0xd2   : > { %v692_v37 = vadd.f32 %v690_v52, %v678_v13  ;;  %v802_v4 = vrot.slane %v798_v44, 1  ;;  %v525_v30 = vadd.f32 %v982_v26, %v517_v53 }
  0xd3   : > { %v701_v33 = vpop.permute.xlu1 %700  ;;  %v691_v38 = vadd.f32 %v689_v54, %v677_v31  ;;  %v801_v6 = vrot.slane %v797_v45, 1  ;;  %v622_v28 = vadd.f32 %v982_v26, %v620_v19  ;;  %v526_v31 = vadd.f32 %v982_v26, %v518_v25 }
  0xd4   : > { %v696_v34 = vpop.permute.xlu0 %695  ;;  %v704_v57 = vmul.f32 %v1294_v15, %v701_v33 }
  0xd5   : > { %v703_v55 = vmul.f32 %v1294_v15, %v696_v34  ;;  %v803_v1 = vsel %vm549_vm0, %v801_v6, %v802_v4  ;;  %v624_v35 = vmax.f32 %v526_v31, %v622_v28 }
  0xd6   : > { %v706_v46 = vadd.f32 %v704_v57, %v692_v37  ;;  %v623_v57 = vmax.f32 %v525_v30, %v621_v29 }
  0xd7   : > { %v705_v59 = vadd.f32 %v703_v55, %v691_v38  ;;  %v715_v47 = vpop.permute.xlu1 %714 }
  0xd8   : > { %v710_v58 = vpop.permute.xlu0 %709  ;;  %v718_v48 = vmul.f32 %v1258_v41, %v715_v47  ;;  %v780_v49 = vmul.f32 %v1253_v40, %v715_v47 }
  0xd9   : > { %v717_v50 = vmul.f32 %v1258_v41, %v710_v58  ;;  %v779_v60 = vmul.f32 %v1253_v40, %v710_v58 }
  0xda   : > { %v720_v23 = vadd.f32 %v718_v48, %v706_v46  ;;  %v782_v7 = vadd.f32 %v780_v49, %v778_v0 }
  0xdb   : > { %v719_v24 = vadd.f32 %v717_v50, %v705_v59  ;;  %v781_v8 = vadd.f32 %v779_v60, %v777_v51  ;;  %v791_v41 = vpop.permute.xlu1 %790 }
  0xdc   : > { %v786_v40 = vpop.permute.xlu0 %785  ;;  %v722_v11 = vadd.f32 %v1351_v9, %v720_v23  ;;  %v794_v17 = vmul.f32 %v1294_v15, %v791_v41 }
  0xdd   : > { %v721_v12 = vadd.f32 %v1351_v9, %v719_v24  ;;  %v793_v18 = vmul.f32 %v1294_v15, %v786_v40 }
  0xde   : > { %v724_v20 = vmax.f32 %v722_v11, 0.0  ;;  %v796_v14 = vadd.f32 %v794_v17, %v782_v7 }
  0xdf   : > { %v723_v5 = vmax.f32 %v721_v12, 0.0  ;;  %v795_v22 = vadd.f32 %v793_v18, %v781_v8 }
  0xe0   : > { %v726_v52 = vmul.f32 %v981_v10, %v724_v20  ;;  %v807_v27 = vadd.f32 %v802_v4, %v796_v14 }
  0xe1   : > { %v725_v54 = vmul.f32 %v981_v10, %v723_v5  ;;  %v806_v15 = vadd.f32 %v803_v1, %v795_v22 }
  0xe2   : > { %v809_v16 = vadd.f32 %v1351_v9, %v807_v27  ;;  %v728_v32 = vadd.f32 %v982_v26, %v726_v52 }
  0xe3   : > { %v808_v13 = vadd.f32 %v1351_v9, %v806_v15  ;;  %v727_v33 = vadd.f32 %v982_v26, %v725_v54 }
  0xe4   : > { %v811_v34 = vmax.f32 %v809_v16, 0.0  ;;  %v730_v56 = vmax.f32 %v624_v35, %v728_v32 }
  0xe5   : > { %v810_v21 = vmax.f32 %v808_v13, 0.0  ;;  %v729_v37 = vmax.f32 %v623_v57, %v727_v33 }
  0xe6   : > { %v813_v55 = vmul.f32 %v981_v10, %v811_v34 }
  0xe7   : > { %v812_v36 = vmul.f32 %v981_v10, %v810_v21 }
  0xe8   : > { %v815_v38 = vadd.f32 %v982_v26, %v813_v55 }
  0xe9   : > { %v814_v39 = vadd.f32 %v982_v26, %v812_v36 }
  0xea   : > { %v817_v9 = vmax.f32 %v730_v56, %v815_v38 }
  0xeb   : > { %v816_v42 = vmax.f32 %v729_v37, %v814_v39 }
  0xec   : > { %821 = vst.msk [vmem:[%s251_s17 + $0x8] sm:$0xf] %vm820_vm1, %v817_v9 }
  0xed   : > { %819 = vst.msk [vmem:[%s251_s17] sm:$0xff] %vm818_vm2, %v816_v42 }
  0xee PF: > { %s15_s22 = sadd.s32 1, %s1069_s22   ;;  %s1414_s18 = smov %s1061_s20 }
  0xef   : > { %p12_p8 = scmp.ge.s32.totalorder %s15_s22, 26   ;;  %s1415_s19 = smov %s1065_s21 }
  0xf0   : > { %s1416_s20 = smov %s1419_s23  ;;  %s1417_s21 = smov %s1423_s24 }
  0xf1   :  { %14 = sbr.rel (!%p12_p8) target bundleno = 3 (0x3), region = 82 }

// kernel: octcnn_forward.5
= control target key start
LH: loop header
LB: loop body
LE: loop exit
PB: predicated region body
PF: predicated region fallthrough
CT: control target
= control target key end

     0   :  { %s2848_s18 = smov 0   ;;  %s2850_s19 = smov 0   ;;  %s3371_s0 = inlined_call_operand.vmem [shape: bf16[8,14,4,32], index: 0, kind: input, shape index: {}]   ;;  %s3372_s1 = inlined_call_operand.vmem [shape: bf16[9,32,64], index: 1, kind: input, shape index: {}]   ;;  %s3373_s2 = inlined_call_operand.vmem [shape: f32[1,64], index: 2, kind: input, shape index: {}]   ;;  %s3374_s3 = inlined_call_operand.vmem [shape: f32[1,64], index: 3, kind: input, shape index: {}]   ;;  %s3375_s4 = inlined_call_operand.vmem [shape: f32[1,64], index: 4, kind: input, shape index: {}]   ;;  %s3376_s5 = inlined_call_operand.vmem [shape: f32[2,3,3,64], index: 5, kind: output, shape index: {}]  }
   0x1   :  { %s2852_s20 = smov 0   ;;  %s2854_s21 = smov 0  }
   0x2   :  { %s2856_s22 = smov 0  }
   0x3 LB: > { %s24_s23 = sadd.s32 1, %s2805_s20  ;;  %s27_s24 = sadd.s32 1, %s2809_s21  ;;  %s2813_s22 = sphi %s2856_s22, %s15_s22   ;;  %s2809_s21 = sphi %s2854_s21, %s3380_s21   ;;  %s2805_s20 = sphi %s2852_s20, %s3379_s20   ;;  %s2801_s19 = sphi %s2850_s19, %s3378_s19   ;;  %s2797_s18 = sphi %s2848_s18, %s3377_s18  }
   0x4   : > { %p25_p0 = scmp.ge.s32.totalorder %s24_s23, 3  ;;  %p2194_p1 = scmp.ge.s32.totalorder %s2813_s22, 1 }
   0x5   : > { %p203_p2 = scmp.lt.s32.totalorder %s2813_s22, 7 }
   0x6   : > { %s3382_s23 = smov (%p25_p0, %s24_s23), 0  ;;  %s3384_s24 = smov (!%p25_p0, %s27_s24), %s2809_s21 }
   0x7   : > { %p204_p3 = pnand %p2194_p1, %p203_p2  ;;  %p29_p4 = scmp.ge.s32.totalorder %s3384_s24, 2 }
   0x8   : > { %s2195_s6 = sshll.u32 (!%p204_p3), %s2801_s19, 2  ;;  %s2312_s10 = sshll.u32 (!%p204_p3), %s2797_s18, 3 }
   0x9   : > { %s3386_s24 = smov (%p29_p4, %s3384_s24), 0  ;;  %207 = sbr.rel (%p204_p3) target bundleno = 367 (0x16f), region = 40 }
   0xa   : > { %p236_p5 = scmp.lt.s32.totalorder (!%p204_p3), %s2195_s6, 7  ;;  %p242_p6 = scmp.lt.s32.totalorder (!%p204_p3), %s2801_s19, 1 }
   0xb   : > { %p244_p7 = scmp.lt.s32.totalorder (!%p204_p3), %s2797_s18, 2 }
   0xe   : > { %v2885_v0 = vld [vmem:[%s3372_s1 + $0x18] sm:$0xff]   ;;  %v2815_v1 = vmov 0.0   ;;  %v2892_v2 = vld [vmem:[%s3372_s1 + $0x8] sm:$0xff]   ;;  %v2898_v3 = vld [vmem:[%s3372_s1 + $0x10] sm:$0xff]   ;;  %vm2816_vm0 = vmmov 0   ;;  %s3388_s6 = smov (!%p236_p5, %s2195_s6), 7  ;;  %v942_v13 = vlaneseq }
   0xf   : > { %2424 = vmatprep.subr.bf16.mxu0 %v2815_v1  ;;  %2432 = vmatprep.subr.bf16.mxu1 %v2815_v1  ;;  %v2908_v4 = vld [vmem:[%s3372_s1] sm:$0xff]   ;;  %s2712_s9 = smul.u32 28, %s3388_s6  ;;  %v2921_v5 = vld [vmem:[%s3372_s1 + $0x28] sm:$0xff]   ;;  %vm342_vm1 = vcmask 261120   ;;  %v2929_v6 = vld [vmem:[%s3372_s1 + $0x38] sm:$0xff]   ;;  %s3390_s19 = smov (!%p242_p6, %s2801_s19), 1 }
  0x10   : > { %2425 = vmatpush3.bf16.msra.mxu0 %v2885_v0  ;;  %2428 = vmatprep.mubr.msk.bf16.mxu0 %vm2816_vm0, %v2815_v1  ;;  %v2943_v9 = vld [vmem:[%s3372_s1 + $0x20] sm:$0xff]   ;;  %v2950_v10 = vld [vmem:[%s3372_s1 + $0x30] sm:$0xff]   ;;  %v2817_v11 = vmov 1983009808   ;;  %v2961_v14 = vld [vmem:[%s3372_s1 + $0x48] sm:$0xff]   ;;  %v943_v19 = vshrl.u32 %v942_v13, 7 }
  0x11   : > { %2433 = vmatpush3.bf16.msra.mxu1 %v2892_v2  ;;  %2426 = vmatprep.subr.bf16.mxu0 %v2815_v1  ;;  %s240_s15 = scalar_lea.vmem %s3371_s0, %s2712_s9  ;;  %v940_v12 = vunpack.c.l.s4 %v2817_v11  ;;  %v2966_v15 = vld [vmem:[%s3372_s1 + $0x58] sm:$0xff]   ;;  %v2985_v20 = vld [vmem:[%s3372_s1 + $0x40] sm:$0xff]   ;;  %v2992_v21 = vld [vmem:[%s3372_s1 + $0x50] sm:$0xff]   ;;  %s3392_s18 = smov (!%p244_p7, %s2797_s18), 2  ;;  %vm2094_vm2 = vcmask 518144  }
  0x12   : > { %2434 = vmatprep.subr.bf16.mxu1 %v2815_v1  ;;  %2436 = vmatprep.mubr.msk.bf16.mxu1 %vm2816_vm0, %v2815_v1  ;;  %s2931_s25 = scalar_lea.vmem %s240_s15, %s2312_s10  ;;  %v3018_v27 = vld [vmem:[%s3372_s1 + $0x68] sm:$0xff]   ;;  %v3023_v28 = vld [vmem:[%s3372_s1 + $0x78] sm:$0xff]   ;;  %v3042_v31 = vld [vmem:[%s3372_s1 + $0x60] sm:$0xff]   ;;  %s2713_s13 = smul.u32 3, %s3390_s19 }
  0x13   : > { %v2202_v7 = vld [vmem:[%s2931_s25 + $0x1c] sm:$0x3]  ;;  %v2935_v8 = vld [vmem:[%s2931_s25] sm:$0x3]  ;;  %v2969_v16 = vld [vmem:[%s2931_s25 + $0x38] sm:$0x3]  ;;  %v941_v18 = vunpack.c.0.s8 %v940_v12 }
  0x14   : > { %2427 = vmatpush3.bf16.msra.mxu0 %v2898_v3  ;;  %v2974_v17 = vld [vmem:[%s2931_s25 + $0x2] sm:$0x3]  ;;  %v3003_v23 = vld [vmem:[%s2931_s25 + $0x6] sm:$0x3]  ;;  %v2203_v24 = vld [vmem:[%s2931_s25 + $0x1e] sm:$0x3]  ;;  %s247_s14 = sadd.s32 %s2713_s13, %s3392_s18 }
  0x15   : > { %2435 = vmatpush3.bf16.msra.mxu1 %v2908_v4  ;;  %2440 = vmatprep.subr.bf16.mxu0 %v2815_v1  ;;  %v2994_v22 = vsub.s32 %v941_v18, %v943_v19  ;;  %v3007_v25 = vld [vmem:[%s2931_s25 + $0x3a] sm:$0x3]  ;;  %v3026_v29 = vld [vmem:[%s2931_s25 + $0x8] sm:$0x3]  ;;  %v3047_v32 = vld [vmem:[%s3372_s1 + $0x70] sm:$0xff]   ;;  %s2197_s15 = sshll.u32 %s247_s14, 2 }
  0x16   : > { %2448 = vmatprep.subr.bf16.mxu1 %v2815_v1  ;;  %v3058_v33 = vld [vmem:[%s2931_s25 + $0x4] sm:$0x3]  ;;  %v3061_v34 = vld [vmem:[%s2931_s25 + $0x20] sm:$0x3]  ;;  %v3066_v35 = vld [vmem:[%s3372_s1 + $0x88] sm:$0xff]   ;;  %s249_s17 = scalar_lea.vmem %s3376_s5, %s2197_s15 }
  0x17   : > { %2429 = vmatmul.mubr.msk.bf16.vlgmr.msra.gmra.mxu0 %vm342_vm1, %v2202_v7  ;;  %v3011_v26 = vrot.slane %v3003_v23, %v2994_v22  ;;  %v3032_v30 = vrot.slane %v3026_v29, %v2994_v22  ;;  %v945_v36 = vrot.slane %v2935_v8, %v2994_v22  ;;  %v3081_v37 = vld [vmem:[%s3372_s1 + $0x80] sm:$0xff]   ;;  %v3092_v39 = vld [vmem:[%s2931_s25 + $0x3c] sm:$0x3]  ;;  %v2216_v40 = vld [vmem:[%s2931_s25 + $0x54] sm:$0x3]  ;;  %v1089_v44 = vrot.slane %v2974_v17, %v2994_v22 }
  0x18   : > { %2437 = vmatmul.mubr.msk.bf16.vlgmr.msra.gmra.mxu1 %vm342_vm1, %v2935_v8  ;;  %2441 = vmatpush3.bf16.msra.mxu0 %v2921_v5  ;;  %v2217_v46 = vld [vmem:[%s2931_s25 + $0x56] sm:$0x3]  ;;  %v1233_v49 = vrot.slane %v3058_v33, %v2994_v22  ;;  %v3163_v55 = vld [vmem:[%s2931_s25 + $0x58] sm:$0x3]  ;;  %v2205_v56 = vld [vmem:[%s2931_s25 + $0x22] sm:$0x3] }
  0x19   : > { %2449 = vmatpush3.bf16.msra.mxu1 %v2929_v6  ;;  %2442 = vmatprep.subr.bf16.mxu0 %v2815_v1  ;;  %v949_v38 = vshll.u32 %v945_v36, 16  ;;  %v947_v41 = vshrl.u32 %v945_v36, 16  ;;  %v1093_v45 = vshll.u32 %v1089_v44, 16  ;;  %v1091_v47 = vshrl.u32 %v1089_v44, 16  ;;  %v2212_v57 = vld [vmem:[%s2931_s25 + $0x3e] sm:$0x3] }
  0x1a   : > { %2450 = vmatprep.subr.bf16.mxu1 %v2815_v1  ;;  %2444 = vmatprep.mubr.msk.bf16.mxu0 %vm2816_vm0, %v2815_v1  ;;  %v1237_v51 = vshll.u32 %v1233_v49, 16  ;;  %v1235_v52 = vshrl.u32 %v1233_v49, 16  ;;  %v2206_v58 = vld [vmem:[%s2931_s25 + $0x24] sm:$0x3]  ;;  %v2213_v59 = vld [vmem:[%s2931_s25 + $0x40] sm:$0x3] }
  0x1b   : > { %2452 = vmatprep.mubr.msk.bf16.mxu1 %vm2816_vm0, %v2815_v1  ;;  %v951_v42 = vrot.slane %v949_v38, 1  ;;  %v1095_v48 = vrot.slane %v1093_v45, 1  ;;  %v1897_v60 = vshll.u32 %v3011_v26, 16  ;;  %v2219_v61 = vld [vmem:[%s2931_s25 + $0x5a] sm:$0x3]  ;;  %v1895_v62 = vshrl.u32 %v3011_v26, 16 }
  0x1c   : > { %2443 = vmatpush3.bf16.msra.mxu0 %v2943_v9  ;;  %v1239_v53 = vrot.slane %v1237_v51, 1 }
  0x1d   : > { %2451 = vmatpush3.bf16.msra.mxu1 %v2950_v10  ;;  %2456 = vmatprep.subr.bf16.mxu0 %v2815_v1  ;;  %v952_v43 = vor.u32 %v951_v42, %v947_v41  ;;  %v1096_v50 = vor.u32 %v1095_v48, %v1091_v47  ;;  %v1899_v63 = vrot.slane %v1897_v60, 1 }
  0x1e   : > { %2464 = vmatprep.subr.bf16.mxu1 %v2815_v1  ;;  %v3158_v54 = vor.u32 %v1239_v53, %v1235_v52 }
  0x1f   : > { %2445 = vmatmul.mubr.msk.bf16.vlgmr.msra.gmra.mxu0 %vm342_vm1, %v2969_v16 }
  0x20   : > { %2453 = vmatmul.mubr.msk.bf16.vlgmr.msra.gmra.mxu1 %vm342_vm1, %v2974_v17  ;;  %2457 = vmatpush3.bf16.msra.mxu0 %v2961_v14 }
  0x21   : > { %2465 = vmatpush3.bf16.msra.mxu1 %v2966_v15  ;;  %2458 = vmatprep.subr.bf16.mxu0 %v2815_v1 }
  0x22   : > { %2466 = vmatprep.subr.bf16.mxu1 %v2815_v1  ;;  %2460 = vmatprep.mubr.msk.bf16.mxu0 %vm2816_vm0, %v2815_v1 }
  0x23   : > { %2468 = vmatprep.mubr.msk.bf16.mxu1 %vm2816_vm0, %v2815_v1 }
  0x24   : > { %2459 = vmatpush3.bf16.msra.mxu0 %v2985_v20 }
  0x25   : > { %2467 = vmatpush3.bf16.msra.mxu1 %v2992_v21  ;;  %2472 = vmatprep.subr.bf16.mxu0 %v2815_v1 }
  0x26   : > { %2480 = vmatprep.subr.bf16.mxu1 %v2815_v1 }
  0x27   : > { %2461 = vmatmul.mubr.msk.bf16.vlgmr.msra.gmra.mxu0 %vm342_vm1, %v2203_v24 }
  0x28   : > { %2469 = vmatmul.mubr.msk.bf16.vlgmr.msra.gmra.mxu1 %vm342_vm1, %v3007_v25  ;;  %2473 = vmatpush3.bf16.msra.mxu0 %v3018_v27 }
  0x29   : > { %2481 = vmatpush3.bf16.msra.mxu1 %v3023_v28  ;;  %2474 = vmatprep.subr.bf16.mxu0 %v2815_v1 }
  0x2a   : > { %2482 = vmatprep.subr.bf16.mxu1 %v2815_v1  ;;  %2476 = vmatprep.mubr.msk.bf16.mxu0 %vm2816_vm0, %v2815_v1 }
  0x2b   : > { %2484 = vmatprep.mubr.msk.bf16.mxu1 %vm2816_vm0, %v2815_v1 }
  0x2c   : > { %2475 = vmatpush3.bf16.msra.mxu0 %v3042_v31 }
  0x2d   : > { %2483 = vmatpush3.bf16.msra.mxu1 %v3047_v32  ;;  %2488 = vmatprep.subr.bf16.mxu0 %v2815_v1 }
  0x2e   : > { %2496 = vmatprep.subr.bf16.mxu1 %v2815_v1 }
  0x2f   : > { %2477 = vmatmul.mubr.msk.bf16.vlgmr.msra.gmra.mxu0 %vm342_vm1, %v3058_v33 }
  0x30   : > { %2485 = vmatmul.mubr.msk.bf16.vlgmr.msra.gmra.mxu1 %vm342_vm1, %v3061_v34  ;;  %2489 = vmatpush3.bf16.msra.mxu0 %v3066_v35 }
  0x31   : > { %2497 = vmatpush3.bf16.msra.mxu1 %v2885_v0  ;;  %2490 = vmatprep.subr.bf16.mxu0 %v2815_v1 }
  0x32   : > { %2498 = vmatprep.subr.bf16.mxu1 %v2815_v1  ;;  %2492 = vmatprep.mubr.msk.bf16.mxu0 %vm2816_vm0, %v2815_v1 }
  0x33   : > { %2500 = vmatprep.mubr.msk.bf16.mxu1 %vm2816_vm0, %v2815_v1 }
  0x34   : > { %2491 = vmatpush3.bf16.msra.mxu0 %v3081_v37 }
  0x35   : > { %2499 = vmatpush3.bf16.msra.mxu1 %v2898_v3  ;;  %2504 = vmatprep.subr.bf16.mxu0 %v2815_v1 }
  0x36   : > { %2512 = vmatprep.subr.bf16.mxu1 %v2815_v1 }
  0x37   : > { %2493 = vmatmul.mubr.msk.bf16.vlgmr.msra.gmra.mxu0 %vm342_vm1, %v3092_v39 }
  0x38   : > { %2501 = vmatmul.mubr.msk.bf16.vlgmr.msra.gmra.mxu1 %vm342_vm1, %v2216_v40  ;;  %2505 = vmatpush3.bf16.msra.mxu0 %v2892_v2 }
  0x39   : > { %2513 = vmatpush3.bf16.msra.mxu1 %v2921_v5  ;;  %2506 = vmatprep.subr.bf16.mxu0 %v2815_v1 }
  0x3a   : > { %2514 = vmatprep.subr.bf16.mxu1 %v2815_v1  ;;  %2508 = vmatprep.mubr.msk.bf16.mxu0 %vm2816_vm0, %v2815_v1 }
  0x3b   : > { %2516 = vmatprep.mubr.msk.bf16.mxu1 %vm2816_vm0, %v2815_v1 }
  0x3c   : > { %2507 = vmatpush3.bf16.msra.mxu0 %v2908_v4 }
  0x3d   : > { %2515 = vmatpush3.bf16.msra.mxu1 %v2943_v9  ;;  %2520 = vmatprep.subr.bf16.mxu0 %v2815_v1 }
  0x3e   : > { %2528 = vmatprep.subr.bf16.mxu1 %v2815_v1 }
  0x3f   : > { %2509 = vmatmul.mubr.msk.bf16.vlgmr.msra.gmra.mxu0 %vm342_vm1, %v2969_v16 }
  0x40   : > { %2517 = vmatmul.mubr.msk.bf16.vlgmr.msra.gmra.mxu1 %vm342_vm1, %v952_v43  ;;  %2521 = vmatpush3.bf16.msra.mxu0 %v2929_v6 }
  0x41   : > { %2529 = vmatpush3.bf16.msra.mxu1 %v2961_v14  ;;  %2522 = vmatprep.subr.bf16.mxu0 %v2815_v1 }
  0x42   : > { %2530 = vmatprep.subr.bf16.mxu1 %v2815_v1  ;;  %2524 = vmatprep.mubr.msk.bf16.mxu0 %vm2816_vm0, %v2815_v1 }
  0x43   : > { %2532 = vmatprep.mubr.msk.bf16.mxu1 %vm2816_vm0, %v2815_v1 }
  0x44   : > { %2523 = vmatpush3.bf16.msra.mxu0 %v2950_v10 }
  0x45   : > { %2531 = vmatpush3.bf16.msra.mxu1 %v2985_v20  ;;  %2536 = vmatprep.subr.bf16.mxu0 %v2815_v1 }
  0x46   : > { %2544 = vmatprep.subr.bf16.mxu1 %v2815_v1 }
  0x47   : > { %2525 = vmatmul.mubr.msk.bf16.vlgmr.msra.gmra.mxu0 %vm342_vm1, %v3007_v25 }
  0x48   : > { %2533 = vmatmul.mubr.msk.bf16.vlgmr.msra.gmra.mxu1 %vm342_vm1, %v2217_v46  ;;  %2537 = vmatpush3.bf16.msra.mxu0 %v2966_v15 }
  0x49   : > { %2545 = vmatpush3.bf16.msra.mxu1 %v3018_v27  ;;  %2538 = vmatprep.subr.bf16.mxu0 %v2815_v1 }
  0x4a   : > { %2546 = vmatprep.subr.bf16.mxu1 %v2815_v1  ;;  %2540 = vmatprep.mubr.msk.bf16.mxu0 %vm2816_vm0, %v2815_v1 }
  0x4b   : > { %2548 = vmatprep.mubr.msk.bf16.mxu1 %vm2816_vm0, %v2815_v1 }
  0x4c   : > { %2539 = vmatpush3.bf16.msra.mxu0 %v2992_v21 }
  0x4d   : > { %2547 = vmatpush3.bf16.msra.mxu1 %v3042_v31  ;;  %2552 = vmatprep.subr.bf16.mxu0 %v2815_v1 }
  0x4e   : > { %2560 = vmatprep.subr.bf16.mxu1 %v2815_v1 }
  0x4f   : > { %2541 = vmatmul.mubr.msk.bf16.vlgmr.msra.gmra.mxu0 %vm342_vm1, %v1096_v50 }
  0x50   : > { %2549 = vmatmul.mubr.msk.bf16.vlgmr.msra.gmra.mxu1 %vm342_vm1, %v3092_v39  ;;  %2553 = vmatpush3.bf16.msra.mxu0 %v3023_v28 }
  0x51   : > { %2561 = vmatpush3.bf16.msra.mxu1 %v3066_v35  ;;  %2554 = vmatprep.subr.bf16.mxu0 %v2815_v1 }
  0x52   : > { %2562 = vmatprep.subr.bf16.mxu1 %v2815_v1  ;;  %2556 = vmatprep.mubr.msk.bf16.mxu0 %vm2816_vm0, %v2815_v1 }
  0x53   : > { %2564 = vmatprep.mubr.msk.bf16.mxu1 %vm2816_vm0, %v2815_v1 }
  0x54   : > { %2555 = vmatpush3.bf16.msra.mxu0 %v3047_v32 }
  0x55   : > { %2563 = vmatpush3.bf16.msra.mxu1 %v3081_v37  ;;  %2568 = vmatprep.subr.bf16.mxu0 %v2815_v1 }
  0x56   : > { %2576 = vmatprep.subr.bf16.mxu1 %v2815_v1 }
  0x57   : > { %2557 = vmatmul.mubr.msk.bf16.vlgmr.msra.gmra.mxu0 %vm342_vm1, %v3163_v55 }
  0x58   : > { %2565 = vmatmul.mubr.msk.bf16.vlgmr.msra.gmra.mxu1 %vm342_vm1, %v3158_v54  ;;  %2569 = vmatpush3.bf16.msra.mxu0 %v2885_v0 }
  0x59   : > { %2577 = vmatpush3.bf16.msra.mxu1 %v2892_v2  ;;  %2570 = vmatprep.subr.bf16.mxu0 %v2815_v1 }
  0x5a   : > { %2578 = vmatprep.subr.bf16.mxu1 %v2815_v1  ;;  %2572 = vmatprep.mubr.msk.bf16.mxu0 %vm2816_vm0, %v2815_v1 }
  0x5b   : > { %2580 = vmatprep.mubr.msk.bf16.mxu1 %vm2816_vm0, %v2815_v1 }
  0x5c   : > { %2571 = vmatpush3.bf16.msra.mxu0 %v2898_v3 }
  0x5d   : > { %2579 = vmatpush3.bf16.msra.mxu1 %v2908_v4  ;;  %2584 = vmatprep.subr.bf16.mxu0 %v2815_v1 }
  0x5e   : > { %2592 = vmatprep.subr.bf16.mxu1 %v2815_v1 }
  0x5f   : > { %2573 = vmatmul.mubr.msk.bf16.vlgmr.msra.gmra.mxu0 %vm342_vm1, %v3061_v34 }
  0x60   : > { %2581 = vmatmul.mubr.msk.bf16.vlgmr.msra.gmra.mxu1 %vm342_vm1, %v3058_v33  ;;  %2585 = vmatpush3.bf16.msra.mxu0 %v2921_v5 }
  0x61   : > { %2593 = vmatpush3.bf16.msra.mxu1 %v2929_v6  ;;  %2586 = vmatprep.subr.bf16.mxu0 %v2815_v1 }
  0x62   : > { %2594 = vmatprep.subr.bf16.mxu1 %v2815_v1  ;;  %2588 = vmatprep.mubr.msk.bf16.mxu0 %vm2816_vm0, %v2815_v1 }
  0x63   : > { %2596 = vmatprep.mubr.msk.bf16.mxu1 %vm2816_vm0, %v2815_v1 }
  0x64   : > { %2587 = vmatpush3.bf16.msra.mxu0 %v2943_v9 }
  0x65   : > { %2595 = vmatpush3.bf16.msra.mxu1 %v2950_v10  ;;  %2600 = vmatprep.subr.bf16.mxu0 %v2815_v1 }
  0x66   : > { %2608 = vmatprep.subr.bf16.mxu1 %v2815_v1 }
  0x67   : > { %2589 = vmatmul.mubr.msk.bf16.vlgmr.msra.gmra.mxu0 %vm342_vm1, %v3092_v39 }
  0x68   : > { %2597 = vmatmul.mubr.msk.bf16.vlgmr.msra.gmra.mxu1 %vm342_vm1, %v3003_v23  ;;  %2601 = vmatpush3.bf16.msra.mxu0 %v2961_v14 }
  0x69   : > { %2609 = vmatpush3.bf16.msra.mxu1 %v2966_v15  ;;  %2602 = vmatprep.subr.bf16.mxu0 %v2815_v1 }
  0x6a   : > { %2610 = vmatprep.subr.bf16.mxu1 %v2815_v1  ;;  %2604 = vmatprep.mubr.msk.bf16.mxu0 %vm2816_vm0, %v2815_v1 }
  0x6b   : > { %2612 = vmatprep.mubr.msk.bf16.mxu1 %vm2816_vm0, %v2815_v1 }
  0x6c   : > { %2603 = vmatpush3.bf16.msra.mxu0 %v2985_v20 }
  0x6d   : > { %2611 = vmatpush3.bf16.msra.mxu1 %v2992_v21  ;;  %2616 = vmatprep.subr.bf16.mxu0 %v2815_v1 }
  0x6e   : > { %2624 = vmatprep.subr.bf16.mxu1 %v2815_v1 }
  0x6f   : > { %2605 = vmatmul.mubr.msk.bf16.vlgmr.msra.gmra.mxu0 %vm342_vm1, %v2205_v56 }
  0x70   : > { %2613 = vmatmul.mubr.msk.bf16.vlgmr.msra.gmra.mxu1 %vm342_vm1, %v2212_v57  ;;  %2617 = vmatpush3.bf16.msra.mxu0 %v3018_v27 }
  0x71   : > { %2625 = vmatpush3.bf16.msra.mxu1 %v3023_v28  ;;  %2618 = vmatprep.subr.bf16.mxu0 %v2815_v1 }
  0x72   : > { %2626 = vmatprep.subr.bf16.mxu1 %v2815_v1  ;;  %2620 = vmatprep.mubr.msk.bf16.mxu0 %vm2816_vm0, %v2815_v1 }
  0x73   : > { %2628 = vmatprep.mubr.msk.bf16.mxu1 %vm2816_vm0, %v2815_v1 }
  0x74   : > { %2619 = vmatpush3.bf16.msra.mxu0 %v3042_v31 }
  0x75   : > { %2627 = vmatpush3.bf16.msra.mxu1 %v3047_v32  ;;  %2632 = vmatprep.subr.bf16.mxu0 %v2815_v1 }
  0x76   : > { %2640 = vmatprep.subr.bf16.mxu1 %v2815_v1 }
  0x77   : > { %2621 = vmatmul.mubr.msk.bf16.vlgmr.msra.gmra.mxu0 %vm342_vm1, %v3026_v29 }
  0x78   : > { %2629 = vmatmul.mubr.msk.bf16.vlgmr.msra.gmra.mxu1 %vm342_vm1, %v2206_v58  ;;  %2633 = vmatpush3.bf16.msra.mxu0 %v3066_v35 }
  0x79   : > { %2641 = vmatpush3.bf16.msra.mxu1 %v2885_v0  ;;  %2634 = vmatprep.subr.bf16.mxu0 %v2815_v1  ;;  %v1900_v0 = vor.u32 %v1899_v63, %v1895_v62 }
  0x7a   : > { %2642 = vmatprep.subr.bf16.mxu1 %v2815_v1  ;;  %2636 = vmatprep.mubr.msk.bf16.mxu0 %vm2816_vm0, %v2815_v1 }
  0x7b   : > { %2644 = vmatprep.mubr.msk.bf16.mxu1 %vm2816_vm0, %v2815_v1 }
  0x7c   : > { %2635 = vmatpush3.bf16.msra.mxu0 %v3081_v37 }
  0x7d   : > { %2643 = vmatpush3.bf16.msra.mxu1 %v2898_v3  ;;  %2648 = vmatprep.subr.bf16.mxu0 %v2815_v1  ;;  %v2039_v3 = vshrl.u32 %v3032_v30, 16 }
  0x7e   : > { %2656 = vmatprep.subr.bf16.mxu1 %v2815_v1 }
  0x7f   : > { %2637 = vmatmul.mubr.msk.bf16.vlgmr.msra.gmra.mxu0 %vm342_vm1, %v2213_v59 }
  0x80   : > { %2645 = vmatmul.mubr.msk.bf16.vlgmr.msra.gmra.mxu1 %vm342_vm1, %v3163_v55  ;;  %2649 = vmatpush3.bf16.msra.mxu0 %v2892_v2  ;;  %v2041_v2 = vshll.u32 %v3032_v30, 16 }
  0x81   : > { %2657 = vmatpush3.bf16.msra.mxu1 %v2921_v5  ;;  %2650 = vmatprep.subr.bf16.mxu0 %v2815_v1 }
  0x82   : > { %2658 = vmatprep.subr.bf16.mxu1 %v2815_v1  ;;  %2652 = vmatprep.mubr.msk.bf16.mxu0 %vm2816_vm0, %v2815_v1 }
  0x83   : > { %2660 = vmatprep.mubr.msk.bf16.mxu1 %vm2816_vm0, %v2815_v1 }
  0x84   : > { %2651 = vmatpush3.bf16.msra.mxu0 %v2908_v4  ;;  %v2043_v4 = vrot.slane %v2041_v2, 1 }
  0x85   : > { %2659 = vmatpush3.bf16.msra.mxu1 %v2943_v9  ;;  %2664 = vmatprep.subr.bf16.mxu0 %v2815_v1 }
  0x86   : > { %2672 = vmatprep.subr.bf16.mxu1 %v2815_v1  ;;  %v2044_v5 = vor.u32 %v2043_v4, %v2039_v3 }
  0x87   : > { %2653 = vmatmul.mubr.msk.bf16.vlgmr.msra.gmra.mxu0 %vm342_vm1, %v3092_v39 }
  0x88   : > { %2661 = vmatmul.mubr.msk.bf16.vlgmr.msra.gmra.mxu1 %vm342_vm1, %v3158_v54  ;;  %2665 = vmatpush3.bf16.msra.mxu0 %v2929_v6  ;;  %v2220_v6 = vld [vmem:[%s2931_s25 + $0x5c] sm:$0x3] }
  0x89   : > { %2673 = vmatpush3.bf16.msra.mxu1 %v2961_v14  ;;  %2666 = vmatprep.subr.bf16.mxu0 %v2815_v1 }
  0x8a   : > { %2674 = vmatprep.subr.bf16.mxu1 %v2815_v1  ;;  %2668 = vmatprep.mubr.msk.bf16.mxu0 %vm2816_vm0, %v2815_v1 }
  0x8b   : > { %2676 = vmatprep.mubr.msk.bf16.mxu1 %vm2816_vm0, %v2815_v1 }
  0x8c   : > { %2667 = vmatpush3.bf16.msra.mxu0 %v2950_v10 }
  0x8d   : > { %2675 = vmatpush3.bf16.msra.mxu1 %v2985_v20  ;;  %2680 = vmatprep.subr.bf16.mxu0 %v2815_v1 }
  0x8e   : > { %2688 = vmatprep.subr.bf16.mxu1 %v2815_v1 }
  0x8f   : > { %2669 = vmatmul.mubr.msk.bf16.vlgmr.msra.gmra.mxu0 %vm342_vm1, %v2212_v57 }
  0x90   : > { %2677 = vmatmul.mubr.msk.bf16.vlgmr.msra.gmra.mxu1 %vm342_vm1, %v2219_v61  ;;  %2681 = vmatpush3.bf16.msra.mxu0 %v2966_v15 }
  0x91   : > { %2689 = vmatpush3.bf16.msra.mxu1 %v3018_v27  ;;  %2682 = vmatprep.subr.bf16.mxu0 %v2815_v1 }
  0x92   : > { %2690 = vmatprep.subr.bf16.mxu1 %v2815_v1  ;;  %2684 = vmatprep.mubr.msk.bf16.mxu0 %vm2816_vm0, %v2815_v1 }
  0x93   : > { %2692 = vmatprep.mubr.msk.bf16.mxu1 %vm2816_vm0, %v2815_v1 }
  0x94   : > { %2683 = vmatpush3.bf16.msra.mxu0 %v2992_v21 }
  0x95   : > { %2691 = vmatpush3.bf16.msra.mxu1 %v3042_v31  ;;  %2696 = vmatprep.subr.bf16.mxu0 %v2815_v1 }
  0x96   : > { %2704 = vmatprep.subr.bf16.mxu1 %v2815_v1 }
  0x97   : > { %2685 = vmatmul.mubr.msk.bf16.vlgmr.msra.gmra.mxu0 %vm342_vm1, %v1900_v0 }
  0x98   : > { %2693 = vmatmul.mubr.msk.bf16.vlgmr.msra.gmra.mxu1 %vm342_vm1, %v2213_v59  ;;  %2697 = vmatpush3.bf16.msra.mxu0 %v3023_v28 }
  0x99   : > { %2705 = vmatpush3.bf16.msra.mxu1 %v3066_v35  ;;  %2698 = vmatprep.subr.bf16.mxu0 %v2815_v1 }
  0x9a   : > { %2706 = vmatprep.subr.bf16.mxu1 %v2815_v1  ;;  %2700 = vmatprep.mubr.msk.bf16.mxu0 %vm2816_vm0, %v2815_v1 }
  0x9b   : > { %2708 = vmatprep.mubr.msk.bf16.mxu1 %vm2816_vm0, %v2815_v1 }
  0x9c   : > { %2699 = vmatpush3.bf16.msra.mxu0 %v3047_v32 }
  0x9d   : > { %2707 = vmatpush3.bf16.msra.mxu1 %v3081_v37 }
  0x9f   : > { %2701 = vmatmul.mubr.msk.bf16.vlgmr.msra.gmra.mxu0 %vm342_vm1, %v2220_v6 }
  0xa0   : > { %2709 = vmatmul.mubr.msk.bf16.vlgmr.msra.gmra.mxu1 %vm342_vm1, %v2044_v5 }
  0xd7   : > { %v380_v7 = vpop.f32.mrf.mxu0 }
  0xd8   : > { %v435_v8 = vpop.f32.mrf.mxu1 }
  0xd9   : > { %v436_v9 = vadd.f32 %v435_v8, %v380_v7  ;;  %v2430_v10 = vpop.f32.mrf.mxu0 }
  0xda   : > { %v2438_v11 = vpop.f32.mrf.mxu1 }
  0xdb   : > { %v383_v12 = vpop.f32.mrf.mxu0 }
  0xdc   : > { %v438_v13 = vpop.f32.mrf.mxu1 }
  0xdd   : > { %v2431_v14 = vpop.f32.mrf.mxu0 }
  0xde   : > { %v2439_v15 = vpop.f32.mrf.mxu1 }
  0xdf   : > { %v490_v1 = vpop.f32.mrf.mxu0 }
  0xe0   : > { %v546_v16 = vpop.f32.mrf.mxu1  ;;  %v496_v17 = vadd.f32 %v490_v1, %v436_v9 }
  0xe1   : > { %v2446_v18 = vpop.f32.mrf.mxu0 }
  0xe2   : > { %v2454_v19 = vpop.f32.mrf.mxu1  ;;  %v552_v20 = vadd.f32 %v546_v16, %v496_v17  ;;  %v3316_v16 = vld [vmem:[%s3373_s2] ss:$0 sm:$0xff] }
  0xe3   : > { %v493_v21 = vpop.f32.mrf.mxu0 }
  0xe4   : > { %v549_v22 = vpop.f32.mrf.mxu1 }
  0xe5   : > { %v2447_v23 = vpop.f32.mrf.mxu0 }
  0xe6   : > { %v2455_v24 = vpop.f32.mrf.mxu1 }
  0xe7   : > { %v602_v25 = vpop.f32.mrf.mxu0 }
  0xe8   : > { %v658_v26 = vpop.f32.mrf.mxu1  ;;  %v608_v27 = vadd.f32 %v602_v25, %v552_v20 }
  0xe9   : > { %v2462_v28 = vpop.f32.mrf.mxu0 }
  0xea   : > { %v2470_v29 = vpop.f32.mrf.mxu1  ;;  %v664_v30 = vadd.f32 %v658_v26, %v608_v27 }
  0xeb   : > { %v605_v31 = vpop.f32.mrf.mxu0  ;;  %v3322_v29 = vld [vmem:[%s3374_s3] ss:$0 sm:$0xff] }
  0xec   : > { %v661_v32 = vpop.f32.mrf.mxu1 }
  0xed   : > { %v2463_v33 = vpop.f32.mrf.mxu0 }
  0xee   : > { %v2471_v34 = vpop.f32.mrf.mxu1 }
  0xef   : > { %v714_v35 = vpop.f32.mrf.mxu0 }
  0xf0   : > { %v770_v36 = vpop.f32.mrf.mxu1  ;;  %v720_v37 = vadd.f32 %v714_v35, %v664_v30 }
  0xf1   : > { %v2478_v38 = vpop.f32.mrf.mxu0 }
  0xf2   : > { %v2486_v39 = vpop.f32.mrf.mxu1  ;;  %v776_v40 = vadd.f32 %v770_v36, %v720_v37  ;;  %v3329_v37 = vld [vmem:[%s3375_s4] ss:$0 sm:$0xff] }
  0xf3   : > { %v717_v41 = vpop.f32.mrf.mxu0 }
  0xf4   : > { %v773_v42 = vpop.f32.mrf.mxu1 }
  0xf5   : > { %v2479_v43 = vpop.f32.mrf.mxu0 }
  0xf6   : > { %v2487_v44 = vpop.f32.mrf.mxu1 }
  0xf7   : > { %v826_v45 = vpop.f32.mrf.mxu0 }
  0xf8   : > { %v892_v46 = vpop.f32.mrf.mxu1  ;;  %v832_v47 = vadd.f32 %v826_v45, %v776_v40 }
  0xf9   : > { %v2494_v48 = vpop.f32.mrf.mxu0 }
  0xfa   : > { %v2502_v49 = vpop.f32.mrf.mxu1  ;;  %v839_v21 = vadd.f32 %v3316_v16, %v832_v47 }
  0xfb   : > { %v829_v50 = vpop.f32.mrf.mxu0 }
  0xfc   : > { %v895_v51 = vpop.f32.mrf.mxu1  ;;  %v840_v27 = vmax.f32 %v839_v21, 0.0 }
  0xfd   : > { %v2495_v52 = vpop.f32.mrf.mxu0 }
  0xfe   : > { %v2503_v53 = vpop.f32.mrf.mxu1  ;;  %v847_v35 = vmul.f32 %v3322_v29, %v840_v27 }
  0xff   : > { %v932_v54 = vpop.f32.mrf.mxu0 }
 0x100   : > { %v990_v55 = vpop.f32.mrf.mxu1  ;;  %v933_v56 = vadd.f32 %v932_v54, %v892_v46  ;;  %v3333_v43 = vadd.f32 %v3329_v37, %v847_v35 }
 0x101   : > { %v2510_v57 = vpop.f32.mrf.mxu0 }
 0x102   : > { %v2518_v58 = vpop.f32.mrf.mxu1  ;;  %v996_v59 = vadd.f32 %v990_v55, %v933_v56 }
 0x103   : > { %v935_v60 = vpop.f32.mrf.mxu0 }
 0x104   : > { %v993_v61 = vpop.f32.mrf.mxu1 }
 0x105   : > { %v2511_v62 = vpop.f32.mrf.mxu0 }
 0x106   : > { %v2519_v63 = vpop.f32.mrf.mxu1 }
 0x107   : > { %v1031_v0 = vpop.f32.mrf.mxu0 }
 0x108   : > { %v1075_v2 = vpop.f32.mrf.mxu1  ;;  %v1037_v3 = vadd.f32 %v1031_v0, %v996_v59 }
 0x109   : > { %v2526_v4 = vpop.f32.mrf.mxu0 }
 0x10a   : > { %v2534_v5 = vpop.f32.mrf.mxu1  ;;  %v1081_v6 = vadd.f32 %v1075_v2, %v1037_v3 }
 0x10b   : > { %v1034_v7 = vpop.f32.mrf.mxu0 }
 0x10c   : > { %v1078_v8 = vpop.f32.mrf.mxu1 }
 0x10d   : > { %v2527_v9 = vpop.f32.mrf.mxu0 }
 0x10e   : > { %v2535_v10 = vpop.f32.mrf.mxu1 }
 0x10f   : > { %v1134_v11 = vpop.f32.mrf.mxu0 }
 0x110   : > { %v1175_v12 = vpop.f32.mrf.mxu1  ;;  %v1140_v13 = vadd.f32 %v1134_v11, %v1081_v6 }
 0x111   : > { %v2542_v14 = vpop.f32.mrf.mxu0 }
 0x112   : > { %v2550_v15 = vpop.f32.mrf.mxu1  ;;  %v1181_v1 = vadd.f32 %v1175_v12, %v1140_v13 }
 0x113   : > { %v1137_v17 = vpop.f32.mrf.mxu0 }
 0x114   : > { %v1178_v18 = vpop.f32.mrf.mxu1 }
 0x115   : > { %v2543_v19 = vpop.f32.mrf.mxu0 }
 0x116   : > { %v2551_v20 = vpop.f32.mrf.mxu1 }
 0x117   : > { %v1219_v22 = vpop.f32.mrf.mxu0 }
 0x118   : > { %v1278_v23 = vpop.f32.mrf.mxu1  ;;  %v1225_v24 = vadd.f32 %v1219_v22, %v1181_v1 }
 0x119   : > { %v2558_v25 = vpop.f32.mrf.mxu0 }
 0x11a   : > { %v2566_v26 = vpop.f32.mrf.mxu1  ;;  %v1284_v28 = vadd.f32 %v1278_v23, %v1225_v24 }
 0x11b   : > { %v1222_v30 = vpop.f32.mrf.mxu0 }
 0x11c   : > { %v1281_v31 = vpop.f32.mrf.mxu1  ;;  %v1285_v32 = vadd.f32 %v3316_v16, %v1284_v28 }
 0x11d   : > { %v2559_v33 = vpop.f32.mrf.mxu0 }
 0x11e   : > { %v2567_v34 = vpop.f32.mrf.mxu1  ;;  %v1286_v36 = vmax.f32 %v1285_v32, 0.0 }
 0x11f   : > { %v1324_v38 = vpop.f32.mrf.mxu0 }
 0x120   : > { %v1364_v39 = vpop.f32.mrf.mxu1  ;;  %v1287_v40 = vmul.f32 %v3322_v29, %v1286_v36 }
 0x121   : > { %v2574_v41 = vpop.f32.mrf.mxu0  ;;  %v1365_v15 = vadd.f32 %v1364_v39, %v1324_v38 }
 0x122   : > { %v2582_v42 = vpop.f32.mrf.mxu1  ;;  %v3336_v44 = vadd.f32 %v3329_v37, %v1287_v40 }
 0x123   : > { %v1327_v45 = vpop.f32.mrf.mxu0 }
 0x124   : > { %v1367_v46 = vpop.f32.mrf.mxu1  ;;  %v1289_v47 = vmax.f32 %v3333_v43, %v3336_v44 }
 0x125   : > { %v2575_v48 = vpop.f32.mrf.mxu0 }
 0x126   : > { %v2583_v49 = vpop.f32.mrf.mxu1 }
 0x127   : > { %v1404_v50 = vpop.f32.mrf.mxu0 }
 0x128   : > { %v1448_v51 = vpop.f32.mrf.mxu1  ;;  %v1410_v18 = vadd.f32 %v1404_v50, %v1365_v15 }
 0x129   : > { %v2590_v52 = vpop.f32.mrf.mxu0 }
 0x12a   : > { %v2598_v53 = vpop.f32.mrf.mxu1  ;;  %v1454_v23 = vadd.f32 %v1448_v51, %v1410_v18 }
 0x12b   : > { %v1407_v54 = vpop.f32.mrf.mxu0 }
 0x12c   : > { %v1451_v55 = vpop.f32.mrf.mxu1 }
 0x12d   : > { %v2591_v56 = vpop.f32.mrf.mxu0 }
 0x12e   : > { %v2599_v57 = vpop.f32.mrf.mxu1 }
 0x12f   : > { %v1492_v58 = vpop.f32.mrf.mxu0 }
 0x130   : > { %v1536_v59 = vpop.f32.mrf.mxu1  ;;  %v1498_v26 = vadd.f32 %v1492_v58, %v1454_v23 }
 0x131   : > { %v2606_v60 = vpop.f32.mrf.mxu0 }
 0x132   : > { %v2614_v61 = vpop.f32.mrf.mxu1  ;;  %v1542_v32 = vadd.f32 %v1536_v59, %v1498_v26 }
 0x133   : > { %v1495_v62 = vpop.f32.mrf.mxu0 }
 0x134   : > { %v1539_v63 = vpop.f32.mrf.mxu1 }
 0x135   : > { %v2607_v0 = vpop.f32.mrf.mxu0 }
 0x136   : > { %v2615_v2 = vpop.f32.mrf.mxu1 }
 0x137   : > { %v1580_v3 = vpop.f32.mrf.mxu0 }
 0x138   : > { %v1624_v4 = vpop.f32.mrf.mxu1  ;;  %v1586_v36 = vadd.f32 %v1580_v3, %v1542_v32 }
 0x139   : > { %v2622_v5 = vpop.f32.mrf.mxu0 }
 0x13a   : > { %v2630_v6 = vpop.f32.mrf.mxu1  ;;  %v1630_v45 = vadd.f32 %v1624_v4, %v1586_v36 }
 0x13b   : > { %v1583_v7 = vpop.f32.mrf.mxu0 }
 0x13c   : > { %v1627_v8 = vpop.f32.mrf.mxu1 }
 0x13d   : > { %v2623_v9 = vpop.f32.mrf.mxu0 }
 0x13e   : > { %v2631_v10 = vpop.f32.mrf.mxu1 }
 0x13f   : > { %v1668_v11 = vpop.f32.mrf.mxu0 }
 0x140   : > { %v1714_v12 = vpop.f32.mrf.mxu1  ;;  %v1674_v50 = vadd.f32 %v1668_v11, %v1630_v45 }
 0x141   : > { %v2638_v13 = vpop.f32.mrf.mxu0 }
 0x142   : > { %v2646_v14 = vpop.f32.mrf.mxu1  ;;  %v1675_v56 = vadd.f32 %v3316_v16, %v1674_v50 }
 0x143   : > { %v1671_v1 = vpop.f32.mrf.mxu0 }
 0x144   : > { %v1717_v17 = vpop.f32.mrf.mxu1  ;;  %v1676_v62 = vmax.f32 %v1675_v56, 0.0 }
 0x145   : > { %v2639_v19 = vpop.f32.mrf.mxu0 }
 0x146   : > { %v2647_v20 = vpop.f32.mrf.mxu1  ;;  %v1677_v6 = vmul.f32 %v3322_v29, %v1676_v62 }
 0x147   : > { %v1754_v21 = vpop.f32.mrf.mxu0 }
 0x148   : > { %v1794_v22 = vpop.f32.mrf.mxu1  ;;  %v1755_v33 = vadd.f32 %v1754_v21, %v1714_v12  ;;  %v1678_v13 = vadd.f32 %v3329_v37, %v1677_v6 }
 0x149   : > { %v2654_v24 = vpop.f32.mrf.mxu0 }
 0x14a   : > { %v2662_v25 = vpop.f32.mrf.mxu1  ;;  %v1800_v40 = vadd.f32 %v1794_v22, %v1755_v33  ;;  %v1679_v1 = vmax.f32 %v1289_v47, %v1678_v13 }
 0x14b   : > { %v1757_v27 = vpop.f32.mrf.mxu0 }
 0x14c   : > { %v1797_v28 = vpop.f32.mrf.mxu1 }
 0x14d   : > { %v2655_v30 = vpop.f32.mrf.mxu0 }
 0x14e   : > { %v2663_v31 = vpop.f32.mrf.mxu1 }
 0x14f   : > { %v1835_v34 = vpop.f32.mrf.mxu0 }
 0x150   : > { %v1879_v35 = vpop.f32.mrf.mxu1  ;;  %v1841_v46 = vadd.f32 %v1835_v34, %v1800_v40 }
 0x151   : > { %v2670_v38 = vpop.f32.mrf.mxu0 }
 0x152   : > { %v2678_v39 = vpop.f32.mrf.mxu1  ;;  %v1885_v53 = vadd.f32 %v1879_v35, %v1841_v46 }
 0x153   : > { %v1838_v41 = vpop.f32.mrf.mxu0 }
 0x154   : > { %v1882_v42 = vpop.f32.mrf.mxu1 }
 0x155   : > { %v2671_v48 = vpop.f32.mrf.mxu0 }
 0x156   : > { %v2679_v49 = vpop.f32.mrf.mxu1 }
 0x157   : > { %v1938_v51 = vpop.f32.mrf.mxu0 }
 0x158   : > { %v1979_v52 = vpop.f32.mrf.mxu1  ;;  %v1944_v57 = vadd.f32 %v1938_v51, %v1885_v53 }
 0x159   : > { %v2686_v54 = vpop.f32.mrf.mxu0 }
 0x15a   : > { %v2694_v55 = vpop.f32.mrf.mxu1  ;;  %v1985_v63 = vadd.f32 %v1979_v52, %v1944_v57 }
 0x15b   : > { %v1941_v58 = vpop.f32.mrf.mxu0 }
 0x15c   : > { %v1982_v59 = vpop.f32.mrf.mxu1 }
 0x15d   : > { %v2687_v60 = vpop.f32.mrf.mxu0 }
 0x15e   : > { %v2695_v61 = vpop.f32.mrf.mxu1 }
 0x15f   : > { %v2023_v0 = vpop.f32.mrf.mxu0 }
 0x160   : > { %v2082_v2 = vpop.f32.mrf.mxu1  ;;  %v2029_v3 = vadd.f32 %v2023_v0, %v1985_v63 }
 0x161   : > { %v2702_v4 = vpop.f32.mrf.mxu0 }
 0x162   : > { %v2710_v5 = vpop.f32.mrf.mxu1  ;;  %v2088_v7 = vadd.f32 %v2082_v2, %v2029_v3 }
 0x163   : > { %v2026_v8 = vpop.f32.mrf.mxu0 }
 0x164   : > { %v2085_v9 = vpop.f32.mrf.mxu1  ;;  %v2089_v10 = vadd.f32 %v3316_v16, %v2088_v7 }
 0x165   : > { %v2703_v11 = vpop.f32.mrf.mxu0 }
 0x166   : > { %v2711_v12 = vpop.f32.mrf.mxu1  ;;  %v2090_v14 = vmax.f32 %v2089_v10, 0.0 }
 0x168   : > { %v2091_v15 = vmul.f32 %v3322_v29, %v2090_v14 }
 0x16a   : > { %v2092_v17 = vadd.f32 %v3329_v37, %v2091_v15 }
 0x16c   : > { %v2093_v16 = vmax.f32 %v1679_v1, %v2092_v17 }
 0x16e   : > { %2095 = vst.msk [vmem:[%s249_s17] sm:$0x7] %vm2094_vm2, %v2093_v16 }
 0x16f PF: > { %s15_s22 = sadd.s32 1, %s2813_s22   ;;  %s3377_s18 = smov %s2805_s20 }
 0x170   : > { %p12_p8 = scmp.ge.s32.totalorder %s15_s22, 8   ;;  %s3378_s19 = smov %s2809_s21 }
 0x171   : > { %s3379_s20 = smov %s3382_s23  ;;  %s3380_s21 = smov %s3386_s24 }
 0x172   :  { %14 = sbr.rel (!%p12_p8) target bundleno = 3 (0x3), region = 82 }

// kernel: octcnn_forward.6
= control target key start
LH: loop header
LB: loop body
LE: loop exit
PB: predicated region body
PF: predicated region fallthrough
CT: control target
= control target key end

     0   :  { %s3193_s18 = smov 0   ;;  %s3195_s19 = smov 0   ;;  %s3926_s0 = inlined_call_operand.vmem [shape: bf16[8,5,2,64], index: 0, kind: input, shape index: {}]   ;;  %s3927_s1 = inlined_call_operand.vmem [shape: bf16[9,64,128], index: 1, kind: input, shape index: {}]   ;;  %s3928_s2 = inlined_call_operand.vmem [shape: f32[1,128], index: 2, kind: input, shape index: {}]   ;;  %s3929_s3 = inlined_call_operand.vmem [shape: f32[1,128], index: 3, kind: input, shape index: {}]   ;;  %s3930_s4 = inlined_call_operand.vmem [shape: f32[1,128], index: 4, kind: input, shape index: {}]   ;;  %s3931_s5 = inlined_call_operand.vmem [shape: f32[2,1,1,128], index: 5, kind: output, shape index: {}]  }
   0x1   :  { %s3197_s20 = smov 0  }
   0x2 LB: > { %s27_s21 = sadd.s32 1, %s3154_s19  ;;  %p2305_p0 = scmp.ge.s32.totalorder %s3158_s20, 1  ;;  %s3158_s20 = sphi %s3197_s20, %s15_s20   ;;  %s3154_s19 = sphi %s3195_s19, %s3933_s19   ;;  %s3150_s18 = sphi %s3193_s18, %s3932_s18  }
   0x3   : > { %p29_p1 = scmp.ge.s32.totalorder %s27_s21, 2  ;;  %p202_p2 = scmp.lt.s32.totalorder %s3158_s20, 3 }
   0x5   : > { %s3935_s21 = smov (%p29_p1, %s27_s21), 0  ;;  %p203_p3 = pnand %p2305_p0, %p202_p2 }
   0x6   : > { %s2306_s28 = sshll.u32 (!%p203_p3), %s3150_s18, 2  ;;  %p237_p5 = scmp.lt.s32.totalorder (!%p203_p3), %s3150_s18, 1 }
   0x7   : > { %206 = sbr.rel (%p203_p3) target bundleno = 509 (0x1fd), region = 40  ;;  %p232_p4 = scmp.lt.s32.totalorder (!%p203_p3), %s2306_s28, 7 }
   0xc   : > { %v3216_v0 = vld [vmem:[%s3927_s1 + $0x38] sm:$0xff]   ;;  %v3160_v1 = vmov 0.0   ;;  %v3229_v3 = vld [vmem:[%s3927_s1 + $0x30] sm:$0xff]   ;;  %vm3161_vm0 = vmmov 0   ;;  %s3937_s28 = smov (!%p232_p4, %s2306_s28), 7  ;;  %v3248_v5 = vld [vmem:[%s3927_s1 + $0x28] sm:$0xff]   ;;  %v1057_v46 = vlaneseq }
   0xd   : > { %2640 = vmatprep.subr.bf16.mxu0 %v3160_v1  ;;  %2652 = vmatprep.subr.bf16.mxu1 %v3160_v1  ;;  %v3223_v2 = vld [vmem:[%s3927_s1 + $0x18] sm:$0xff]   ;;  %v3239_v4 = vld [vmem:[%s3927_s1 + $0x10] sm:$0xff]   ;;  %v3255_v6 = vld [vmem:[%s3927_s1 + $0x8] sm:$0xff]   ;;  %s3072_s10 = smul.u32 5, %s3937_s28  ;;  %vm379_vm1 = vcmask 523264   ;;  %s3939_s18 = smov (!%p237_p5, %s3150_s18), 1 }
   0xe   : > { %2641 = vmatpush3.bf16.msra.mxu0 %v3216_v0  ;;  %2648 = vmatprep.mubr.msk.bf16.mxu0 %vm3161_vm0, %v3160_v1  ;;  %v3262_v7 = vld [vmem:[%s3927_s1 + $0x20] sm:$0xff]   ;;  %v3280_v9 = vld [vmem:[%s3927_s1 + $0x58] sm:$0xff]   ;;  %v3302_v13 = vld [vmem:[%s3927_s1 + $0x50] sm:$0xff]   ;;  %v3162_v44 = vmov 1966171168   ;;  %v1058_v49 = vshrl.u32 %v1057_v46, 7  ;;  %s242_s25 = scalar_lea.vmem %s3931_s5, %s3939_s18 }
   0xf   : > { %2653 = vmatpush3.bf16.msra.mxu1 %v3223_v2  ;;  %2642 = vmatprep.subr.bf16.mxu0 %v3160_v1  ;;  %s3267_s15 = scalar_lea.vmem %s3926_s0, %s3072_s10  ;;  %v3274_v8 = vld [vmem:[%s3927_s1] sm:$0xff]   ;;  %v3292_v12 = vld [vmem:[%s3927_s1 + $0x78] sm:$0xff]   ;;  %v3309_v14 = vld [vmem:[%s3927_s1 + $0x70] sm:$0xff]   ;;  %v1055_v45 = vunpack.c.l.s4 %v3162_v44 }
  0x10   : > { %2654 = vmatprep.subr.bf16.mxu1 %v3160_v1  ;;  %2660 = vmatprep.mubr.msk.bf16.mxu1 %vm3161_vm0, %v3160_v1  ;;  %v2307_v10 = vld [vmem:[%s3267_s15 + $0x5] sm:$0x1]  ;;  %v3285_v11 = vld [vmem:[%s3267_s15] sm:$0x1]  ;;  %v3320_v15 = vld [vmem:[%s3927_s1 + $0x48] sm:$0xff]  }
  0x11   : > { %v3327_v16 = vld [vmem:[%s3927_s1 + $0x68] sm:$0xff]   ;;  %v3334_v17 = vld [vmem:[%s3927_s1 + $0x40] sm:$0xff]   ;;  %v3354_v21 = vld [vmem:[%s3927_s1 + $0x98] sm:$0xff]   ;;  %v1056_v48 = vunpack.c.0.s8 %v1055_v45 }
  0x12   : > { %2643 = vmatpush3.bf16.msra.mxu0 %v3229_v3  ;;  %v3341_v18 = vld [vmem:[%s3927_s1 + $0x60] sm:$0xff]   ;;  %v3345_v19 = vld [vmem:[%s3267_s15 + $0xa] sm:$0x1]  ;;  %v3361_v22 = vld [vmem:[%s3927_s1 + $0xb8] sm:$0xff]  }
  0x13   : > { %2655 = vmatpush3.bf16.msra.mxu1 %v3239_v4  ;;  %2644 = vmatprep.subr.bf16.mxu0 %v3160_v1  ;;  %v3348_v20 = vld [vmem:[%s3267_s15 + $0x1] sm:$0x1]  ;;  %v3372_v23 = vld [vmem:[%s3927_s1 + $0x90] sm:$0xff]   ;;  %v3390_v25 = vld [vmem:[%s3927_s1 + $0x88] sm:$0xff]   ;;  %v3541_v52 = vsub.s32 %v1056_v48, %v1058_v49 }
  0x14   : > { %2656 = vmatprep.subr.bf16.mxu1 %v3160_v1  ;;  %v3379_v24 = vld [vmem:[%s3927_s1 + $0xb0] sm:$0xff]   ;;  %v3397_v26 = vld [vmem:[%s3927_s1 + $0xa8] sm:$0xff]   ;;  %v3404_v27 = vld [vmem:[%s3927_s1 + $0x80] sm:$0xff]  }
  0x15   : > { %v3411_v28 = vld [vmem:[%s3927_s1 + $0xa0] sm:$0xff]   ;;  %v3419_v30 = vld [vmem:[%s3927_s1 + $0xd8] sm:$0xff]   ;;  %v3423_v31 = vld [vmem:[%s3267_s15 + $0xb] sm:$0x1]  ;;  %v1060_v53 = vrot.slane %v3285_v11, %v3541_v52  ;;  %v1207_v57 = vrot.slane %v3348_v20, %v3541_v52 }
  0x16   : > { %2645 = vmatpush3.bf16.msra.mxu0 %v3248_v5  ;;  %v2308_v29 = vld [vmem:[%s3267_s15 + $0x6] sm:$0x1]  ;;  %v3429_v32 = vld [vmem:[%s3927_s1 + $0xf8] sm:$0xff]   ;;  %v3439_v33 = vld [vmem:[%s3927_s1 + $0xd0] sm:$0xff]  }
  0x17   : > { %2657 = vmatpush3.bf16.msra.mxu1 %v3255_v6  ;;  %2646 = vmatprep.subr.bf16.mxu0 %v3160_v1  ;;  %v3446_v34 = vld [vmem:[%s3927_s1 + $0xf0] sm:$0xff]   ;;  %v3457_v35 = vld [vmem:[%s3927_s1 + $0xc8] sm:$0xff]   ;;  %v3471_v37 = vld [vmem:[%s3927_s1 + $0xc0] sm:$0xff]   ;;  %v1067_v54 = vrot.slane %v1060_v53, %v3541_v52  ;;  %v1214_v58 = vrot.slane %v1207_v57, %v3541_v52 }
  0x18   : > { %2658 = vmatprep.subr.bf16.mxu1 %v3160_v1  ;;  %v3464_v36 = vld [vmem:[%s3927_s1 + $0xe8] sm:$0xff]   ;;  %v3478_v38 = vld [vmem:[%s3927_s1 + $0xe0] sm:$0xff]   ;;  %v3488_v40 = vld [vmem:[%s3927_s1 + $0x118] sm:$0xff]  }
  0x19   : > { %v3483_v39 = vld [vmem:[%s3267_s15 + $0x2] sm:$0x1]  ;;  %v3492_v41 = vld [vmem:[%s3267_s15 + $0x7] sm:$0x1]  ;;  %v3504_v42 = vld [vmem:[%s3927_s1 + $0x110] sm:$0xff]   ;;  %v1069_v55 = vshrl.u32 %v1067_v54, 16 }
  0x1a   : > { %2647 = vmatpush3.bf16.msra.mxu0 %v3262_v7  ;;  %v3517_v43 = vld [vmem:[%s3927_s1 + $0x108] sm:$0xff]   ;;  %v3526_v47 = vld [vmem:[%s3927_s1 + $0x100] sm:$0xff]   ;;  %v2318_v56 = vld [vmem:[%s3267_s15 + $0x10] sm:$0x1]  ;;  %v1216_v59 = vshrl.u32 %v1214_v58, 16  ;;  %v1354_v60 = vrot.slane %v3483_v39, %v3541_v52 }
  0x1b   : > { %2659 = vmatpush3.bf16.msra.mxu1 %v3274_v8  ;;  %2664 = vmatprep.subr.bf16.mxu0 %v3160_v1  ;;  %v3533_v50 = vld [vmem:[%s3267_s15 + $0xc] sm:$0x1]  ;;  %v2317_v51 = vld [vmem:[%s3267_s15 + $0xf] sm:$0x1]  ;;  %v3644_v63 = vld [vmem:[%s3267_s15 + $0x11] sm:$0x1] }
  0x1c   : > { %2676 = vmatprep.subr.bf16.mxu1 %v3160_v1  ;;  %v3635_v61 = vrot.slane %v1354_v60, %v3541_v52 }
  0x1d   : > { %2649 = vmatmul.mubr.msk.bf16.vlgmr.msra.gmra.mxu0 %vm379_vm1, %v2307_v10  ;;  %v3697_v10 = vld [vmem:[%s3267_s15 + $0x3] sm:$0x1] }
  0x1e   : > { %2661 = vmatmul.mubr.msk.bf16.vlgmr.msra.gmra.mxu1 %vm379_vm1, %v3285_v11  ;;  %2665 = vmatpush3.bf16.msra.mxu0 %v3280_v9  ;;  %v1363_v62 = vshrl.u32 %v3635_v61, 16  ;;  %v2310_v11 = vld [vmem:[%s3267_s15 + $0x8] sm:$0x1]  ;;  %v2017_v60 = vrot.slane %v3697_v10, %v3541_v52 }
  0x1f   : > { %2677 = vmatpush3.bf16.msra.mxu1 %v3292_v12  ;;  %2666 = vmatprep.subr.bf16.mxu0 %v3160_v1 }
  0x20   : > { %2678 = vmatprep.subr.bf16.mxu1 %v3160_v1  ;;  %2672 = vmatprep.mubr.msk.bf16.mxu0 %vm3161_vm0, %v3160_v1 }
  0x21   : > { %2684 = vmatprep.mubr.msk.bf16.mxu1 %vm3161_vm0, %v3160_v1 }
  0x22   : > { %2667 = vmatpush3.bf16.msra.mxu0 %v3302_v13 }
  0x23   : > { %2679 = vmatpush3.bf16.msra.mxu1 %v3309_v14  ;;  %2668 = vmatprep.subr.bf16.mxu0 %v3160_v1 }
  0x24   : > { %2680 = vmatprep.subr.bf16.mxu1 %v3160_v1 }
  0x26   : > { %2669 = vmatpush3.bf16.msra.mxu0 %v3320_v15 }
  0x27   : > { %2681 = vmatpush3.bf16.msra.mxu1 %v3327_v16  ;;  %2670 = vmatprep.subr.bf16.mxu0 %v3160_v1 }
  0x28   : > { %2682 = vmatprep.subr.bf16.mxu1 %v3160_v1 }
  0x2a   : > { %2671 = vmatpush3.bf16.msra.mxu0 %v3334_v17 }
  0x2b   : > { %2683 = vmatpush3.bf16.msra.mxu1 %v3341_v18  ;;  %2688 = vmatprep.subr.bf16.mxu0 %v3160_v1 }
  0x2c   : > { %2700 = vmatprep.subr.bf16.mxu1 %v3160_v1 }
  0x2d   : > { %2673 = vmatmul.mubr.msk.bf16.vlgmr.msra.gmra.mxu0 %vm379_vm1, %v3345_v19 }
  0x2e   : > { %2685 = vmatmul.mubr.msk.bf16.vlgmr.msra.gmra.mxu1 %vm379_vm1, %v3348_v20  ;;  %2689 = vmatpush3.bf16.msra.mxu0 %v3354_v21  ;;  %v3750_v20 = vld [vmem:[%s3267_s15 + $0x4] sm:$0x1] }
  0x2f   : > { %2701 = vmatpush3.bf16.msra.mxu1 %v3361_v22  ;;  %2690 = vmatprep.subr.bf16.mxu0 %v3160_v1 }
  0x30   : > { %2702 = vmatprep.subr.bf16.mxu1 %v3160_v1  ;;  %2696 = vmatprep.mubr.msk.bf16.mxu0 %vm3161_vm0, %v3160_v1 }
  0x31   : > { %2708 = vmatprep.mubr.msk.bf16.mxu1 %vm3161_vm0, %v3160_v1 }
  0x32   : > { %2691 = vmatpush3.bf16.msra.mxu0 %v3372_v23 }
  0x33   : > { %2703 = vmatpush3.bf16.msra.mxu1 %v3379_v24  ;;  %2692 = vmatprep.subr.bf16.mxu0 %v3160_v1 }
  0x34   : > { %2704 = vmatprep.subr.bf16.mxu1 %v3160_v1 }
  0x36   : > { %2693 = vmatpush3.bf16.msra.mxu0 %v3390_v25 }
  0x37   : > { %2705 = vmatpush3.bf16.msra.mxu1 %v3397_v26  ;;  %2694 = vmatprep.subr.bf16.mxu0 %v3160_v1 }
  0x38   : > { %2706 = vmatprep.subr.bf16.mxu1 %v3160_v1 }
  0x3a   : > { %2695 = vmatpush3.bf16.msra.mxu0 %v3404_v27 }
  0x3b   : > { %2707 = vmatpush3.bf16.msra.mxu1 %v3411_v28  ;;  %2712 = vmatprep.subr.bf16.mxu0 %v3160_v1 }
  0x3c   : > { %2724 = vmatprep.subr.bf16.mxu1 %v3160_v1 }
  0x3d   : > { %2697 = vmatmul.mubr.msk.bf16.vlgmr.msra.gmra.mxu0 %vm379_vm1, %v2308_v29  ;;  %v2311_v29 = vld [vmem:[%s3267_s15 + $0x9] sm:$0x1] }
  0x3e   : > { %2709 = vmatmul.mubr.msk.bf16.vlgmr.msra.gmra.mxu1 %vm379_vm1, %v3423_v31  ;;  %2713 = vmatpush3.bf16.msra.mxu0 %v3419_v30 }
  0x3f   : > { %2725 = vmatpush3.bf16.msra.mxu1 %v3429_v32  ;;  %2714 = vmatprep.subr.bf16.mxu0 %v3160_v1 }
  0x40   : > { %2726 = vmatprep.subr.bf16.mxu1 %v3160_v1  ;;  %2720 = vmatprep.mubr.msk.bf16.mxu0 %vm3161_vm0, %v3160_v1 }
  0x41   : > { %2732 = vmatprep.mubr.msk.bf16.mxu1 %vm3161_vm0, %v3160_v1 }
  0x42   : > { %2715 = vmatpush3.bf16.msra.mxu0 %v3439_v33 }
  0x43   : > { %2727 = vmatpush3.bf16.msra.mxu1 %v3446_v34  ;;  %2716 = vmatprep.subr.bf16.mxu0 %v3160_v1 }
  0x44   : > { %2728 = vmatprep.subr.bf16.mxu1 %v3160_v1 }
  0x46   : > { %2717 = vmatpush3.bf16.msra.mxu0 %v3457_v35 }
  0x47   : > { %2729 = vmatpush3.bf16.msra.mxu1 %v3464_v36  ;;  %2718 = vmatprep.subr.bf16.mxu0 %v3160_v1 }
  0x48   : > { %2730 = vmatprep.subr.bf16.mxu1 %v3160_v1 }
  0x4a   : > { %2719 = vmatpush3.bf16.msra.mxu0 %v3471_v37 }
  0x4b   : > { %2731 = vmatpush3.bf16.msra.mxu1 %v3478_v38  ;;  %2736 = vmatprep.subr.bf16.mxu0 %v3160_v1 }
  0x4c   : > { %2748 = vmatprep.subr.bf16.mxu1 %v3160_v1 }
  0x4d   : > { %2721 = vmatmul.mubr.msk.bf16.vlgmr.msra.gmra.mxu0 %vm379_vm1, %v3483_v39 }
  0x4e   : > { %2733 = vmatmul.mubr.msk.bf16.vlgmr.msra.gmra.mxu1 %vm379_vm1, %v3492_v41  ;;  %2737 = vmatpush3.bf16.msra.mxu0 %v3488_v40 }
  0x4f   : > { %2749 = vmatpush3.bf16.msra.mxu1 %v3216_v0  ;;  %2738 = vmatprep.subr.bf16.mxu0 %v3160_v1 }
  0x50   : > { %2750 = vmatprep.subr.bf16.mxu1 %v3160_v1  ;;  %2744 = vmatprep.mubr.msk.bf16.mxu0 %vm3161_vm0, %v3160_v1 }
  0x51   : > { %2756 = vmatprep.mubr.msk.bf16.mxu1 %vm3161_vm0, %v3160_v1 }
  0x52   : > { %2739 = vmatpush3.bf16.msra.mxu0 %v3504_v42 }
  0x53   : > { %2751 = vmatpush3.bf16.msra.mxu1 %v3229_v3  ;;  %2740 = vmatprep.subr.bf16.mxu0 %v3160_v1 }
  0x54   : > { %2752 = vmatprep.subr.bf16.mxu1 %v3160_v1 }
  0x56   : > { %2741 = vmatpush3.bf16.msra.mxu0 %v3517_v43 }
  0x57   : > { %2753 = vmatpush3.bf16.msra.mxu1 %v3248_v5  ;;  %2742 = vmatprep.subr.bf16.mxu0 %v3160_v1 }
  0x58   : > { %2754 = vmatprep.subr.bf16.mxu1 %v3160_v1 }
  0x5a   : > { %2743 = vmatpush3.bf16.msra.mxu0 %v3526_v47 }
  0x5b   : > { %2755 = vmatpush3.bf16.msra.mxu1 %v3262_v7  ;;  %2760 = vmatprep.subr.bf16.mxu0 %v3160_v1 }
  0x5c   : > { %2772 = vmatprep.subr.bf16.mxu1 %v3160_v1 }
  0x5d   : > { %2745 = vmatmul.mubr.msk.bf16.vlgmr.msra.gmra.mxu0 %vm379_vm1, %v3533_v50 }
  0x5e   : > { %2757 = vmatmul.mubr.msk.bf16.vlgmr.msra.gmra.mxu1 %vm379_vm1, %v2317_v51  ;;  %2761 = vmatpush3.bf16.msra.mxu0 %v3223_v2  ;;  %v3777_v51 = vld [vmem:[%s3267_s15 + $0xe] sm:$0x1] }
  0x5f   : > { %2773 = vmatpush3.bf16.msra.mxu1 %v3280_v9  ;;  %2762 = vmatprep.subr.bf16.mxu0 %v3160_v1 }
  0x60   : > { %2774 = vmatprep.subr.bf16.mxu1 %v3160_v1  ;;  %2768 = vmatprep.mubr.msk.bf16.mxu0 %vm3161_vm0, %v3160_v1 }
  0x61   : > { %2780 = vmatprep.mubr.msk.bf16.mxu1 %vm3161_vm0, %v3160_v1 }
  0x62   : > { %2763 = vmatpush3.bf16.msra.mxu0 %v3239_v4 }
  0x63   : > { %2775 = vmatpush3.bf16.msra.mxu1 %v3302_v13  ;;  %2764 = vmatprep.subr.bf16.mxu0 %v3160_v1 }
  0x64   : > { %2776 = vmatprep.subr.bf16.mxu1 %v3160_v1 }
  0x66   : > { %2765 = vmatpush3.bf16.msra.mxu0 %v3255_v6 }
  0x67   : > { %2777 = vmatpush3.bf16.msra.mxu1 %v3320_v15  ;;  %2766 = vmatprep.subr.bf16.mxu0 %v3160_v1 }
  0x68   : > { %2778 = vmatprep.subr.bf16.mxu1 %v3160_v1 }
  0x6a   : > { %2767 = vmatpush3.bf16.msra.mxu0 %v3274_v8 }
  0x6b   : > { %2779 = vmatpush3.bf16.msra.mxu1 %v3334_v17  ;;  %2784 = vmatprep.subr.bf16.mxu0 %v3160_v1 }
  0x6c   : > { %2796 = vmatprep.subr.bf16.mxu1 %v3160_v1 }
  0x6d   : > { %2769 = vmatmul.mubr.msk.bf16.vlgmr.msra.gmra.mxu0 %vm379_vm1, %v3345_v19  ;;  %v3725_v19 = vld [vmem:[%s3267_s15 + $0xd] sm:$0x1] }
  0x6e   : > { %2781 = vmatmul.mubr.msk.bf16.vlgmr.msra.gmra.mxu1 %vm379_vm1, %v1069_v55  ;;  %2785 = vmatpush3.bf16.msra.mxu0 %v3292_v12 }
  0x6f   : > { %2797 = vmatpush3.bf16.msra.mxu1 %v3354_v21  ;;  %2786 = vmatprep.subr.bf16.mxu0 %v3160_v1 }
  0x70   : > { %2798 = vmatprep.subr.bf16.mxu1 %v3160_v1  ;;  %2792 = vmatprep.mubr.msk.bf16.mxu0 %vm3161_vm0, %v3160_v1 }
  0x71   : > { %2804 = vmatprep.mubr.msk.bf16.mxu1 %vm3161_vm0, %v3160_v1 }
  0x72   : > { %2787 = vmatpush3.bf16.msra.mxu0 %v3309_v14 }
  0x73   : > { %2799 = vmatpush3.bf16.msra.mxu1 %v3372_v23  ;;  %2788 = vmatprep.subr.bf16.mxu0 %v3160_v1 }
  0x74   : > { %2800 = vmatprep.subr.bf16.mxu1 %v3160_v1 }
  0x76   : > { %2789 = vmatpush3.bf16.msra.mxu0 %v3327_v16 }
  0x77   : > { %2801 = vmatpush3.bf16.msra.mxu1 %v3390_v25  ;;  %2790 = vmatprep.subr.bf16.mxu0 %v3160_v1 }
  0x78   : > { %2802 = vmatprep.subr.bf16.mxu1 %v3160_v1 }
  0x7a   : > { %2791 = vmatpush3.bf16.msra.mxu0 %v3341_v18 }
  0x7b   : > { %2803 = vmatpush3.bf16.msra.mxu1 %v3404_v27  ;;  %2808 = vmatprep.subr.bf16.mxu0 %v3160_v1 }
  0x7c   : > { %2820 = vmatprep.subr.bf16.mxu1 %v3160_v1 }
  0x7d   : > { %2793 = vmatmul.mubr.msk.bf16.vlgmr.msra.gmra.mxu0 %vm379_vm1, %v3423_v31 }
  0x7e   : > { %2805 = vmatmul.mubr.msk.bf16.vlgmr.msra.gmra.mxu1 %vm379_vm1, %v2318_v56  ;;  %2809 = vmatpush3.bf16.msra.mxu0 %v3361_v22 }
  0x7f   : > { %2821 = vmatpush3.bf16.msra.mxu1 %v3419_v30  ;;  %2810 = vmatprep.subr.bf16.mxu0 %v3160_v1 }
  0x80   : > { %2822 = vmatprep.subr.bf16.mxu1 %v3160_v1  ;;  %2816 = vmatprep.mubr.msk.bf16.mxu0 %vm3161_vm0, %v3160_v1 }
  0x81   : > { %2828 = vmatprep.mubr.msk.bf16.mxu1 %vm3161_vm0, %v3160_v1 }
  0x82   : > { %2811 = vmatpush3.bf16.msra.mxu0 %v3379_v24 }
  0x83   : > { %2823 = vmatpush3.bf16.msra.mxu1 %v3439_v33  ;;  %2812 = vmatprep.subr.bf16.mxu0 %v3160_v1 }
  0x84   : > { %2824 = vmatprep.subr.bf16.mxu1 %v3160_v1 }
  0x86   : > { %2813 = vmatpush3.bf16.msra.mxu0 %v3397_v26 }
  0x87   : > { %2825 = vmatpush3.bf16.msra.mxu1 %v3457_v35  ;;  %2814 = vmatprep.subr.bf16.mxu0 %v3160_v1 }
  0x88   : > { %2826 = vmatprep.subr.bf16.mxu1 %v3160_v1 }
  0x8a   : > { %2815 = vmatpush3.bf16.msra.mxu0 %v3411_v28 }
  0x8b   : > { %2827 = vmatpush3.bf16.msra.mxu1 %v3471_v37  ;;  %2832 = vmatprep.subr.bf16.mxu0 %v3160_v1 }
  0x8c   : > { %2844 = vmatprep.subr.bf16.mxu1 %v3160_v1 }
  0x8d   : > { %2817 = vmatmul.mubr.msk.bf16.vlgmr.msra.gmra.mxu0 %vm379_vm1, %v1216_v59 }
  0x8e   : > { %2829 = vmatmul.mubr.msk.bf16.vlgmr.msra.gmra.mxu1 %vm379_vm1, %v3533_v50  ;;  %2833 = vmatpush3.bf16.msra.mxu0 %v3429_v32 }
  0x8f   : > { %2845 = vmatpush3.bf16.msra.mxu1 %v3488_v40  ;;  %2834 = vmatprep.subr.bf16.mxu0 %v3160_v1 }
  0x90   : > { %2846 = vmatprep.subr.bf16.mxu1 %v3160_v1  ;;  %2840 = vmatprep.mubr.msk.bf16.mxu0 %vm3161_vm0, %v3160_v1 }
  0x91   : > { %2852 = vmatprep.mubr.msk.bf16.mxu1 %vm3161_vm0, %v3160_v1 }
  0x92   : > { %2835 = vmatpush3.bf16.msra.mxu0 %v3446_v34 }
  0x93   : > { %2847 = vmatpush3.bf16.msra.mxu1 %v3504_v42  ;;  %2836 = vmatprep.subr.bf16.mxu0 %v3160_v1 }
  0x94   : > { %2848 = vmatprep.subr.bf16.mxu1 %v3160_v1 }
  0x96   : > { %2837 = vmatpush3.bf16.msra.mxu0 %v3464_v36 }
  0x97   : > { %2849 = vmatpush3.bf16.msra.mxu1 %v3517_v43  ;;  %2838 = vmatprep.subr.bf16.mxu0 %v3160_v1 }
  0x98   : > { %2850 = vmatprep.subr.bf16.mxu1 %v3160_v1 }
  0x9a   : > { %2839 = vmatpush3.bf16.msra.mxu0 %v3478_v38 }
  0x9b   : > { %2851 = vmatpush3.bf16.msra.mxu1 %v3526_v47  ;;  %2856 = vmatprep.subr.bf16.mxu0 %v3160_v1 }
  0x9c   : > { %2868 = vmatprep.subr.bf16.mxu1 %v3160_v1 }
  0x9d   : > { %2841 = vmatmul.mubr.msk.bf16.vlgmr.msra.gmra.mxu0 %vm379_vm1, %v3644_v63 }
  0x9e   : > { %2853 = vmatmul.mubr.msk.bf16.vlgmr.msra.gmra.mxu1 %vm379_vm1, %v1363_v62  ;;  %2857 = vmatpush3.bf16.msra.mxu0 %v3216_v0 }
  0x9f   : > { %2869 = vmatpush3.bf16.msra.mxu1 %v3223_v2  ;;  %2858 = vmatprep.subr.bf16.mxu0 %v3160_v1 }
  0xa0   : > { %2870 = vmatprep.subr.bf16.mxu1 %v3160_v1  ;;  %2864 = vmatprep.mubr.msk.bf16.mxu0 %vm3161_vm0, %v3160_v1 }
  0xa1   : > { %2876 = vmatprep.mubr.msk.bf16.mxu1 %vm3161_vm0, %v3160_v1 }
  0xa2   : > { %2859 = vmatpush3.bf16.msra.mxu0 %v3229_v3 }
  0xa3   : > { %2871 = vmatpush3.bf16.msra.mxu1 %v3239_v4  ;;  %2860 = vmatprep.subr.bf16.mxu0 %v3160_v1 }
  0xa4   : > { %2872 = vmatprep.subr.bf16.mxu1 %v3160_v1 }
  0xa6   : > { %2861 = vmatpush3.bf16.msra.mxu0 %v3248_v5 }
  0xa7   : > { %2873 = vmatpush3.bf16.msra.mxu1 %v3255_v6  ;;  %2862 = vmatprep.subr.bf16.mxu0 %v3160_v1 }
  0xa8   : > { %2874 = vmatprep.subr.bf16.mxu1 %v3160_v1 }
  0xaa   : > { %2863 = vmatpush3.bf16.msra.mxu0 %v3262_v7 }
  0xab   : > { %2875 = vmatpush3.bf16.msra.mxu1 %v3274_v8  ;;  %2880 = vmatprep.subr.bf16.mxu0 %v3160_v1 }
  0xac   : > { %2892 = vmatprep.subr.bf16.mxu1 %v3160_v1 }
  0xad   : > { %2865 = vmatmul.mubr.msk.bf16.vlgmr.msra.gmra.mxu0 %vm379_vm1, %v3492_v41 }
  0xae   : > { %2877 = vmatmul.mubr.msk.bf16.vlgmr.msra.gmra.mxu1 %vm379_vm1, %v3483_v39  ;;  %2881 = vmatpush3.bf16.msra.mxu0 %v3280_v9 }
  0xaf   : > { %2893 = vmatpush3.bf16.msra.mxu1 %v3292_v12  ;;  %2882 = vmatprep.subr.bf16.mxu0 %v3160_v1 }
  0xb0   : > { %2894 = vmatprep.subr.bf16.mxu1 %v3160_v1  ;;  %2888 = vmatprep.mubr.msk.bf16.mxu0 %vm3161_vm0, %v3160_v1 }
  0xb1   : > { %2900 = vmatprep.mubr.msk.bf16.mxu1 %vm3161_vm0, %v3160_v1 }
  0xb2   : > { %2883 = vmatpush3.bf16.msra.mxu0 %v3302_v13 }
  0xb3   : > { %2895 = vmatpush3.bf16.msra.mxu1 %v3309_v14  ;;  %2884 = vmatprep.subr.bf16.mxu0 %v3160_v1 }
  0xb4   : > { %2896 = vmatprep.subr.bf16.mxu1 %v3160_v1 }
  0xb6   : > { %2885 = vmatpush3.bf16.msra.mxu0 %v3320_v15 }
  0xb7   : > { %2897 = vmatpush3.bf16.msra.mxu1 %v3327_v16  ;;  %2886 = vmatprep.subr.bf16.mxu0 %v3160_v1 }
  0xb8   : > { %2898 = vmatprep.subr.bf16.mxu1 %v3160_v1 }
  0xba   : > { %2887 = vmatpush3.bf16.msra.mxu0 %v3334_v17 }
  0xbb   : > { %2899 = vmatpush3.bf16.msra.mxu1 %v3341_v18  ;;  %2904 = vmatprep.subr.bf16.mxu0 %v3160_v1 }
  0xbc   : > { %2916 = vmatprep.subr.bf16.mxu1 %v3160_v1 }
  0xbd   : > { %2889 = vmatmul.mubr.msk.bf16.vlgmr.msra.gmra.mxu0 %vm379_vm1, %v3533_v50 }
  0xbe   : > { %2901 = vmatmul.mubr.msk.bf16.vlgmr.msra.gmra.mxu1 %vm379_vm1, %v3697_v10  ;;  %2905 = vmatpush3.bf16.msra.mxu0 %v3354_v21 }
  0xbf   : > { %2917 = vmatpush3.bf16.msra.mxu1 %v3361_v22  ;;  %2906 = vmatprep.subr.bf16.mxu0 %v3160_v1 }
  0xc0   : > { %2918 = vmatprep.subr.bf16.mxu1 %v3160_v1  ;;  %2912 = vmatprep.mubr.msk.bf16.mxu0 %vm3161_vm0, %v3160_v1 }
  0xc1   : > { %2924 = vmatprep.mubr.msk.bf16.mxu1 %vm3161_vm0, %v3160_v1 }
  0xc2   : > { %2907 = vmatpush3.bf16.msra.mxu0 %v3372_v23 }
  0xc3   : > { %2919 = vmatpush3.bf16.msra.mxu1 %v3379_v24  ;;  %2908 = vmatprep.subr.bf16.mxu0 %v3160_v1 }
  0xc4   : > { %2920 = vmatprep.subr.bf16.mxu1 %v3160_v1 }
  0xc6   : > { %2909 = vmatpush3.bf16.msra.mxu0 %v3390_v25 }
  0xc7   : > { %2921 = vmatpush3.bf16.msra.mxu1 %v3397_v26  ;;  %2910 = vmatprep.subr.bf16.mxu0 %v3160_v1 }
  0xc8   : > { %2922 = vmatprep.subr.bf16.mxu1 %v3160_v1 }
  0xca   : > { %2911 = vmatpush3.bf16.msra.mxu0 %v3404_v27 }
  0xcb   : > { %2923 = vmatpush3.bf16.msra.mxu1 %v3411_v28  ;;  %2928 = vmatprep.subr.bf16.mxu0 %v3160_v1 }
  0xcc   : > { %2940 = vmatprep.subr.bf16.mxu1 %v3160_v1 }
  0xcd   : > { %2913 = vmatmul.mubr.msk.bf16.vlgmr.msra.gmra.mxu0 %vm379_vm1, %v2310_v11  ;;  %v2164_v11 = vrot.slane %v3750_v20, %v3541_v52 }
  0xce   : > { %2925 = vmatmul.mubr.msk.bf16.vlgmr.msra.gmra.mxu1 %vm379_vm1, %v3725_v19  ;;  %2929 = vmatpush3.bf16.msra.mxu0 %v3419_v30 }
  0xcf   : > { %2941 = vmatpush3.bf16.msra.mxu1 %v3429_v32  ;;  %2930 = vmatprep.subr.bf16.mxu0 %v3160_v1 }
  0xd0   : > { %2942 = vmatprep.subr.bf16.mxu1 %v3160_v1  ;;  %2936 = vmatprep.mubr.msk.bf16.mxu0 %vm3161_vm0, %v3160_v1 }
  0xd1   : > { %2948 = vmatprep.mubr.msk.bf16.mxu1 %vm3161_vm0, %v3160_v1 }
  0xd2   : > { %2931 = vmatpush3.bf16.msra.mxu0 %v3439_v33 }
  0xd3   : > { %2943 = vmatpush3.bf16.msra.mxu1 %v3446_v34  ;;  %2932 = vmatprep.subr.bf16.mxu0 %v3160_v1 }
  0xd4   : > { %2944 = vmatprep.subr.bf16.mxu1 %v3160_v1 }
  0xd6   : > { %2933 = vmatpush3.bf16.msra.mxu0 %v3457_v35 }
  0xd7   : > { %2945 = vmatpush3.bf16.msra.mxu1 %v3464_v36  ;;  %2934 = vmatprep.subr.bf16.mxu0 %v3160_v1 }
  0xd8   : > { %2946 = vmatprep.subr.bf16.mxu1 %v3160_v1 }
  0xda   : > { %2935 = vmatpush3.bf16.msra.mxu0 %v3471_v37 }
  0xdb   : > { %2947 = vmatpush3.bf16.msra.mxu1 %v3478_v38  ;;  %2952 = vmatprep.subr.bf16.mxu0 %v3160_v1 }
  0xdc   : > { %2964 = vmatprep.subr.bf16.mxu1 %v3160_v1 }
  0xdd   : > { %v417_v31 = vpop.f32.mrf.mxu0  ;;  %2937 = vmatmul.mubr.msk.bf16.vlgmr.msra.gmra.mxu0 %vm379_vm1, %v3750_v20 }
  0xde   : > { %v484_v39 = vpop.f32.mrf.mxu1  ;;  %2949 = vmatmul.mubr.msk.bf16.vlgmr.msra.gmra.mxu1 %vm379_vm1, %v2311_v29  ;;  %2953 = vmatpush3.bf16.msra.mxu0 %v3488_v40  ;;  %v2171_v29 = vrot.slane %v2164_v11, %v3541_v52 }
  0xdf   : > { %v485_v41 = vadd.f32 %v484_v39, %v417_v31  ;;  %2965 = vmatpush3.bf16.msra.mxu1 %v3216_v0  ;;  %v2650_v44 = vpop.f32.mrf.mxu0  ;;  %2954 = vmatprep.subr.bf16.mxu0 %v3160_v1 }
  0xe0   : > { %v2662_v45 = vpop.f32.mrf.mxu1  ;;  %2966 = vmatprep.subr.bf16.mxu1 %v3160_v1  ;;  %2960 = vmatprep.mubr.msk.bf16.mxu0 %vm3161_vm0, %v3160_v1  ;;  %v2173_v20 = vshrl.u32 %v2171_v29, 16 }
  0xe1   : > { %v420_v46 = vpop.f32.mrf.mxu0  ;;  %2972 = vmatprep.mubr.msk.bf16.mxu1 %vm3161_vm0, %v3160_v1 }
  0xe2   : > { %v487_v48 = vpop.f32.mrf.mxu1  ;;  %2955 = vmatpush3.bf16.msra.mxu0 %v3504_v42 }
  0xe3   : > { %2967 = vmatpush3.bf16.msra.mxu1 %v3229_v3  ;;  %v2651_v0 = vpop.f32.mrf.mxu0  ;;  %2956 = vmatprep.subr.bf16.mxu0 %v3160_v1 }
  0xe4   : > { %v2663_v49 = vpop.f32.mrf.mxu1  ;;  %2968 = vmatprep.subr.bf16.mxu1 %v3160_v1 }
  0xe6   : > { %2957 = vmatpush3.bf16.msra.mxu0 %v3517_v43 }
  0xe7   : > { %2969 = vmatpush3.bf16.msra.mxu1 %v3248_v5  ;;  %2958 = vmatprep.subr.bf16.mxu0 %v3160_v1 }
  0xe8   : > { %2970 = vmatprep.subr.bf16.mxu1 %v3160_v1 }
  0xea   : > { %2959 = vmatpush3.bf16.msra.mxu0 %v3526_v47 }
  0xeb   : > { %2971 = vmatpush3.bf16.msra.mxu1 %v3262_v7  ;;  %2976 = vmatprep.subr.bf16.mxu0 %v3160_v1 }
  0xec   : > { %2988 = vmatprep.subr.bf16.mxu1 %v3160_v1 }
  0xed   : > { %v551_v3 = vpop.f32.mrf.mxu0  ;;  %2961 = vmatmul.mubr.msk.bf16.vlgmr.msra.gmra.mxu0 %vm379_vm1, %v3777_v51 }
  0xee   : > { %v557_v53 = vadd.f32 %v551_v3, %v485_v41  ;;  %v619_v5 = vpop.f32.mrf.mxu1  ;;  %2973 = vmatmul.mubr.msk.bf16.vlgmr.msra.gmra.mxu1 %vm379_vm1, %v3644_v63  ;;  %2977 = vmatpush3.bf16.msra.mxu0 %v3223_v2  ;;  %v2024_v63 = vrot.slane %v2017_v60, %v3541_v52 }
  0xef   : > { %2989 = vmatpush3.bf16.msra.mxu1 %v3280_v9  ;;  %v2674_v54 = vpop.f32.mrf.mxu0  ;;  %2978 = vmatprep.subr.bf16.mxu0 %v3160_v1 }
  0xf0   : > { %v625_v7 = vadd.f32 %v619_v5, %v557_v53  ;;  %v2686_v55 = vpop.f32.mrf.mxu1  ;;  %2990 = vmatprep.subr.bf16.mxu1 %v3160_v1  ;;  %2984 = vmatprep.mubr.msk.bf16.mxu0 %vm3161_vm0, %v3160_v1  ;;  %v2026_v10 = vshrl.u32 %v2024_v63, 16 }
  0xf1   : > { %v554_v56 = vpop.f32.mrf.mxu0  ;;  %2996 = vmatprep.mubr.msk.bf16.mxu1 %vm3161_vm0, %v3160_v1 }
  0xf2   : > { %v622_v57 = vpop.f32.mrf.mxu1  ;;  %2979 = vmatpush3.bf16.msra.mxu0 %v3239_v4 }
  0xf3   : > { %2991 = vmatpush3.bf16.msra.mxu1 %v3302_v13  ;;  %v2675_v2 = vpop.f32.mrf.mxu0  ;;  %2980 = vmatprep.subr.bf16.mxu0 %v3160_v1 }
  0xf4   : > { %v2687_v9 = vpop.f32.mrf.mxu1  ;;  %2992 = vmatprep.subr.bf16.mxu1 %v3160_v1 }
  0xf6   : > { %2981 = vmatpush3.bf16.msra.mxu0 %v3255_v6 }
  0xf7   : > { %2993 = vmatpush3.bf16.msra.mxu1 %v3320_v15  ;;  %2982 = vmatprep.subr.bf16.mxu0 %v3160_v1 }
  0xf8   : > { %2994 = vmatprep.subr.bf16.mxu1 %v3160_v1 }
  0xfa   : > { %2983 = vmatpush3.bf16.msra.mxu0 %v3274_v8 }
  0xfb   : > { %2995 = vmatpush3.bf16.msra.mxu1 %v3334_v17  ;;  %3000 = vmatprep.subr.bf16.mxu0 %v3160_v1 }
  0xfc   : > { %3012 = vmatprep.subr.bf16.mxu1 %v3160_v1 }
  0xfd   : > { %v687_v4 = vpop.f32.mrf.mxu0  ;;  %2985 = vmatmul.mubr.msk.bf16.vlgmr.msra.gmra.mxu0 %vm379_vm1, %v3533_v50 }
  0xfe   : > { %v693_v13 = vadd.f32 %v687_v4, %v625_v7  ;;  %v755_v6 = vpop.f32.mrf.mxu1  ;;  %2997 = vmatmul.mubr.msk.bf16.vlgmr.msra.gmra.mxu1 %vm379_vm1, %v1363_v62  ;;  %3001 = vmatpush3.bf16.msra.mxu0 %v3292_v12 }
  0xff   : > { %3013 = vmatpush3.bf16.msra.mxu1 %v3354_v21  ;;  %v2698_v8 = vpop.f32.mrf.mxu0  ;;  %3002 = vmatprep.subr.bf16.mxu0 %v3160_v1 }
 0x100   : > { %v761_v15 = vadd.f32 %v755_v6, %v693_v13  ;;  %v2710_v17 = vpop.f32.mrf.mxu1  ;;  %3014 = vmatprep.subr.bf16.mxu1 %v3160_v1  ;;  %3008 = vmatprep.mubr.msk.bf16.mxu0 %vm3161_vm0, %v3160_v1  ;;  %v3888_v8 = vld [vmem:[%s3928_s2] sm:$0x1] }
 0x101   : > { %v690_v50 = vpop.f32.mrf.mxu0  ;;  %3020 = vmatprep.mubr.msk.bf16.mxu1 %vm3161_vm0, %v3160_v1 }
 0x102   : > { %v758_v58 = vpop.f32.mrf.mxu1  ;;  %3003 = vmatpush3.bf16.msra.mxu0 %v3309_v14  ;;  %v2320_v14 = vld [vmem:[%s3267_s15 + $0x12] sm:$0x1] }
 0x103   : > { %3015 = vmatpush3.bf16.msra.mxu1 %v3372_v23  ;;  %v2699_v12 = vpop.f32.mrf.mxu0  ;;  %3004 = vmatprep.subr.bf16.mxu0 %v3160_v1 }
 0x104   : > { %v2711_v21 = vpop.f32.mrf.mxu1  ;;  %3016 = vmatprep.subr.bf16.mxu1 %v3160_v1 }
 0x106   : > { %3005 = vmatpush3.bf16.msra.mxu0 %v3327_v16 }
 0x107   : > { %3017 = vmatpush3.bf16.msra.mxu1 %v3390_v25  ;;  %3006 = vmatprep.subr.bf16.mxu0 %v3160_v1 }
 0x108   : > { %3018 = vmatprep.subr.bf16.mxu1 %v3160_v1 }
 0x10a   : > { %3007 = vmatpush3.bf16.msra.mxu0 %v3341_v18 }
 0x10b   : > { %3019 = vmatpush3.bf16.msra.mxu1 %v3404_v27  ;;  %3024 = vmatprep.subr.bf16.mxu0 %v3160_v1 }
 0x10c   : > { %3036 = vmatprep.subr.bf16.mxu1 %v3160_v1 }
 0x10d   : > { %v823_v23 = vpop.f32.mrf.mxu0  ;;  %3009 = vmatmul.mubr.msk.bf16.vlgmr.msra.gmra.mxu0 %vm379_vm1, %v3725_v19 }
 0x10e   : > { %v829_v16 = vadd.f32 %v823_v23, %v761_v15  ;;  %v891_v59 = vpop.f32.mrf.mxu1  ;;  %3021 = vmatmul.mubr.msk.bf16.vlgmr.msra.gmra.mxu1 %vm379_vm1, %v2320_v14  ;;  %3025 = vmatpush3.bf16.msra.mxu0 %v3361_v22 }
 0x10f   : > { %3037 = vmatpush3.bf16.msra.mxu1 %v3419_v30  ;;  %v2722_v18 = vpop.f32.mrf.mxu0  ;;  %3026 = vmatprep.subr.bf16.mxu0 %v3160_v1 }
 0x110   : > { %v897_v25 = vadd.f32 %v891_v59, %v829_v16  ;;  %v2734_v27 = vpop.f32.mrf.mxu1  ;;  %3038 = vmatprep.subr.bf16.mxu1 %v3160_v1  ;;  %3032 = vmatprep.mubr.msk.bf16.mxu0 %vm3161_vm0, %v3160_v1  ;;  %v3894_v16 = vld [vmem:[%s3929_s3] sm:$0x1] }
 0x111   : > { %v826_v61 = vpop.f32.mrf.mxu0  ;;  %3044 = vmatprep.mubr.msk.bf16.mxu1 %vm3161_vm0, %v3160_v1 }
 0x112   : > { %v894_v22 = vpop.f32.mrf.mxu1  ;;  %3027 = vmatpush3.bf16.msra.mxu0 %v3379_v24 }
 0x113   : > { %3039 = vmatpush3.bf16.msra.mxu1 %v3439_v33  ;;  %v2723_v30 = vpop.f32.mrf.mxu0  ;;  %3028 = vmatprep.subr.bf16.mxu0 %v3160_v1 }
 0x114   : > { %v2735_v62 = vpop.f32.mrf.mxu1  ;;  %3040 = vmatprep.subr.bf16.mxu1 %v3160_v1  ;;  %v3901_v30 = vld [vmem:[%s3930_s4] sm:$0x1] }
 0x116   : > { %3029 = vmatpush3.bf16.msra.mxu0 %v3397_v26 }
 0x117   : > { %3041 = vmatpush3.bf16.msra.mxu1 %v3457_v35  ;;  %3030 = vmatprep.subr.bf16.mxu0 %v3160_v1 }
 0x118   : > { %3042 = vmatprep.subr.bf16.mxu1 %v3160_v1 }
 0x11a   : > { %3031 = vmatpush3.bf16.msra.mxu0 %v3411_v28 }
 0x11b   : > { %3043 = vmatpush3.bf16.msra.mxu1 %v3471_v37  ;;  %3048 = vmatprep.subr.bf16.mxu0 %v3160_v1 }
 0x11c   : > { %3060 = vmatprep.subr.bf16.mxu1 %v3160_v1 }
 0x11d   : > { %v959_v24 = vpop.f32.mrf.mxu0  ;;  %3033 = vmatmul.mubr.msk.bf16.vlgmr.msra.gmra.mxu0 %vm379_vm1, %v2026_v10 }
 0x11e   : > { %v965_v33 = vadd.f32 %v959_v24, %v897_v25  ;;  %v1007_v26 = vpop.f32.mrf.mxu1  ;;  %3045 = vmatmul.mubr.msk.bf16.vlgmr.msra.gmra.mxu1 %vm379_vm1, %v3777_v51  ;;  %3049 = vmatpush3.bf16.msra.mxu0 %v3429_v32 }
 0x11f   : > { %3061 = vmatpush3.bf16.msra.mxu1 %v3488_v40  ;;  %v2746_v35 = vpop.f32.mrf.mxu0  ;;  %3050 = vmatprep.subr.bf16.mxu0 %v3160_v1 }
 0x120   : > { %v2758_v28 = vpop.f32.mrf.mxu1  ;;  %3062 = vmatprep.subr.bf16.mxu1 %v3160_v1  ;;  %3056 = vmatprep.mubr.msk.bf16.mxu0 %vm3161_vm0, %v3160_v1  ;;  %v966_v15 = vadd.f32 %v965_v33, %v3888_v8 }
 0x121   : > { %v962_v37 = vpop.f32.mrf.mxu0  ;;  %3068 = vmatprep.mubr.msk.bf16.mxu1 %vm3161_vm0, %v3160_v1 }
 0x122   : > { %v1010_v32 = vpop.f32.mrf.mxu1  ;;  %3051 = vmatpush3.bf16.msra.mxu0 %v3446_v34  ;;  %v2321_v34 = vld [vmem:[%s3267_s15 + $0x13] sm:$0x1]  ;;  %v967_v21 = vmax.f32 %v966_v15, 0.0 }
 0x123   : > { %3063 = vmatpush3.bf16.msra.mxu1 %v3504_v42  ;;  %v2747_v40 = vpop.f32.mrf.mxu0  ;;  %3052 = vmatprep.subr.bf16.mxu0 %v3160_v1 }
 0x124   : > { %v2759_v19 = vpop.f32.mrf.mxu1  ;;  %3064 = vmatprep.subr.bf16.mxu1 %v3160_v1  ;;  %v968_v60 = vmul.f32 %v967_v21, %v3894_v16 }
 0x126   : > { %3053 = vmatpush3.bf16.msra.mxu0 %v3464_v36  ;;  %v969_v63 = vadd.f32 %v968_v60, %v3901_v30 }
 0x127   : > { %3065 = vmatpush3.bf16.msra.mxu1 %v3517_v43  ;;  %3054 = vmatprep.subr.bf16.mxu0 %v3160_v1 }
 0x128   : > { %3066 = vmatprep.subr.bf16.mxu1 %v3160_v1 }
 0x12a   : > { %3055 = vmatpush3.bf16.msra.mxu0 %v3478_v38 }
 0x12b   : > { %3067 = vmatpush3.bf16.msra.mxu1 %v3526_v47 }
 0x12d   : > { %v1047_v42 = vpop.f32.mrf.mxu0  ;;  %3057 = vmatmul.mubr.msk.bf16.vlgmr.msra.gmra.mxu0 %vm379_vm1, %v2321_v34 }
 0x12e   : > { %v1048_v31 = vadd.f32 %v1047_v42, %v1007_v26  ;;  %v1108_v39 = vpop.f32.mrf.mxu1  ;;  %3069 = vmatmul.mubr.msk.bf16.vlgmr.msra.gmra.mxu1 %vm379_vm1, %v2173_v20 }
 0x12f   : > { %v2770_v36 = vpop.f32.mrf.mxu0 }
 0x130   : > { %v1114_v52 = vadd.f32 %v1108_v39, %v1048_v31  ;;  %v2782_v43 = vpop.f32.mrf.mxu1 }
 0x131   : > { %v1050_v41 = vpop.f32.mrf.mxu0 }
 0x132   : > { %v1111_v44 = vpop.f32.mrf.mxu1 }
 0x133   : > { %v2771_v45 = vpop.f32.mrf.mxu0 }
 0x134   : > { %v2783_v1 = vpop.f32.mrf.mxu1 }
 0x13d   : > { %v1149_v46 = vpop.f32.mrf.mxu0 }
 0x13e   : > { %v1155_v48 = vadd.f32 %v1149_v46, %v1114_v52  ;;  %v1193_v38 = vpop.f32.mrf.mxu1 }
 0x13f   : > { %v2794_v0 = vpop.f32.mrf.mxu0 }
 0x140   : > { %v1199_v49 = vadd.f32 %v1193_v38, %v1155_v48  ;;  %v2806_v47 = vpop.f32.mrf.mxu1 }
 0x141   : > { %v1152_v51 = vpop.f32.mrf.mxu0 }
 0x142   : > { %v1196_v3 = vpop.f32.mrf.mxu1 }
 0x143   : > { %v2795_v53 = vpop.f32.mrf.mxu0 }
 0x144   : > { %v2807_v5 = vpop.f32.mrf.mxu1 }
 0x14d   : > { %v1255_v54 = vpop.f32.mrf.mxu0 }
 0x14e   : > { %v1261_v7 = vadd.f32 %v1255_v54, %v1199_v49  ;;  %v1296_v55 = vpop.f32.mrf.mxu1 }
 0x14f   : > { %v2818_v56 = vpop.f32.mrf.mxu0 }
 0x150   : > { %v1302_v57 = vadd.f32 %v1296_v55, %v1261_v7  ;;  %v2830_v2 = vpop.f32.mrf.mxu1 }
 0x151   : > { %v1258_v9 = vpop.f32.mrf.mxu0 }
 0x152   : > { %v1299_v4 = vpop.f32.mrf.mxu1 }
 0x153   : > { %v2819_v13 = vpop.f32.mrf.mxu0 }
 0x154   : > { %v2831_v6 = vpop.f32.mrf.mxu1 }
 0x15d   : > { %v1340_v17 = vpop.f32.mrf.mxu0 }
 0x15e   : > { %v1346_v50 = vadd.f32 %v1340_v17, %v1302_v57  ;;  %v1402_v58 = vpop.f32.mrf.mxu1 }
 0x15f   : > { %v2842_v12 = vpop.f32.mrf.mxu0 }
 0x160   : > { %v1408_v14 = vadd.f32 %v1402_v58, %v1346_v50  ;;  %v2854_v23 = vpop.f32.mrf.mxu1 }
 0x161   : > { %v1343_v59 = vpop.f32.mrf.mxu0 }
 0x162   : > { %v1409_v18 = vadd.f32 %v1408_v14, %v3888_v8  ;;  %v1405_v25 = vpop.f32.mrf.mxu1 }
 0x163   : > { %v2843_v27 = vpop.f32.mrf.mxu0 }
 0x164   : > { %v1410_v61 = vmax.f32 %v1409_v18, 0.0  ;;  %v2855_v22 = vpop.f32.mrf.mxu1 }
 0x166   : > { %v1411_v62 = vmul.f32 %v1410_v61, %v3894_v16 }
 0x168   : > { %v1412_v10 = vadd.f32 %v1411_v62, %v3901_v30 }
 0x16a   : > { %v1413_v24 = vmax.f32 %v969_v63, %v1412_v10 }
 0x16d   : > { %v1448_v33 = vpop.f32.mrf.mxu0 }
 0x16e   : > { %v1488_v26 = vpop.f32.mrf.mxu1 }
 0x16f   : > { %v1489_v35 = vadd.f32 %v1488_v26, %v1448_v33  ;;  %v2866_v28 = vpop.f32.mrf.mxu0 }
 0x170   : > { %v2878_v37 = vpop.f32.mrf.mxu1 }
 0x171   : > { %v1451_v11 = vpop.f32.mrf.mxu0 }
 0x172   : > { %v1491_v32 = vpop.f32.mrf.mxu1 }
 0x173   : > { %v2867_v40 = vpop.f32.mrf.mxu0 }
 0x174   : > { %v2879_v19 = vpop.f32.mrf.mxu1 }
 0x17d   : > { %v1528_v29 = vpop.f32.mrf.mxu0 }
 0x17e   : > { %v1534_v20 = vadd.f32 %v1528_v29, %v1489_v35  ;;  %v1572_v34 = vpop.f32.mrf.mxu1 }
 0x17f   : > { %v2890_v42 = vpop.f32.mrf.mxu0 }
 0x180   : > { %v1578_v31 = vadd.f32 %v1572_v34, %v1534_v20  ;;  %v2902_v39 = vpop.f32.mrf.mxu1 }
 0x181   : > { %v1531_v36 = vpop.f32.mrf.mxu0 }
 0x182   : > { %v1575_v52 = vpop.f32.mrf.mxu1 }
 0x183   : > { %v2891_v43 = vpop.f32.mrf.mxu0 }
 0x184   : > { %v2903_v41 = vpop.f32.mrf.mxu1 }
 0x18d   : > { %v1616_v44 = vpop.f32.mrf.mxu0 }
 0x18e   : > { %v1622_v45 = vadd.f32 %v1616_v44, %v1578_v31  ;;  %v1660_v1 = vpop.f32.mrf.mxu1 }
 0x18f   : > { %v2914_v46 = vpop.f32.mrf.mxu0 }
 0x190   : > { %v1666_v48 = vadd.f32 %v1660_v1, %v1622_v45  ;;  %v2926_v38 = vpop.f32.mrf.mxu1 }
 0x191   : > { %v1619_v0 = vpop.f32.mrf.mxu0 }
 0x192   : > { %v1663_v49 = vpop.f32.mrf.mxu1 }
 0x193   : > { %v2915_v47 = vpop.f32.mrf.mxu0 }
 0x194   : > { %v2927_v51 = vpop.f32.mrf.mxu1 }
 0x19d   : > { %v1704_v3 = vpop.f32.mrf.mxu0 }
 0x19e   : > { %v1710_v53 = vadd.f32 %v1704_v3, %v1666_v48  ;;  %v1748_v5 = vpop.f32.mrf.mxu1 }
 0x19f   : > { %v2938_v54 = vpop.f32.mrf.mxu0 }
 0x1a0   : > { %v1754_v7 = vadd.f32 %v1748_v5, %v1710_v53  ;;  %v2950_v55 = vpop.f32.mrf.mxu1 }
 0x1a1   : > { %v1707_v56 = vpop.f32.mrf.mxu0 }
 0x1a2   : > { %v1751_v57 = vpop.f32.mrf.mxu1 }
 0x1a3   : > { %v2939_v2 = vpop.f32.mrf.mxu0 }
 0x1a4   : > { %v2951_v9 = vpop.f32.mrf.mxu1 }
 0x1ad   : > { %v1792_v4 = vpop.f32.mrf.mxu0 }
 0x1ae   : > { %v1798_v13 = vadd.f32 %v1792_v4, %v1754_v7  ;;  %v1838_v6 = vpop.f32.mrf.mxu1 }
 0x1af   : > { %v2962_v15 = vpop.f32.mrf.mxu0 }
 0x1b0   : > { %v1799_v17 = vadd.f32 %v1798_v13, %v3888_v8  ;;  %v2974_v50 = vpop.f32.mrf.mxu1 }
 0x1b1   : > { %v1795_v58 = vpop.f32.mrf.mxu0 }
 0x1b2   : > { %v1800_v12 = vmax.f32 %v1799_v17, 0.0  ;;  %v1841_v21 = vpop.f32.mrf.mxu1 }
 0x1b3   : > { %v2963_v14 = vpop.f32.mrf.mxu0 }
 0x1b4   : > { %v1801_v23 = vmul.f32 %v1800_v12, %v3894_v16  ;;  %v2975_v59 = vpop.f32.mrf.mxu1 }
 0x1b6   : > { %v1802_v18 = vadd.f32 %v1801_v23, %v3901_v30 }
 0x1b8   : > { %v1803_v25 = vmax.f32 %v1413_v24, %v1802_v18 }
 0x1bd   : > { %v1878_v27 = vpop.f32.mrf.mxu0 }
 0x1be   : > { %v1918_v60 = vpop.f32.mrf.mxu1  ;;  %v1879_v29 = vadd.f32 %v1878_v27, %v1838_v6 }
 0x1bf   : > { %v2986_v61 = vpop.f32.mrf.mxu0 }
 0x1c0   : > { %v2998_v22 = vpop.f32.mrf.mxu1  ;;  %v1924_v42 = vadd.f32 %v1918_v60, %v1879_v29 }
 0x1c1   : > { %v1881_v62 = vpop.f32.mrf.mxu0 }
 0x1c2   : > { %v1921_v63 = vpop.f32.mrf.mxu1 }
 0x1c3   : > { %v2987_v10 = vpop.f32.mrf.mxu0 }
 0x1c4   : > { %v2999_v33 = vpop.f32.mrf.mxu1 }
 0x1cd   : > { %v1959_v26 = vpop.f32.mrf.mxu0 }
 0x1ce   : > { %v2003_v35 = vpop.f32.mrf.mxu1  ;;  %v1965_v36 = vadd.f32 %v1959_v26, %v1924_v42 }
 0x1cf   : > { %v3010_v28 = vpop.f32.mrf.mxu0 }
 0x1d0   : > { %v3022_v37 = vpop.f32.mrf.mxu1  ;;  %v2009_v44 = vadd.f32 %v2003_v35, %v1965_v36 }
 0x1d1   : > { %v1962_v11 = vpop.f32.mrf.mxu0 }
 0x1d2   : > { %v2006_v32 = vpop.f32.mrf.mxu1 }
 0x1d3   : > { %v3011_v40 = vpop.f32.mrf.mxu0 }
 0x1d4   : > { %v3023_v19 = vpop.f32.mrf.mxu1 }
 0x1dd   : > { %v2065_v20 = vpop.f32.mrf.mxu0 }
 0x1de   : > { %v2106_v34 = vpop.f32.mrf.mxu1  ;;  %v2071_v45 = vadd.f32 %v2065_v20, %v2009_v44 }
 0x1df   : > { %v3034_v24 = vpop.f32.mrf.mxu0 }
 0x1e0   : > { %v3046_v31 = vpop.f32.mrf.mxu1  ;;  %v2112_v1 = vadd.f32 %v2106_v34, %v2071_v45 }
 0x1e1   : > { %v2068_v39 = vpop.f32.mrf.mxu0 }
 0x1e2   : > { %v2109_v52 = vpop.f32.mrf.mxu1 }
 0x1e3   : > { %v3035_v43 = vpop.f32.mrf.mxu0 }
 0x1e4   : > { %v3047_v41 = vpop.f32.mrf.mxu1 }
 0x1ed   : > { %v2150_v46 = vpop.f32.mrf.mxu0 }
 0x1ee   : > { %v2156_v48 = vadd.f32 %v2150_v46, %v2112_v1  ;;  %v2212_v38 = vpop.f32.mrf.mxu1 }
 0x1ef   : > { %v3058_v0 = vpop.f32.mrf.mxu0 }
 0x1f0   : > { %v2218_v49 = vadd.f32 %v2212_v38, %v2156_v48  ;;  %v3070_v47 = vpop.f32.mrf.mxu1 }
 0x1f1   : > { %v2153_v51 = vpop.f32.mrf.mxu0 }
 0x1f2   : > { %v2219_v3 = vadd.f32 %v2218_v49, %v3888_v8  ;;  %v2215_v53 = vpop.f32.mrf.mxu1 }
 0x1f3   : > { %v3059_v5 = vpop.f32.mrf.mxu0 }
 0x1f4   : > { %v2220_v54 = vmax.f32 %v2219_v3, 0.0  ;;  %v3071_v7 = vpop.f32.mrf.mxu1 }
 0x1f6   : > { %v2221_v55 = vmul.f32 %v2220_v54, %v3894_v16 }
 0x1f8   : > { %v2222_v56 = vadd.f32 %v2221_v55, %v3901_v30 }
 0x1fa   : > { %v2223_v57 = vmax.f32 %v1803_v25, %v2222_v56 }
 0x1fc   : > { %2224 = vst [vmem:[%s242_s25] sm:$0x1] %v2223_v57 }
 0x1fd PF: > { %s15_s20 = sadd.s32 1, %s3158_s20   ;;  %s3932_s18 = smov %s3154_s19 }
 0x1fe   : > { %p12_p6 = scmp.ge.s32.totalorder %s15_s20, 4   ;;  %s3933_s19 = smov %s3935_s21 }
 0x200   :  { %14 = sbr.rel (!%p12_p6) target bundleno = 2 (0x2), region = 82 }

// kernel: octcnn_forward.7
= control target key start
LH: loop header
LB: loop body
LE: loop exit
PB: predicated region body
PF: predicated region fallthrough
CT: control target
= control target key end

     0   :  { %v1732_v1 = vmov 0.0   ;;  %vm1733_vm0 = vmmov 0   ;;  %vm68_vm1 = vcmask 1041409   ;;  %s2131_s0 = inlined_call_operand.vmem [shape: f32[2,1,1,128], index: 0, kind: input, shape index: {}]   ;;  %s2132_s1 = inlined_call_operand.vmem [shape: bf16[9,128,128], index: 1, kind: input, shape index: {}]   ;;  %s2133_s2 = inlined_call_operand.vmem [shape: f32[1,128], index: 2, kind: input, shape index: {}]   ;;  %s2134_s3 = inlined_call_operand.vmem [shape: bf16[128,4], index: 3, kind: input, shape index: {}]   ;;  %s2135_s4 = inlined_call_operand.vmem [shape: f32[1,4], index: 4, kind: input, shape index: {}]   ;;  %s2136_s5 = inlined_call_operand.hbm [shape: f32[2,4], index: 5, kind: output, shape index: {}]  }
   0x1   :  { %v1630_v0 = vld [vmem:[%s2132_s1 + $0x78] sm:$0xff]   ;;  %1427 = vmatprep.subr.bf16.mxu0 %v1732_v1  ;;  %1447 = vmatprep.subr.bf16.mxu1 %v1732_v1  ;;  %v1632_v3 = vld [vmem:[%s2132_s1 + $0x70] sm:$0xff]   ;;  %v1634_v5 = vld [vmem:[%s2132_s1 + $0x68] sm:$0xff]  }
   0x2   :  { %v1631_v2 = vld [vmem:[%s2132_s1 + $0x38] sm:$0xff]   ;;  %1428 = vmatpush3.bf16.msra.mxu0 %v1630_v0  ;;  %1443 = vmatprep.mubr.msk.bf16.mxu0 %vm1733_vm0, %v1732_v1  ;;  %v1633_v4 = vld [vmem:[%s2132_s1 + $0x30] sm:$0xff]   ;;  %v1635_v6 = vld [vmem:[%s2132_s1 + $0x28] sm:$0xff]  }
   0x3   :  { %1448 = vmatpush3.bf16.msra.mxu1 %v1631_v2  ;;  %1429 = vmatprep.subr.bf16.mxu0 %v1732_v1  ;;  %v1636_v7 = vld [vmem:[%s2132_s1 + $0x60] sm:$0xff]   ;;  %v1638_v9 = vld [vmem:[%s2132_s1 + $0x58] sm:$0xff]   ;;  %v1640_v14 = vld [vmem:[%s2132_s1 + $0x50] sm:$0xff]  }
   0x4   :  { %1449 = vmatprep.subr.bf16.mxu1 %v1732_v1  ;;  %1463 = vmatprep.mubr.msk.bf16.mxu1 %vm1733_vm0, %v1732_v1  ;;  %v1637_v8 = vld [vmem:[%s2132_s1 + $0x20] sm:$0xff]   ;;  %v1639_v10 = vld [vmem:[%s2132_s1 + $0x18] sm:$0xff]   ;;  %v1641_v16 = vld [vmem:[%s2132_s1 + $0x10] sm:$0xff]  }
   0x5   :  { %v22_v11 = vld [vmem:[%s2131_s0] sm:$0x1]  ;;  %v23_v12 = vld [vmem:[%s2131_s0 + $0x1] sm:$0x1]  ;;  %v1642_v18 = vld [vmem:[%s2132_s1 + $0x48] sm:$0xff]  }
   0x6   :  { %1430 = vmatpush3.bf16.msra.mxu0 %v1632_v3  ;;  %v29_v13 = vpack.c.bf16 %v23_v12, %v23_v12  ;;  %v28_v15 = vpack.c.bf16 %v22_v11, %v22_v11  ;;  %v1643_v21 = vld [vmem:[%s2132_s1 + $0x8] sm:$0xff]   ;;  %v1644_v22 = vld [vmem:[%s2132_s1 + $0x40] sm:$0xff]   ;;  %v1646_v26 = vld [vmem:[%s2132_s1 + $0xb8] sm:$0xff]  }
   0x7   :  { %1450 = vmatpush3.bf16.msra.mxu1 %v1633_v4  ;;  %1431 = vmatprep.subr.bf16.mxu0 %v1732_v1  ;;  %v1645_v24 = vld [vmem:[%s2132_s1] sm:$0xff]   ;;  %v1647_v27 = vld [vmem:[%s2132_s1 + $0xf8] sm:$0xff]   ;;  %v1648_v28 = vld [vmem:[%s2132_s1 + $0xb0] sm:$0xff]  }
   0x8   :  { %1451 = vmatprep.subr.bf16.mxu1 %v1732_v1  ;;  %v66_v17 = vunpack.c.l.b16 %v29_v13  ;;  %v65_v19 = vunpack.c.l.b16 %v28_v15  ;;  %v1649_v29 = vld [vmem:[%s2132_s1 + $0xf0] sm:$0xff]   ;;  %v1650_v30 = vld [vmem:[%s2132_s1 + $0xa8] sm:$0xff]   ;;  %v1652_v32 = vld [vmem:[%s2132_s1 + $0xa0] sm:$0xff]  }
   0x9   :  { %v1651_v31 = vld [vmem:[%s2132_s1 + $0xe8] sm:$0xff]   ;;  %v1653_v33 = vld [vmem:[%s2132_s1 + $0xe0] sm:$0xff]   ;;  %v1654_v34 = vld [vmem:[%s2132_s1 + $0x98] sm:$0xff]  }
   0xa   :  { %1432 = vmatpush3.bf16.msra.mxu0 %v1634_v5  ;;  %v67_v20 = vrot.slane %v66_v17, 7  ;;  %v1655_v35 = vld [vmem:[%s2132_s1 + $0xd8] sm:$0xff]   ;;  %v1656_v36 = vld [vmem:[%s2132_s1 + $0x90] sm:$0xff]   ;;  %v1658_v38 = vld [vmem:[%s2132_s1 + $0x88] sm:$0xff]  }
   0xb   :  { %1452 = vmatpush3.bf16.msra.mxu1 %v1635_v6  ;;  %1433 = vmatprep.subr.bf16.mxu0 %v1732_v1  ;;  %v1657_v37 = vld [vmem:[%s2132_s1 + $0xd0] sm:$0xff]   ;;  %v1659_v39 = vld [vmem:[%s2132_s1 + $0xc8] sm:$0xff]   ;;  %v1660_v40 = vld [vmem:[%s2132_s1 + $0x80] sm:$0xff]  }
   0xc   :  { %1453 = vmatprep.subr.bf16.mxu1 %v1732_v1  ;;  %v69_v23 = vsel %vm68_vm1, %v67_v20, %v65_v19  ;;  %v1661_v41 = vld [vmem:[%s2132_s1 + $0xc0] sm:$0xff]   ;;  %v1662_v42 = vld [vmem:[%s2132_s1 + $0x138] sm:$0xff]   ;;  %v1664_v44 = vld [vmem:[%s2132_s1 + $0x130] sm:$0xff]  }
   0xd   :  { %v1839_v25 = vpack.c.b16 %v69_v23, %v69_v23  ;;  %v1663_v43 = vld [vmem:[%s2132_s1 + $0x178] sm:$0xff]   ;;  %v1665_v45 = vld [vmem:[%s2132_s1 + $0x170] sm:$0xff]   ;;  %v1666_v46 = vld [vmem:[%s2132_s1 + $0x128] sm:$0xff]  }
   0xe   :  { %1434 = vmatpush3.bf16.msra.mxu0 %v1636_v7  ;;  %v1667_v47 = vld [vmem:[%s2132_s1 + $0x168] sm:$0xff]   ;;  %v1668_v48 = vld [vmem:[%s2132_s1 + $0x120] sm:$0xff]   ;;  %v1670_v50 = vld [vmem:[%s2132_s1 + $0x118] sm:$0xff]  }
   0xf   :  { %1454 = vmatpush3.bf16.msra.mxu1 %v1637_v8  ;;  %1435 = vmatprep.subr.bf16.mxu0 %v1732_v1  ;;  %v1669_v49 = vld [vmem:[%s2132_s1 + $0x160] sm:$0xff]  }
  0x10   :  { %1455 = vmatprep.subr.bf16.mxu1 %v1732_v1 }
  0x12   :  { %1436 = vmatpush3.bf16.msra.mxu0 %v1638_v9 }
  0x13   :  { %1456 = vmatpush3.bf16.msra.mxu1 %v1639_v10  ;;  %1437 = vmatprep.subr.bf16.mxu0 %v1732_v1 }
  0x14   :  { %1457 = vmatprep.subr.bf16.mxu1 %v1732_v1 }
  0x16   :  { %1438 = vmatpush3.bf16.msra.mxu0 %v1640_v14 }
  0x17   :  { %1458 = vmatpush3.bf16.msra.mxu1 %v1641_v16  ;;  %1439 = vmatprep.subr.bf16.mxu0 %v1732_v1 }
  0x18   :  { %1459 = vmatprep.subr.bf16.mxu1 %v1732_v1 }
  0x1a   :  { %1440 = vmatpush3.bf16.msra.mxu0 %v1642_v18 }
  0x1b   :  { %1460 = vmatpush3.bf16.msra.mxu1 %v1643_v21  ;;  %1441 = vmatprep.subr.bf16.mxu0 %v1732_v1 }
  0x1c   :  { %1461 = vmatprep.subr.bf16.mxu1 %v1732_v1 }
  0x1e   :  { %1442 = vmatpush3.bf16.msra.mxu0 %v1644_v22 }
  0x1f   :  { %1462 = vmatpush3.bf16.msra.mxu1 %v1645_v24  ;;  %1467 = vmatprep.subr.bf16.mxu0 %v1732_v1 }
  0x20   :  { %1487 = vmatprep.subr.bf16.mxu1 %v1732_v1 }
  0x21   :  { %1444 = vmatmul.mubr.bf16.vlgmr.msra.gmra.mxu0 %v1839_v25 }
  0x22   :  { %1464 = vmatmul.mubr.bf16.vlgmr.msra.gmra.mxu1 %v1839_v25  ;;  %1468 = vmatpush3.bf16.msra.mxu0 %v1646_v26 }
  0x23   :  { %1488 = vmatpush3.bf16.msra.mxu1 %v1647_v27  ;;  %1469 = vmatprep.subr.bf16.mxu0 %v1732_v1 }
  0x24   :  { %1489 = vmatprep.subr.bf16.mxu1 %v1732_v1  ;;  %1483 = vmatprep.mubr.msk.bf16.mxu0 %vm1733_vm0, %v1732_v1 }
  0x25   :  { %1503 = vmatprep.mubr.msk.bf16.mxu1 %vm1733_vm0, %v1732_v1 }
  0x26   :  { %1470 = vmatpush3.bf16.msra.mxu0 %v1648_v28 }
  0x27   :  { %1490 = vmatpush3.bf16.msra.mxu1 %v1649_v29  ;;  %1471 = vmatprep.subr.bf16.mxu0 %v1732_v1 }
  0x28   :  { %1491 = vmatprep.subr.bf16.mxu1 %v1732_v1 }
  0x2a   :  { %1472 = vmatpush3.bf16.msra.mxu0 %v1650_v30 }
  0x2b   :  { %1492 = vmatpush3.bf16.msra.mxu1 %v1651_v31  ;;  %1473 = vmatprep.subr.bf16.mxu0 %v1732_v1 }
  0x2c   :  { %1493 = vmatprep.subr.bf16.mxu1 %v1732_v1 }
  0x2e   :  { %1474 = vmatpush3.bf16.msra.mxu0 %v1652_v32 }
  0x2f   :  { %1494 = vmatpush3.bf16.msra.mxu1 %v1653_v33  ;;  %1475 = vmatprep.subr.bf16.mxu0 %v1732_v1 }
  0x30   :  { %1495 = vmatprep.subr.bf16.mxu1 %v1732_v1 }
  0x32   :  { %1476 = vmatpush3.bf16.msra.mxu0 %v1654_v34 }
  0x33   :  { %1496 = vmatpush3.bf16.msra.mxu1 %v1655_v35  ;;  %1477 = vmatprep.subr.bf16.mxu0 %v1732_v1 }
  0x34   :  { %1497 = vmatprep.subr.bf16.mxu1 %v1732_v1 }
  0x36   :  { %1478 = vmatpush3.bf16.msra.mxu0 %v1656_v36 }
  0x37   :  { %1498 = vmatpush3.bf16.msra.mxu1 %v1657_v37  ;;  %1479 = vmatprep.subr.bf16.mxu0 %v1732_v1 }
  0x38   :  { %1499 = vmatprep.subr.bf16.mxu1 %v1732_v1 }
  0x3a   :  { %1480 = vmatpush3.bf16.msra.mxu0 %v1658_v38 }
  0x3b   :  { %1500 = vmatpush3.bf16.msra.mxu1 %v1659_v39  ;;  %1481 = vmatprep.subr.bf16.mxu0 %v1732_v1 }
  0x3c   :  { %1501 = vmatprep.subr.bf16.mxu1 %v1732_v1 }
  0x3e   :  { %1482 = vmatpush3.bf16.msra.mxu0 %v1660_v40 }
  0x3f   :  { %1502 = vmatpush3.bf16.msra.mxu1 %v1661_v41  ;;  %1507 = vmatprep.subr.bf16.mxu0 %v1732_v1 }
  0x40   :  { %1527 = vmatprep.subr.bf16.mxu1 %v1732_v1 }
  0x41   :  { %1484 = vmatmul.mubr.bf16.vlgmr.msra.gmra.mxu0 %v1839_v25 }
  0x42   :  { %1508 = vmatpush3.bf16.msra.mxu0 %v1662_v42  ;;  %1504 = vmatmul.mubr.bf16.vlgmr.msra.gmra.mxu1 %v1839_v25 }
  0x43   :  { %1528 = vmatpush3.bf16.msra.mxu1 %v1663_v43  ;;  %1509 = vmatprep.subr.bf16.mxu0 %v1732_v1 }
  0x44   :  { %1529 = vmatprep.subr.bf16.mxu1 %v1732_v1  ;;  %1523 = vmatprep.mubr.msk.bf16.mxu0 %vm1733_vm0, %v1732_v1 }
  0x45   :  { %1543 = vmatprep.mubr.msk.bf16.mxu1 %vm1733_vm0, %v1732_v1 }
  0x46   :  { %1510 = vmatpush3.bf16.msra.mxu0 %v1664_v44 }
  0x47   :  { %1530 = vmatpush3.bf16.msra.mxu1 %v1665_v45  ;;  %1511 = vmatprep.subr.bf16.mxu0 %v1732_v1 }
  0x48   :  { %1531 = vmatprep.subr.bf16.mxu1 %v1732_v1 }
  0x4a   :  { %1512 = vmatpush3.bf16.msra.mxu0 %v1666_v46 }
  0x4b   :  { %1532 = vmatpush3.bf16.msra.mxu1 %v1667_v47  ;;  %1513 = vmatprep.subr.bf16.mxu0 %v1732_v1 }
  0x4c   :  { %1533 = vmatprep.subr.bf16.mxu1 %v1732_v1 }
  0x4e   :  { %1514 = vmatpush3.bf16.msra.mxu0 %v1668_v48 }
  0x4f   :  { %10 = vsyncpa [#allocation3], 0  ;;  %1534 = vmatpush3.bf16.msra.mxu1 %v1669_v49  ;;  %1515 = vmatprep.subr.bf16.mxu0 %v1732_v1  ;;  %v1671_v51 = vld [vmem:[%s2132_s1 + $0x158] sm:$0xff]   ;;  %v1672_v52 = vld [vmem:[%s2132_s1 + $0x110] sm:$0xff]   ;;  %s1734_s28 = smov [#allocation2]   ;;  %vm1111_vm2 = vcmask 25600  }
  0x50   :  { %1535 = vmatprep.subr.bf16.mxu1 %v1732_v1  ;;  %v1673_v53 = vld [vmem:[%s2132_s1 + $0x150] sm:$0xff]   ;;  %v1674_v54 = vld [vmem:[%s2132_s1 + $0x108] sm:$0xff]   ;;  %v1676_v56 = vld [vmem:[%s2132_s1 + $0x100] sm:$0xff]   ;;  %s1119_s29 = sshll.u32 %s1734_s28, 4  ;;  %s1120_s29 = int_to_ptr.vmem [resolvable:$true] %s1119_s29 }
  0x51   :  { %v1675_v55 = vld [vmem:[%s2132_s1 + $0x148] sm:$0xff]   ;;  %v1677_v57 = vld [vmem:[%s2132_s1 + $0x140] sm:$0xff]   ;;  %v1678_v58 = vld [vmem:[%s2132_s1 + $0x1b8] sm:$0xff]   ;;  %p1715_p1 = scmp.lt.s32.totalorder %s1120_s29, %s1120_s29 }
  0x52   :  { %1516 = vmatpush3.bf16.msra.mxu0 %v1670_v50  ;;  %v1679_v59 = vld [vmem:[%s2132_s1 + $0x1f8] sm:$0xff]   ;;  %v1680_v60 = vld [vmem:[%s2132_s1 + $0x1b0] sm:$0xff]   ;;  %v1682_v62 = vld [vmem:[%s2132_s1 + $0x1a8] sm:$0xff]  }
  0x53   :  { %1536 = vmatpush3.bf16.msra.mxu1 %v1671_v51  ;;  %1517 = vmatprep.subr.bf16.mxu0 %v1732_v1  ;;  %v1681_v61 = vld [vmem:[%s2132_s1 + $0x1f0] sm:$0xff]   ;;  %v1683_v63 = vld [vmem:[%s2132_s1 + $0x1e8] sm:$0xff]   ;;  %v1684_v0 = vld [vmem:[%s2132_s1 + $0x1a0] sm:$0xff]  }
  0x54   :  { %1537 = vmatprep.subr.bf16.mxu1 %v1732_v1  ;;  %v1685_v2 = vld [vmem:[%s2132_s1 + $0x1e0] sm:$0xff]   ;;  %v1686_v3 = vld [vmem:[%s2132_s1 + $0x198] sm:$0xff]   ;;  %v1688_v5 = vld [vmem:[%s2132_s1 + $0x190] sm:$0xff]  }
  0x55   :  { %v1687_v4 = vld [vmem:[%s2132_s1 + $0x1d8] sm:$0xff]   ;;  %v1689_v6 = vld [vmem:[%s2132_s1 + $0x1d0] sm:$0xff]   ;;  %v1690_v7 = vld [vmem:[%s2132_s1 + $0x188] sm:$0xff]  }
  0x56   :  { %1518 = vmatpush3.bf16.msra.mxu0 %v1672_v52  ;;  %v1691_v8 = vld [vmem:[%s2132_s1 + $0x1c8] sm:$0xff]   ;;  %v1692_v9 = vld [vmem:[%s2132_s1 + $0x180] sm:$0xff]   ;;  %v1694_v11 = vld [vmem:[%s2132_s1 + $0x238] sm:$0xff]  }
  0x57   :  { %1538 = vmatpush3.bf16.msra.mxu1 %v1673_v53  ;;  %1519 = vmatprep.subr.bf16.mxu0 %v1732_v1  ;;  %v1693_v10 = vld [vmem:[%s2132_s1 + $0x1c0] sm:$0xff]   ;;  %v1695_v12 = vld [vmem:[%s2132_s1 + $0x230] sm:$0xff]   ;;  %v1696_v13 = vld [vmem:[%s2132_s1 + $0x228] sm:$0xff]  }
  0x58   :  { %1539 = vmatprep.subr.bf16.mxu1 %v1732_v1  ;;  %v1697_v14 = vld [vmem:[%s2132_s1 + $0x220] sm:$0xff]   ;;  %v1698_v15 = vld [vmem:[%s2132_s1 + $0x218] sm:$0xff]   ;;  %v1699_v16 = vld [vmem:[%s2132_s1 + $0x210] sm:$0xff]  }
  0x59   :  { %v1700_v17 = vld [vmem:[%s2132_s1 + $0x208] sm:$0xff]   ;;  %v1701_v18 = vld [vmem:[%s2132_s1 + $0x200] sm:$0xff]   ;;  %v1702_v19 = vld [vmem:[%s2134_s3 + $0x38] sm:$0xff]  }
  0x5a   :  { %1520 = vmatpush3.bf16.msra.mxu0 %v1674_v54  ;;  %v1703_v20 = vld [vmem:[%s2134_s3 + $0x30] sm:$0xff]   ;;  %v1704_v21 = vld [vmem:[%s2134_s3 + $0x28] sm:$0xff]   ;;  %v1705_v22 = vld [vmem:[%s2134_s3 + $0x20] sm:$0xff]  }
  0x5b   :  { %1540 = vmatpush3.bf16.msra.mxu1 %v1675_v55  ;;  %1521 = vmatprep.subr.bf16.mxu0 %v1732_v1  ;;  %v1706_v23 = vld [vmem:[%s2134_s3 + $0x18] sm:$0xff]   ;;  %v1707_v24 = vld [vmem:[%s2134_s3 + $0x10] sm:$0xff]   ;;  %v1708_v26 = vld [vmem:[%s2134_s3 + $0x8] sm:$0xff]  }
  0x5c   :  { %1541 = vmatprep.subr.bf16.mxu1 %v1732_v1  ;;  %v1709_v32 = vld [vmem:[%s2134_s3] sm:$0xff]  }
  0x5e   :  { %1522 = vmatpush3.bf16.msra.mxu0 %v1676_v56 }
  0x5f   :  { %1542 = vmatpush3.bf16.msra.mxu1 %v1677_v57  ;;  %1547 = vmatprep.subr.bf16.mxu0 %v1732_v1 }
  0x60   :  { %1567 = vmatprep.subr.bf16.mxu1 %v1732_v1 }
  0x61   :  { %1524 = vmatmul.mubr.bf16.vlgmr.msra.gmra.mxu0 %v1839_v25 }
  0x62   :  { %1548 = vmatpush3.bf16.msra.mxu0 %v1678_v58  ;;  %1544 = vmatmul.mubr.bf16.vlgmr.msra.gmra.mxu1 %v1839_v25 }
  0x63   :  { %1568 = vmatpush3.bf16.msra.mxu1 %v1679_v59  ;;  %1549 = vmatprep.subr.bf16.mxu0 %v1732_v1 }
  0x64   :  { %1569 = vmatprep.subr.bf16.mxu1 %v1732_v1  ;;  %1563 = vmatprep.mubr.msk.bf16.mxu0 %vm1733_vm0, %v1732_v1 }
  0x65   :  { %1583 = vmatprep.mubr.msk.bf16.mxu1 %vm1733_vm0, %v1732_v1 }
  0x66   :  { %1550 = vmatpush3.bf16.msra.mxu0 %v1680_v60 }
  0x67   :  { %1570 = vmatpush3.bf16.msra.mxu1 %v1681_v61  ;;  %1551 = vmatprep.subr.bf16.mxu0 %v1732_v1 }
  0x68   :  { %1571 = vmatprep.subr.bf16.mxu1 %v1732_v1 }
  0x6a   :  { %1552 = vmatpush3.bf16.msra.mxu0 %v1682_v62 }
  0x6b   :  { %1572 = vmatpush3.bf16.msra.mxu1 %v1683_v63  ;;  %1553 = vmatprep.subr.bf16.mxu0 %v1732_v1 }
  0x6c   :  { %1573 = vmatprep.subr.bf16.mxu1 %v1732_v1 }
  0x6e   :  { %1554 = vmatpush3.bf16.msra.mxu0 %v1684_v0 }
  0x6f   :  { %1574 = vmatpush3.bf16.msra.mxu1 %v1685_v2  ;;  %1555 = vmatprep.subr.bf16.mxu0 %v1732_v1 }
  0x70   :  { %1575 = vmatprep.subr.bf16.mxu1 %v1732_v1 }
  0x72   :  { %1556 = vmatpush3.bf16.msra.mxu0 %v1686_v3  ;;  %v1327_v3 = vld [vmem:[%s2133_s2] ss:$0 sm:$0xff]  ;;  %s1710_s2 = scalar_lea.vmem %s1120_s29, 32 }
  0x73   :  { %1576 = vmatpush3.bf16.msra.mxu1 %v1687_v4  ;;  %1557 = vmatprep.subr.bf16.mxu0 %v1732_v1  ;;  %p1711_p0 = scmp.ne.s32.totalorder %s1120_s29, %s1710_s2  ;;  %p1716_p2 = scmp.lt.s32.totalorder %s1710_s2, %s1710_s2 }
  0x74   :  { %1577 = vmatprep.subr.bf16.mxu1 %v1732_v1 }
  0x75   :  { %p1717_p3 = por %p1716_p2, %p1715_p1 }
  0x76   :  { %1558 = vmatpush3.bf16.msra.mxu0 %v1688_v5 }
  0x77   :  { %1578 = vmatpush3.bf16.msra.mxu1 %v1689_v6  ;;  %1559 = vmatprep.subr.bf16.mxu0 %v1732_v1  ;;  %p1718_p4 = pnand %p1717_p3, %p1711_p0 }
  0x78   :  { %1579 = vmatprep.subr.bf16.mxu1 %v1732_v1 }
  0x7a   :  { %1560 = vmatpush3.bf16.msra.mxu0 %v1690_v7 }
  0x7b   :  { %1580 = vmatpush3.bf16.msra.mxu1 %v1691_v8  ;;  %1561 = vmatprep.subr.bf16.mxu0 %v1732_v1 }
  0x7c   :  { %1581 = vmatprep.subr.bf16.mxu1 %v1732_v1 }
  0x7e   :  { %1562 = vmatpush3.bf16.msra.mxu0 %v1692_v9 }
  0x7f   :  { %1582 = vmatpush3.bf16.msra.mxu1 %v1693_v10  ;;  %1587 = vmatprep.subr.bf16.mxu0 %v1732_v1 }
  0x80   :  { %1607 = vmatprep.subr.bf16.mxu1 %v1732_v1 }
  0x81   :  { %1564 = vmatmul.mubr.bf16.vlgmr.msra.gmra.mxu0 %v1839_v25 }
  0x82   :  { %1588 = vmatpush3.bf16.msra.mxu0 %v1694_v11  ;;  %1584 = vmatmul.mubr.bf16.vlgmr.msra.gmra.mxu1 %v1839_v25  ;;  %v1328_v11 = vld [vmem:[%s2135_s4] ss:$0 sm:$0xff] }
  0x83   :  { %1589 = vmatprep.subr.bf16.mxu0 %v1732_v1  ;;  %1603 = vmatprep.mubr.msk.bf16.mxu0 %vm1733_vm0, %v1732_v1 }
  0x84   :  { %1623 = vmatprep.mubr.msk.bf16.mxu1 %vm1733_vm0, %v1732_v1  ;;  %1608 = vmatpush3.bf16.msra.mxu1 %v1702_v19 }
  0x85   :  { %1609 = vmatprep.subr.bf16.mxu1 %v1732_v1 }
  0x86   :  { %1590 = vmatpush3.bf16.msra.mxu0 %v1695_v12 }
  0x87   :  { %1591 = vmatprep.subr.bf16.mxu0 %v1732_v1 }
  0x88   :  { %1610 = vmatpush3.bf16.msra.mxu1 %v1703_v20 }
  0x89   :  { %1611 = vmatprep.subr.bf16.mxu1 %v1732_v1 }
  0x8a   :  { %1592 = vmatpush3.bf16.msra.mxu0 %v1696_v13 }
  0x8b   :  { %1593 = vmatprep.subr.bf16.mxu0 %v1732_v1 }
  0x8c   :  { %1612 = vmatpush3.bf16.msra.mxu1 %v1704_v21 }
  0x8d   :  { %1613 = vmatprep.subr.bf16.mxu1 %v1732_v1 }
  0x8e   :  { %1594 = vmatpush3.bf16.msra.mxu0 %v1697_v14 }
  0x8f   :  { %1595 = vmatprep.subr.bf16.mxu0 %v1732_v1 }
  0x90   :  { %1614 = vmatpush3.bf16.msra.mxu1 %v1705_v22 }
  0x91   :  { %1615 = vmatprep.subr.bf16.mxu1 %v1732_v1 }
  0x92   :  { %1596 = vmatpush3.bf16.msra.mxu0 %v1698_v15 }
  0x93   :  { %1597 = vmatprep.subr.bf16.mxu0 %v1732_v1 }
  0x94   :  { %1616 = vmatpush3.bf16.msra.mxu1 %v1706_v23 }
  0x95   :  { %1617 = vmatprep.subr.bf16.mxu1 %v1732_v1 }
  0x96   :  { %1598 = vmatpush3.bf16.msra.mxu0 %v1699_v16 }
  0x97   :  { %1599 = vmatprep.subr.bf16.mxu0 %v1732_v1 }
  0x98   :  { %1618 = vmatpush3.bf16.msra.mxu1 %v1707_v24 }
  0x99   :  { %1619 = vmatprep.subr.bf16.mxu1 %v1732_v1 }
  0x9a   :  { %1600 = vmatpush3.bf16.msra.mxu0 %v1700_v17 }
  0x9b   :  { %1601 = vmatprep.subr.bf16.mxu0 %v1732_v1 }
  0x9c   :  { %1620 = vmatpush3.bf16.msra.mxu1 %v1708_v26 }
  0x9d   :  { %1621 = vmatprep.subr.bf16.mxu1 %v1732_v1 }
  0x9e   :  { %1602 = vmatpush3.bf16.msra.mxu0 %v1701_v18 }
  0xa0   :  { %1622 = vmatpush3.bf16.msra.mxu1 %v1709_v32 }
  0xa1   :  { %1604 = vmatmul.mubr.bf16.vlgmr.msra.gmra.mxu0 %v1839_v25 }
  0xe1   :  { %v154_v25 = vpop.f32.mrf.mxu0 }
  0xe2   :  { %v242_v27 = vpop.f32.mrf.mxu1 }
  0xe3   :  { %v243_v28 = vadd.f32 %v242_v27, %v154_v25  ;;  %v1445_v29 = vpop.f32.mrf.mxu0 }
  0xe4   :  { %v1465_v30 = vpop.f32.mrf.mxu1 }
  0xe5   :  { %v157_v31 = vpop.f32.mrf.mxu0 }
  0xe6   :  { %v245_v33 = vpop.f32.mrf.mxu1 }
  0xe7   :  { %v1446_v34 = vpop.f32.mrf.mxu0 }
  0xe8   :  { %v1466_v35 = vpop.f32.mrf.mxu1 }
 0x101   :  { %v347_v36 = vpop.f32.mrf.mxu0 }
 0x102   :  { %v353_v37 = vadd.f32 %v347_v36, %v243_v28  ;;  %v453_v38 = vpop.f32.mrf.mxu1 }
 0x103   :  { %v1485_v39 = vpop.f32.mrf.mxu0 }
 0x104   :  { %v459_v40 = vadd.f32 %v453_v38, %v353_v37  ;;  %v1505_v41 = vpop.f32.mrf.mxu1 }
 0x105   :  { %v350_v42 = vpop.f32.mrf.mxu0 }
 0x106   :  { %v456_v43 = vpop.f32.mrf.mxu1 }
 0x107   :  { %v1486_v44 = vpop.f32.mrf.mxu0 }
 0x108   :  { %v1506_v45 = vpop.f32.mrf.mxu1 }
 0x121   :  { %v559_v1 = vpop.f32.mrf.mxu0 }
 0x122   :  { %v665_v46 = vpop.f32.mrf.mxu1  ;;  %v565_v61 = vadd.f32 %v559_v1, %v459_v40 }
 0x123   :  { %v1525_v47 = vpop.f32.mrf.mxu0 }
 0x124   :  { %v1545_v48 = vpop.f32.mrf.mxu1  ;;  %v671_v62 = vadd.f32 %v665_v46, %v565_v61 }
 0x125   :  { %v562_v49 = vpop.f32.mrf.mxu0 }
 0x126   :  { %v668_v50 = vpop.f32.mrf.mxu1 }
 0x127   :  { %v1526_v51 = vpop.f32.mrf.mxu0 }
 0x128   :  { %v1546_v52 = vpop.f32.mrf.mxu1 }
 0x141   :  { %v771_v53 = vpop.f32.mrf.mxu0 }
 0x142   :  { %v877_v54 = vpop.f32.mrf.mxu1  ;;  %v777_v63 = vadd.f32 %v771_v53, %v671_v62 }
 0x143   :  { %v1565_v55 = vpop.f32.mrf.mxu0 }
 0x144   :  { %v1585_v56 = vpop.f32.mrf.mxu1  ;;  %v883_v0 = vadd.f32 %v877_v54, %v777_v63 }
 0x145   :  { %v774_v57 = vpop.f32.mrf.mxu0 }
 0x146   :  { %v880_v58 = vpop.f32.mrf.mxu1 }
 0x147   :  { %v1566_v59 = vpop.f32.mrf.mxu0 }
 0x148   :  { %v1586_v60 = vpop.f32.mrf.mxu1 }
 0x161   :  { %v983_v2 = vpop.f32.mrf.mxu0 }
 0x162   :  { %v989_v4 = vadd.f32 %v983_v2, %v883_v0 }
 0x163   :  { %v1605_v5 = vpop.f32.mrf.mxu0 }
 0x164   :  { %v997_v6 = vadd.f32 %v1327_v3, %v989_v4 }
 0x165   :  { %v986_v7 = vpop.f32.mrf.mxu0 }
 0x166   :  { %v998_v8 = vmax.f32 %v997_v6, 0.0 }
 0x167   :  { %v1606_v9 = vpop.f32.mrf.mxu0 }
 0x168   :  { %v999_v10 = vpack.c.bf16 %v998_v8, %v998_v8 }
 0x16a   :  { %1624 = vmatmul.mubr.bf16.vlgmr.msra.gmra.mxu1 %v999_v10 }
 0x22a   :  { %v1105_v12 = vpop.f32.mrf.mxu1 }
 0x22b   :  { %v1106_v13 = vadd.f32 %v1328_v11, %v1105_v12 }
 0x22c   :  { %v1625_v14 = vpop.f32.mrf.mxu1 }
 0x22d   :  { %1112 = vst.msk [vmem:[#allocation2] sm:$0x3] %vm1111_vm2, %v1106_v13 }
 0x22e   :  { %v1108_v15 = vpop.f32.mrf.mxu1 }
 0x22f   :  { %1721 = shalt.err (!%p1718_p4)
}
 0x230   :  { %1122 = dma.vmem_to_hbm [thread:$0]  %s1120_s29, 32, %s2136_s5, [#allocation3]   ;;  %v1626_v16 = vpop.f32.mrf.mxu1 }
 0x231   :  { %1730 = dma.done.wait [#allocation3], 32  }
 0x232   :  { %1731 = vsyncadd [#allocation3], 4294967264 }
 0x233   :  { %1126 = vsyncpa [#allocation3], 1 }

</bundles_post_ra>
